<compile_context>
chip_gen: v5e
topology: v5e:2x2
jax: 0.10.0
libtpu: 0.0.40
codegen_flags: <defaults>
</compile_context>

<pallas_src>
from functools import partial

import numpy as np
import jax
import jax.numpy as jnp
from jax.experimental import pallas as pl
from jax.experimental.pallas import tpu as pltpu

LN_EPS = 1e-5  # torch.nn.LayerNorm default


# --------------------------------------------------------------------------- #
# Kernel 1: fused LN1 + shifted-window attention + projection + residual
# --------------------------------------------------------------------------- #
def _win_attn_kernel(*refs, num_heads, head_dim, has_valid, has_mask):
    """One grid step processes WB windows of one batch element.

    Ref order (valid/mask only present when the static flags say so):
      xw (1, WB, N, C) raw tokens | [valid (WB, N, 1)] | [mask (WB, N, N)] |
      bias (nh, N, N) | g1 (1, C) | b1 (1, C) | wqkv (C, 3C) | bqkv (1, 3C) |
      wproj (C, C) | bproj (1, C) | out (1, WB, N, C)
    """
    it = iter(refs)
    xw_ref = next(it)
    valid_ref = next(it) if has_valid else None
    mask_ref = next(it) if has_mask else None
    bias_ref = next(it)
    g1_ref = next(it)
    b1_ref = next(it)
    wqkv_ref = next(it)
    bqkv_ref = next(it)
    wproj_ref = next(it)
    bproj_ref = next(it)
    o_ref = next(it)

    xw = xw_ref[0]                                   # (WB, N, C)
    wb, n_tok, c = xw.shape
    dt = xw.dtype
    x32 = xw.astype(jnp.float32)

    # LayerNorm over C (biased variance, eps = 1e-5), in f32.
    mean = jnp.mean(x32, axis=-1, keepdims=True)
    var = jnp.mean((x32 - mean) * (x32 - mean), axis=-1, keepdims=True)
    xn = (x32 - mean) * jax.lax.rsqrt(var + LN_EPS)
    xn = xn * g1_ref[...].astype(jnp.float32) + b1_ref[...].astype(jnp.float32)
    if has_valid:
        # Match torch: padding is applied to the *normed* tensor -> pad tokens are 0.
        xn = xn * valid_ref[...].astype(jnp.float32)

    # One fused QKV projection; the 1/sqrt(head_dim) scale is already folded into
    # the q columns of wqkv/bqkv by the wrapper.  Cast back to input dtype ONCE.
    xn2 = xn.reshape(wb * n_tok, c).astype(dt)
    qkv = jnp.dot(xn2, wqkv_ref[...], preferred_element_type=jnp.float32)
    qkv = (qkv + bqkv_ref[...].astype(jnp.float32)).astype(dt)    # (WB*N, 3C)
    qkv = qkv.reshape(wb, n_tok, 3 * c)

    bias32 = bias_ref[...].astype(jnp.float32)                    # (nh, N, N)
    if has_mask:
        mask32 = mask_ref[...].astype(jnp.float32)                # (WB, N, N)

    ctx_heads = []
    for h in range(num_heads):
        lo = h * head_dim
        q = qkv[:, :, lo:lo + head_dim]                           # (WB, N, hd), dt
        k = qkv[:, :, c + lo:c + lo + head_dim]
        v = qkv[:, :, 2 * c + lo:2 * c + lo + head_dim]

        s = jnp.einsum('wqd,wkd->wqk', q, k,
                       preferred_element_type=jnp.float32)        # (WB, N, N) f32
        s = s + bias32[h][None]
        if has_mask:
            s = s + mask32
        s = s - jnp.max(s, axis=-1, keepdims=True)
        p = jnp.exp(s)
        p = p * pl.reciprocal(jnp.sum(p, axis=-1, keepdims=True), approx=True)

        ctx_heads.append(
            jnp.einsum('wqk,wkd->wqd', p.astype(dt), v,
                       preferred_element_type=jnp.float32).astype(dt))

    # Merge heads along the lane dim -> single K=C projection matmul.
    ctx = jnp.concatenate(ctx_heads, axis=-1).reshape(wb * n_tok, c)
    y = jnp.dot(ctx, wproj_ref[...], preferred_element_type=jnp.float32)
    y = y + bproj_ref[...].astype(jnp.float32) + x32.reshape(wb * n_tok, c)
    o_ref[0] = y.reshape(wb, n_tok, c).astype(o_ref.dtype)


# --------------------------------------------------------------------------- #
# Kernel 2: fused LN2 + MLP (Linear -> exact GELU -> Linear) + residual,
#           tiled over tokens (grid axis 0, parallel) and over the hidden dim
#           (grid axis 1, reduction, f32 VMEM accumulator).
# --------------------------------------------------------------------------- #
def _erf_approx(z):
    # Abramowitz & Stegun 7.1.26 rational approximation (|err| <= 1.5e-7),
    # built only from ops that lower cleanly in Mosaic (exp/mul/add/select).
    a1, a2, a3, a4, a5 = (0.254829592, -0.284496736, 1.421413741,
                          -1.453152027, 1.061405429)
    p = 0.3275911
    az = jnp.abs(z)
    t = 1.0 / (1.0 + p * az)
    poly = ((((a5 * t + a4) * t + a3) * t + a2) * t + a1) * t
    y = 1.0 - poly * jnp.exp(-az * az)
    return jnp.where(z >= 0, y, -y)


def _gelu_exact(x):
    # torch.nn.GELU default is the exact (erf-based) form.
    return 0.5 * x * (1.0 + _erf_approx(x * 0.7071067811865476))


def _mlp_kernel(x_ref, g2_ref, b2_ref, w1_ref, b1h_ref, w2_ref, b2o_ref, o_ref,
                xn_ref, acc_ref):
    k = pl.program_id(1)

    @pl.when(k == 0)
    def _():
        x32 = x_ref[...].astype(jnp.float32)
        mean = jnp.mean(x32, axis=-1, keepdims=True)
        var = jnp.mean((x32 - mean) * (x32 - mean), axis=-1, keepdims=True)
        xn = (x32 - mean) * jax.lax.rsqrt(var + LN_EPS)
        xn = xn * g2_ref[...].astype(jnp.float32) + b2_ref[...].astype(jnp.float32)
        xn_ref[...] = xn.astype(xn_ref.dtype)
        acc_ref[...] = jnp.zeros_like(acc_ref)

    h = jnp.dot(xn_ref[...], w1_ref[...], preferred_element_type=jnp.float32)
    h = _gelu_exact(h + b1h_ref[...].astype(jnp.float32))
    acc_ref[...] += jnp.dot(h.astype(x_ref.dtype), w2_ref[...],
                            preferred_element_type=jnp.float32)

    @pl.when(k == pl.num_programs(1) - 1)
    def _():
        y = acc_ref[...] + b2o_ref[...].astype(jnp.float32) \
            + x_ref[...].astype(jnp.float32)
        o_ref[...] = y.astype(o_ref.dtype)


# --------------------------------------------------------------------------- #
# Static (numpy) index bookkeeping, replicating the PyTorch module exactly
# --------------------------------------------------------------------------- #
def _round_up(v, m):
    return ((v + m - 1) // m) * m


def _rel_position_bias(table, window_size, num_heads):
    """table ((2wh-1)*(2ww-1), nh) -> (nh, N, N) bias, exactly as the torch code."""
    wh, ww = window_size
    coords = np.stack(np.meshgrid(np.arange(wh), np.arange(ww), indexing='ij'))
    coords_flat = coords.reshape(2, -1)
    rel = coords_flat[:, :, None] - coords_flat[:, None, :]
    rel = rel.transpose(1, 2, 0).astype(np.int64)
    rel[:, :, 0] += wh - 1
    rel[:, :, 1] += ww - 1
    rel[:, :, 0] *= 2 * ww - 1
    idx = rel.sum(-1).reshape(-1)
    n = wh * ww
    bias = table[idx].reshape(n, n, num_heads)
    return jnp.transpose(bias, (2, 0, 1)).astype(jnp.float32)


def _shift_attn_mask(pad_h, pad_w, window_size, shift_size):
    """Additive shifted-window attention mask, (nW, N, N) of {0, -100}."""
    wh, ww = window_size
    sh, sw = shift_size
    n_wh, n_ww = pad_h // wh, pad_w // ww
    n_win, n = n_wh * n_ww, wh * ww
    if sh == 0 and sw == 0:
        return np.zeros((n_win, n, n), np.float32)
    region = np.zeros((pad_h, pad_w), np.float32)
    h_slices = ((0, -wh), (-wh, -sh), (-sh, None))
    w_slices = ((0, -ww), (-ww, -sw), (-sw, None))
    count = 0
    for hs in h_slices:
        for ws_ in w_slices:
            region[hs[0]:hs[1], ws_[0]:ws_[1]] = count
            count += 1
    region = region.reshape(n_wh, wh, n_ww, ww).transpose(0, 2, 1, 3).reshape(n_win, n)
    diff = region[:, None, :] - region[:, :, None]
    return np.where(diff != 0, -100.0, 0.0).astype(np.float32)


def _pad_valid_mask(h, w, pad_h, pad_w, window_size, shift_size):
    """(nW, N, 1) multiplicative mask: 1 for real tokens, 0 for padded tokens."""
    wh, ww = window_size
    n_wh, n_ww = pad_h // wh, pad_w // ww
    valid = np.zeros((pad_h, pad_w), np.float32)
    valid[:h, :w] = 1.0
    if shift_size[0] or shift_size[1]:
        valid = np.roll(valid, (-shift_size[0], -shift_size[1]), axis=(0, 1))
    valid = valid.reshape(n_wh, wh, n_ww, ww).transpose(0, 2, 1, 3)
    return valid.reshape(n_wh * n_ww, wh * ww, 1)


def _window_partition(x, window_size):
    b, ph, pw, c = x.shape
    wh, ww = window_size
    n_wh, n_ww = ph // wh, pw // ww
    x = x.reshape(b, n_wh, wh, n_ww, ww, c).transpose(0, 1, 3, 2, 4, 5)
    return x.reshape(b, n_wh * n_ww, wh * ww, c)


def _window_reverse(x, window_size, pad_h, pad_w):
    b, n_win, n, c = x.shape
    wh, ww = window_size
    n_wh, n_ww = pad_h // wh, pad_w // ww
    x = x.reshape(b, n_wh, n_ww, wh, ww, c).transpose(0, 1, 3, 2, 4, 5)
    return x.reshape(b, pad_h, pad_w, c)


# --------------------------------------------------------------------------- #
# Generation-aware VMEM budgeting / block-size selection
# --------------------------------------------------------------------------- #
def _vmem_budget():
    """Returns (vmem_limit_bytes for CompilerParams, byte budget for tiling)."""
    try:
        cap = int(pltpu.get_tpu_info().vmem_capacity_bytes)
        limit = (cap * 3) // 4
    except Exception:
        limit = 32 * 1024 * 1024          # safe request on every TPU generation
    return limit, (limit * 4) // 5


def _attn_step_bytes(wb, n_tok, c, nh, dsize, has_mask, has_valid):
    rows = wb * n_tok
    b = 2 * 2 * rows * c * dsize              # x tile in + out, double-buffered
    b += rows * 3 * c * (4 + dsize)           # qkv f32 dot result + dt copy
    b += 4 * wb * n_tok * n_tok * 4           # per-head score/prob f32 temporaries
    b += rows * c * (dsize + 4)               # merged ctx (dt) + proj f32 result
    b += 2 * nh * n_tok * n_tok * 4           # rel-pos bias, double-buffered
    if has_mask:
        b += 2 * wb * n_tok * n_tok * 4
    if has_valid:
        b += 2 * wb * n_tok * 4
    b += 2 * (4 * c * c + 4 * c) * dsize      # qkv + proj weights/biases, dbuf
    return b


def _pick_wb(n_windows, n_tok, c, nh, dsize, has_mask, has_valid, budget, batch):
    # Keep >= 2 total grid steps so both v7x TensorCores get work.
    max_wb = n_windows if batch > 1 else max(1, n_windows // 2)
    best, best8 = 1, 0
    for d in range(1, n_windows + 1):
        if n_windows % d or d > max_wb:
            continue
        if d * n_tok > 2048:                  # review target: ~1-2k rows / step
            continue
        if _attn_step_bytes(d, n_tok, c, nh, dsize, has_mask, has_valid) > budget:
            continue
        best = d
        if (d * n_tok) % 8 == 0:              # keep the flattened rows 8-aligned
            best8 = d
    return best8 if best8 else best


def _mlp_step_bytes(tm, c, th, dsize):
    b = 2 * 2 * tm * c * dsize                # x in + out, double-buffered
    b += tm * c * (dsize + 4)                 # xn scratch (dt) + f32 accumulator
    b += 2 * tm * th * 4                      # hidden activations (f32) + temp
    b += 2 * (2 * c * th + th + c) * dsize    # per-chunk weights/biases, dbuf
    return b


def _pick_th(c, hidden, dsize, budget):
    cands = [d for d in range(128, hidden + 1, 128) if hidden % d == 0]
    if not cands:
        return hidden   # TODO(synk): pad hidden to a 128 multiple for odd widths
    wt_budget = max(budget // 3, 1)
    ok = [d for d in cands if 4 * c * d * dsize <= wt_budget]
    return max(ok) if ok else min(cands)


def _pick_tm(n_tok, c, th, dsize, budget):
    tm = min(2048, _round_up(n_tok, 8))
    while tm > 64 and _mlp_step_bytes(tm, c, th, dsize) > budget:
        tm = _round_up(max(64, tm // 2), 8)
    # Keep at least two token tiles so both v7x TensorCores get work.
    if _round_up(n_tok, tm) // tm < 2 and n_tok >= 16:
        tm = _round_up((n_tok + 1) // 2, 8)
    return tm


# --------------------------------------------------------------------------- #
# Full SwinTransformerBlock forward
# --------------------------------------------------------------------------- #
def swin_transformer_block(x, params, *, window_size, shift_size, num_heads):
    """Inference forward of SwinTransformerBlock.  x: (B, H, W, C) channels-last."""
    B, H, W, C = x.shape
    wh, ww = window_size
    head_dim = C // num_heads
    dt = x.dtype
    dsize = x.dtype.itemsize

    pad_b = (wh - H % wh) % wh
    pad_r = (ww - W % ww) % ww
    pH, pW = H + pad_b, W + pad_r
    ss = list(shift_size)
    if wh >= pH:
        ss[0] = 0
    if ww >= pW:
        ss[1] = 0
    shifted = (ss[0] + ss[1]) > 0
    padded = (pad_b + pad_r) > 0

    xp = jnp.pad(x, ((0, 0), (0, pad_b), (0, pad_r), (0, 0)))
    if shifted:
        xp = jnp.roll(xp, (-ss[0], -ss[1]), axis=(1, 2))

    n_wh, n_ww = pH // wh, pW // ww
    nW = n_wh * n_ww
    N = wh * ww
    xw = _window_partition(xp, window_size)                      # (B, nW, N, C)

    vmem_limit, budget = _vmem_budget()

    has_mask = shifted
    has_valid = padded
    rpb = _rel_position_bias(params['rel_pos_table'], window_size, num_heads)

    # Fold 1/sqrt(head_dim) into the q columns of the qkv weight/bias; cast all
    # matmul weights/biases to the compute dtype.
    scale = float(head_dim) ** -0.5
    scale_vec = jnp.concatenate([jnp.full((C,), scale, jnp.float32),
                                 jnp.ones((2 * C,), jnp.float32)])
    wqkv_t = (params['qkv_weight'].astype(jnp.float32)
              * scale_vec[:, None]).T.astype(dt)                 # (C, 3C)
    bqkv = (params['qkv_bias'].astype(jnp.float32)
            * scale_vec).reshape(1, 3 * C).astype(dt)
    wproj_t = params['proj_weight'].T.astype(dt)                 # (C, C)
    bproj = params['proj_bias'].reshape(1, C).astype(dt)
    g1 = params['norm1_weight'].reshape(1, C).astype(jnp.float32)
    b1 = params['norm1_bias'].reshape(1, C).astype(jnp.float32)

    wb = _pick_wb(nW, N, C, num_heads, dsize, has_mask, has_valid, budget, B)

    operands = [xw]
    in_specs = [pl.BlockSpec((1, wb, N, C), lambda b, w: (b, w, 0, 0))]
    if has_valid:
        valid = jnp.asarray(_pad_valid_mask(H, W, pH, pW, window_size, ss))
        operands.append(valid)
        in_specs.append(pl.BlockSpec((wb, N, 1), lambda b, w: (w, 0, 0)))
    if has_mask:
        mask = jnp.asarray(_shift_attn_mask(pH, pW, window_size, ss))
        operands.append(mask)
        in_specs.append(pl.BlockSpec((wb, N, N), lambda b, w: (w, 0, 0)))
    operands += [rpb, g1, b1, wqkv_t, bqkv, wproj_t, bproj]
    in_specs += [
        pl.BlockSpec((num_heads, N, N), lambda b, w: (0, 0, 0)),
        pl.BlockSpec((1, C), lambda b, w: (0, 0)),
        pl.BlockSpec((1, C), lambda b, w: (0, 0)),
        pl.BlockSpec((C, 3 * C), lambda b, w: (0, 0)),
        pl.BlockSpec((1, 3 * C), lambda b, w: (0, 0)),
        pl.BlockSpec((C, C), lambda b, w: (0, 0)),
        pl.BlockSpec((1, C), lambda b, w: (0, 0)),
    ]

    attn_kernel = partial(_win_attn_kernel, num_heads=num_heads, head_dim=head_dim,
                          has_valid=has_valid, has_mask=has_mask)
    attn_res = pl.pallas_call(
        attn_kernel,
        out_shape=jax.ShapeDtypeStruct((B, nW, N, C), dt),
        grid=(B, nW // wb),
        in_specs=in_specs,
        out_specs=pl.BlockSpec((1, wb, N, C), lambda b, w: (b, w, 0, 0)),
        compiler_params=pltpu.CompilerParams(
            dimension_semantics=("parallel", "parallel"),
            vmem_limit_bytes=vmem_limit),
    )(*operands)

    y = _window_reverse(attn_res, window_size, pH, pW)           # (B, pH, pW, C)
    if shifted:
        y = jnp.roll(y, (ss[0], ss[1]), axis=(1, 2))
    x1 = y[:, :H, :W, :]                                         # x + attn(norm1(x))

    # ---- MLP branch --------------------------------------------------------
    hidden = params['mlp_w1'].shape[0]
    th = _pick_th(C, hidden, dsize, budget)
    n_tok = B * H * W
    tm = _pick_tm(n_tok, C, th, dsize, budget)
    n_pad = _round_up(n_tok, tm)

    xf = x1.reshape(n_tok, C)
    if n_pad != n_tok:
        xf = jnp.pad(xf, ((0, n_pad - n_tok), (0, 0)))

    g2 = params['norm2_weight'].reshape(1, C).astype(jnp.float32)
    b2 = params['norm2_bias'].reshape(1, C).astype(jnp.float32)
    w1_t = params['mlp_w1'].T.astype(dt)                         # (C, hidden)
    b1h = params['mlp_b1'].reshape(1, hidden).astype(dt)
    w2_t = params['mlp_w2'].T.astype(dt)                         # (hidden, C)
    b2o = params['mlp_b2'].reshape(1, C).astype(dt)

    out = pl.pallas_call(
        _mlp_kernel,
        out_shape=jax.ShapeDtypeStruct((n_pad, C), dt),
        grid=(n_pad // tm, hidden // th),
        in_specs=[
            pl.BlockSpec((tm, C), lambda i, k: (i, 0)),
            pl.BlockSpec((1, C), lambda i, k: (0, 0)),
            pl.BlockSpec((1, C), lambda i, k: (0, 0)),
            pl.BlockSpec((C, th), lambda i, k: (0, k)),
            pl.BlockSpec((1, th), lambda i, k: (0, k)),
            pl.BlockSpec((th, C), lambda i, k: (k, 0)),
            pl.BlockSpec((1, C), lambda i, k: (0, 0)),
        ],
        out_specs=pl.BlockSpec((tm, C), lambda i, k: (i, 0)),
        scratch_shapes=[pltpu.VMEM((tm, C), dt),
                        pltpu.VMEM((tm, C), jnp.float32)],
        compiler_params=pltpu.CompilerParams(
            dimension_semantics=("parallel", "arbitrary"),
            vmem_limit_bytes=vmem_limit),
    )(xf, g2, b2, w1_t, b1h, w2_t, b2o)

    return out[:n_tok].reshape(B, H, W, C)


# --------------------------------------------------------------------------- #
# Pure-JAX reference mirroring the PyTorch module
# --------------------------------------------------------------------------- #
def _layer_norm_ref(x, g, b):
    x32 = x.astype(jnp.float32)
    mean = jnp.mean(x32, axis=-1, keepdims=True)
    var = jnp.mean((x32 - mean) ** 2, axis=-1, keepdims=True)
    return ((x32 - mean) * jax.lax.rsqrt(var + LN_EPS)) * g + b


def _attention_ref(xn, params, window_size, shift_size, num_heads):
    B, H, W, C = xn.shape
    wh, ww = window_size
    pad_b = (wh - H % wh) % wh
    pad_r = (ww - W % ww) % ww
    pH, pW = H + pad_b, W + pad_r
    ss = list(shift_size)
    if wh >= pH:
        ss[0] = 0
    if ww >= pW:
        ss[1] = 0
    xp = jnp.pad(xn, ((0, 0), (0, pad_b), (0, pad_r), (0, 0)))
    if sum(ss) > 0:
        xp = jnp.roll(xp, (-ss[0], -ss[1]), axis=(1, 2))
    n_wh, n_ww = pH // wh, pW // ww
    nW, N = n_wh * n_ww, wh * ww
    xwin = xp.reshape(B, n_wh, wh, n_ww, ww, C).transpose(0, 1, 3, 2, 4, 5)
    xwin = xwin.reshape(B * nW, N, C)

    qkv = xwin @ params['qkv_weight'].T + params['qkv_bias']
    qkv = qkv.reshape(B * nW, N, 3, num_heads, C // num_heads).transpose(2, 0, 3, 1, 4)
    q, k, v = qkv[0] * (C // num_heads) ** -0.5, qkv[1], qkv[2]
    attn = q @ jnp.swapaxes(k, -2, -1)
    attn = attn + _rel_position_bias(params['rel_pos_table'], window_size, num_heads)[None]
    if sum(ss) > 0:
        mask = jnp.asarray(_shift_attn_mask(pH, pW, window_size, ss))
        attn = attn.reshape(B, nW, num_heads, N, N) + mask[None, :, None]
        attn = attn.reshape(B * nW, num_heads, N, N)
    attn = jax.nn.softmax(attn, axis=-1)
    out = (attn @ v).transpose(0, 2, 1, 3).reshape(B * nW, N, C)
    out = out @ params['proj_weight'].T + params['proj_bias']
    out = out.reshape(B, n_wh, n_ww, wh, ww, C).transpose(0, 1, 3, 2, 4, 5)
    out = out.reshape(B, pH, pW, C)
    if sum(ss) > 0:
        out = jnp.roll(out, (ss[0], ss[1]), axis=(1, 2))
    return out[:, :H, :W, :]


def _reference(x, params, window_size, shift_size, num_heads):
    h1 = _layer_norm_ref(x, params['norm1_weight'], params['norm1_bias'])
    x = x + _attention_ref(h1, params, window_size, shift_size, num_heads)
    h2 = _layer_norm_ref(x, params['norm2_weight'], params['norm2_bias'])
    h = h2 @ params['mlp_w1'].T + params['mlp_b1']
    h = 0.5 * h * (1.0 + jax.lax.erf(h * 0.7071067811865476))    # exact GELU
    h = h @ params['mlp_w2'].T + params['mlp_b2']
    return x + h


# --------------------------------------------------------------------------- #
if __name__ == "__main__":
    def make_params(key, C, num_heads, hidden, window_size):
        ks = jax.random.split(key, 14)
        n_bias = (2 * window_size[0] - 1) * (2 * window_size[1] - 1)
        return dict(
            norm1_weight=1.0 + 0.1 * jax.random.normal(ks[0], (C,), jnp.float32),
            norm1_bias=0.05 * jax.random.normal(ks[1], (C,), jnp.float32),
            qkv_weight=0.1 * jax.random.normal(ks[2], (3 * C, C), jnp.float32),
            qkv_bias=0.02 * jax.random.normal(ks[3], (3 * C,), jnp.float32),
            proj_weight=0.1 * jax.random.normal(ks[4], (C, C), jnp.float32),
            proj_bias=0.02 * jax.random.normal(ks[5], (C,), jnp.float32),
            rel_pos_table=0.02 * jax.random.normal(ks[6], (n_bias, num_heads), jnp.float32),
            norm2_weight=1.0 + 0.1 * jax.random.normal(ks[7], (C,), jnp.float32),
            norm2_bias=0.05 * jax.random.normal(ks[8], (C,), jnp.float32),
            mlp_w1=0.1 * jax.random.normal(ks[9], (hidden, C), jnp.float32),
            mlp_b1=0.02 * jax.random.normal(ks[10], (hidden,), jnp.float32),
            mlp_w2=0.1 * jax.random.normal(ks[11], (C, hidden), jnp.float32),
            mlp_b2=0.02 * jax.random.normal(ks[12], (C,), jnp.float32),
        )

    cases = [
        # shifted (SW-MSA) path, no spatial padding
        dict(B=2, H=16, W=16, C=32, num_heads=2, window=[8, 8], shift=[4, 4]),
        # un-shifted (W-MSA) path with spatial padding (12 -> 16)
        dict(B=2, H=12, W=12, C=32, num_heads=2, window=[8, 8], shift=[0, 0]),
    ]

    key = jax.random.PRNGKey(0)
    for i, cfg in enumerate(cases):
        kx, kp = jax.random.split(jax.random.fold_in(key, i))
        hidden = int(cfg['C'] * 4.0)
        x = jax.random.normal(kx, (cfg['B'], cfg['H'], cfg['W'], cfg['C']),
                              dtype=jnp.float32)
        params = make_params(kp, cfg['C'], cfg['num_heads'], hidden, cfg['window'])

        out = swin_transformer_block(x, params, window_size=cfg['window'],
                                     shift_size=cfg['shift'],
                                     num_heads=cfg['num_heads'])
        out = jax.block_until_ready(out)

        with jax.default_matmul_precision("highest"):
            ref = _reference(x, params, cfg['window'], cfg['shift'], cfg['num_heads'])
        ref = jax.block_until_ready(ref)

        assert out.shape == x.shape, (out.shape, x.shape)
        # Tolerance covers MXU multi-pass f32 rounding, the 1.5e-7 erf
        # approximation, and the approx (EUP) softmax reciprocal.
        err = float(jnp.max(jnp.abs(out - ref)))
        assert jnp.allclose(out, ref, atol=5e-3, rtol=5e-3), (i, err)

    print("KERNEL_OK")
</pallas_src>

<mosaic_0001>
module attributes {stable_mosaic.version = 11 : i64} {
  func.func @_win_attn_kernel(%arg0: i32, %arg1: i32, %arg2: memref<1x4x64x32xf32, #tpu.memory_space<vmem>>, %arg3: memref<4x64x64xf32, #tpu.memory_space<vmem>>, %arg4: memref<2x64x64xf32, #tpu.memory_space<vmem>>, %arg5: memref<1x32xf32, #tpu.memory_space<vmem>>, %arg6: memref<1x32xf32, #tpu.memory_space<vmem>>, %arg7: memref<32x96xf32, #tpu.memory_space<vmem>>, %arg8: memref<1x96xf32, #tpu.memory_space<vmem>>, %arg9: memref<32x32xf32, #tpu.memory_space<vmem>>, %arg10: memref<1x32xf32, #tpu.memory_space<vmem>>, %arg11: memref<1x4x64x32xf32, #tpu.memory_space<vmem>>) attributes {dimension_semantics = [#tpu.dimension_semantics<parallel>, #tpu.dimension_semantics<parallel>], iteration_bounds = array<i64: 2, 1>, scalar_prefetch = 0 : i64, scratch_operands = 0 : i64, tpu.core_type = #tpu.core_type<tc>, window_params = [{transform_indices = @transform_0, window_bounds = array<i64: 1, 4, 64, 32>}, {transform_indices = @transform_1, window_bounds = array<i64: 4, 64, 64>}, {pipeline_mode = #tpu.pipeline_mode<synchronous>, transform_indices = @transform_2, window_bounds = array<i64: 2, 64, 64>}, {pipeline_mode = #tpu.pipeline_mode<synchronous>, transform_indices = @transform_3, window_bounds = array<i64: 1, 32>}, {pipeline_mode = #tpu.pipeline_mode<synchronous>, transform_indices = @transform_4, window_bounds = array<i64: 1, 32>}, {pipeline_mode = #tpu.pipeline_mode<synchronous>, transform_indices = @transform_5, window_bounds = array<i64: 32, 96>}, {pipeline_mode = #tpu.pipeline_mode<synchronous>, transform_indices = @transform_6, window_bounds = array<i64: 1, 96>}, {pipeline_mode = #tpu.pipeline_mode<synchronous>, transform_indices = @transform_7, window_bounds = array<i64: 32, 32>}, {pipeline_mode = #tpu.pipeline_mode<synchronous>, transform_indices = @transform_8, window_bounds = array<i64: 1, 32>}, {transform_indices = @transform_9, window_bounds = array<i64: 1, 4, 64, 32>}]} {
    %c0 = arith.constant 0 : index
    %c0_0 = arith.constant 0 : index
    %c0_1 = arith.constant 0 : index
    %c0_2 = arith.constant 0 : index
    %0 = vector.load %arg2[%c0, %c0_0, %c0_1, %c0_2] : memref<1x4x64x32xf32, #tpu.memory_space<vmem>>, vector<1x4x64x32xf32>
    %1 = vector.shape_cast %0 : vector<1x4x64x32xf32> to vector<4x64x32xf32>
    %cst = arith.constant dense<0.000000e+00> : vector<4x64xf32>
    %2 = vector.multi_reduction <add>, %1, %cst [2] : vector<4x64x32xf32> to vector<4x64xf32>
    %3 = vector.shape_cast %2 : vector<4x64xf32> to vector<4x64x1xf32>
    %cst_3 = arith.constant 3.200000e+01 : f32
    %4 = vector.broadcast %cst_3 : f32 to vector<4x64x1xf32>
    %5 = arith.divf %3, %4 : vector<4x64x1xf32>
    %6 = vector.broadcast %5 : vector<4x64x1xf32> to vector<4x64x32xf32>
    %7 = arith.subf %1, %6 : vector<4x64x32xf32>
    %8 = vector.broadcast %5 : vector<4x64x1xf32> to vector<4x64x32xf32>
    %9 = arith.subf %1, %8 : vector<4x64x32xf32>
    %10 = arith.mulf %7, %9 : vector<4x64x32xf32>
    %cst_4 = arith.constant dense<0.000000e+00> : vector<4x64xf32>
    %11 = vector.multi_reduction <add>, %10, %cst_4 [2] : vector<4x64x32xf32> to vector<4x64xf32>
    %12 = vector.shape_cast %11 : vector<4x64xf32> to vector<4x64x1xf32>
    %cst_5 = arith.constant 3.200000e+01 : f32
    %13 = vector.broadcast %cst_5 : f32 to vector<4x64x1xf32>
    %14 = arith.divf %12, %13 : vector<4x64x1xf32>
    %15 = vector.broadcast %5 : vector<4x64x1xf32> to vector<4x64x32xf32>
    %16 = arith.subf %1, %15 : vector<4x64x32xf32>
    %cst_6 = arith.constant 9.99999974E-6 : f32
    %17 = vector.broadcast %cst_6 : f32 to vector<4x64x1xf32>
    %18 = arith.addf %14, %17 : vector<4x64x1xf32>
    %19 = math.rsqrt %18 : vector<4x64x1xf32>
    %20 = vector.broadcast %19 : vector<4x64x1xf32> to vector<4x64x32xf32>
    %21 = arith.mulf %16, %20 : vector<4x64x32xf32>
    %c0_7 = arith.constant 0 : index
    %c0_8 = arith.constant 0 : index
    %22 = vector.load %arg5[%c0_7, %c0_8] : memref<1x32xf32, #tpu.memory_space<vmem>>, vector<1x32xf32>
    %23 = vector.shape_cast %22 : vector<1x32xf32> to vector<1x1x32xf32>
    %24 = vector.broadcast %23 : vector<1x1x32xf32> to vector<4x64x32xf32>
    %25 = arith.mulf %21, %24 : vector<4x64x32xf32>
    %c0_9 = arith.constant 0 : index
    %c0_10 = arith.constant 0 : index
    %26 = vector.load %arg6[%c0_9, %c0_10] : memref<1x32xf32, #tpu.memory_space<vmem>>, vector<1x32xf32>
    %27 = vector.shape_cast %26 : vector<1x32xf32> to vector<1x1x32xf32>
    %28 = vector.broadcast %27 : vector<1x1x32xf32> to vector<4x64x32xf32>
    %29 = arith.addf %25, %28 : vector<4x64x32xf32>
    %30 = vector.shape_cast %29 : vector<4x64x32xf32> to vector<256x32xf32>
    %c0_11 = arith.constant 0 : index
    %c0_12 = arith.constant 0 : index
    %31 = vector.load %arg7[%c0_11, %c0_12] : memref<32x96xf32, #tpu.memory_space<vmem>>, vector<32x96xf32>
    %cst_13 = arith.constant dense<0.000000e+00> : vector<256x96xf32>
    %32 = tpu.matmul %30, %31, %cst_13 {dimension_numbers = #tpu.dot_dimension_numbers<[1], [0], [0], [1], [0, 0, 1, 1], [], []>} : vector<256x32xf32>, vector<32x96xf32>, vector<256x96xf32> -> vector<256x96xf32>
    %c0_14 = arith.constant 0 : index
    %c0_15 = arith.constant 0 : index
    %33 = vector.load %arg8[%c0_14, %c0_15] : memref<1x96xf32, #tpu.memory_space<vmem>>, vector<1x96xf32>
    %34 = vector.broadcast %33 : vector<1x96xf32> to vector<256x96xf32>
    %35 = arith.addf %32, %34 : vector<256x96xf32>
    %36 = vector.shape_cast %35 : vector<256x96xf32> to vector<4x64x96xf32>
    %c0_16 = arith.constant 0 : index
    %c0_17 = arith.constant 0 : index
    %c0_18 = arith.constant 0 : index
    %37 = vector.load %arg4[%c0_16, %c0_17, %c0_18] : memref<2x64x64xf32, #tpu.memory_space<vmem>>, vector<2x64x64xf32>
    %c0_19 = arith.constant 0 : index
    %c0_20 = arith.constant 0 : index
    %c0_21 = arith.constant 0 : index
    %38 = vector.load %arg3[%c0_19, %c0_20, %c0_21] : memref<4x64x64xf32, #tpu.memory_space<vmem>>, vector<4x64x64xf32>
    %39 = vector.extract_strided_slice %36 {offsets = [0, 0, 0], sizes = [4, 64, 16], strides = [1, 1, 1]} : vector<4x64x96xf32> to vector<4x64x16xf32>
    %40 = vector.extract_strided_slice %36 {offsets = [0, 0, 32], sizes = [4, 64, 16], strides = [1, 1, 1]} : vector<4x64x96xf32> to vector<4x64x16xf32>
    %41 = vector.extract_strided_slice %36 {offsets = [0, 0, 64], sizes = [4, 64, 16], strides = [1, 1, 1]} : vector<4x64x96xf32> to vector<4x64x16xf32>
    "tpu.trace_start"() <{level = 10 : i32, message = "wqd,wkd->wqk"}> : () -> ()
    %cst_22 = arith.constant dense<0.000000e+00> : vector<4x64x64xf32>
    %42 = tpu.matmul %39, %40, %cst_22 {dimension_numbers = #tpu.dot_dimension_numbers<[2], [2], [1], [1], [0, 0, 0, 1, 1, 1], [0], [0]>} : vector<4x64x16xf32>, vector<4x64x16xf32>, vector<4x64x64xf32> -> vector<4x64x64xf32>
    "tpu.trace_stop"() : () -> ()
    %43 = vector.extract_strided_slice %37 {offsets = [0, 0, 0], sizes = [1, 64, 64], strides = [1, 1, 1]} : vector<2x64x64xf32> to vector<1x64x64xf32>
    %44 = vector.shape_cast %43 : vector<1x64x64xf32> to vector<64x64xf32>
    %45 = vector.shape_cast %44 : vector<64x64xf32> to vector<1x64x64xf32>
    %46 = vector.broadcast %45 : vector<1x64x64xf32> to vector<4x64x64xf32>
    %47 = arith.addf %42, %46 : vector<4x64x64xf32>
    %48 = arith.addf %47, %38 : vector<4x64x64xf32>
    %cst_23 = arith.constant dense<0xFF800000> : vector<4x64xf32>
    %49 = vector.multi_reduction <maximumf>, %48, %cst_23 [2] : vector<4x64x64xf32> to vector<4x64xf32>
    %50 = vector.shape_cast %49 : vector<4x64xf32> to vector<4x64x1xf32>
    %51 = vector.broadcast %50 : vector<4x64x1xf32> to vector<4x64x64xf32>
    %52 = arith.subf %48, %51 : vector<4x64x64xf32>
    %53 = math.exp %52 : vector<4x64x64xf32>
    %cst_24 = arith.constant dense<0.000000e+00> : vector<4x64xf32>
    %54 = vector.multi_reduction <add>, %53, %cst_24 [2] : vector<4x64x64xf32> to vector<4x64xf32>
    %55 = vector.shape_cast %54 : vector<4x64xf32> to vector<4x64x1xf32>
    %56 = tpu.reciprocal %55 {approx = true} : vector<4x64x1xf32> -> vector<4x64x1xf32>
    %57 = vector.broadcast %56 : vector<4x64x1xf32> to vector<4x64x64xf32>
    %58 = arith.mulf %53, %57 : vector<4x64x64xf32>
    "tpu.trace_start"() <{level = 10 : i32, message = "wqk,wkd->wqd"}> : () -> ()
    %cst_25 = arith.constant dense<0.000000e+00> : vector<4x64x16xf32>
    %59 = tpu.matmul %58, %41, %cst_25 {dimension_numbers = #tpu.dot_dimension_numbers<[2], [1], [1], [2], [0, 0, 0, 1, 1, 2], [0], [0]>} : vector<4x64x64xf32>, vector<4x64x16xf32>, vector<4x64x16xf32> -> vector<4x64x16xf32>
    "tpu.trace_stop"() : () -> ()
    %60 = vector.extract_strided_slice %36 {offsets = [0, 0, 16], sizes = [4, 64, 16], strides = [1, 1, 1]} : vector<4x64x96xf32> to vector<4x64x16xf32>
    %61 = vector.extract_strided_slice %36 {offsets = [0, 0, 48], sizes = [4, 64, 16], strides = [1, 1, 1]} : vector<4x64x96xf32> to vector<4x64x16xf32>
    %62 = vector.extract_strided_slice %36 {offsets = [0, 0, 80], sizes = [4, 64, 16], strides = [1, 1, 1]} : vector<4x64x96xf32> to vector<4x64x16xf32>
    "tpu.trace_start"() <{level = 10 : i32, message = "wqd,wkd->wqk"}> : () -> ()
    %cst_26 = arith.constant dense<0.000000e+00> : vector<4x64x64xf32>
    %63 = tpu.matmul %60, %61, %cst_26 {dimension_numbers = #tpu.dot_dimension_numbers<[2], [2], [1], [1], [0, 0, 0, 1, 1, 1], [0], [0]>} : vector<4x64x16xf32>, vector<4x64x16xf32>, vector<4x64x64xf32> -> vector<4x64x64xf32>
    "tpu.trace_stop"() : () -> ()
    %64 = vector.extract_strided_slice %37 {offsets = [1, 0, 0], sizes = [1, 64, 64], strides = [1, 1, 1]} : vector<2x64x64xf32> to vector<1x64x64xf32>
    %65 = vector.shape_cast %64 : vector<1x64x64xf32> to vector<64x64xf32>
    %66 = vector.shape_cast %65 : vector<64x64xf32> to vector<1x64x64xf32>
    %67 = vector.broadcast %66 : vector<1x64x64xf32> to vector<4x64x64xf32>
    %68 = arith.addf %63, %67 : vector<4x64x64xf32>
    %69 = arith.addf %68, %38 : vector<4x64x64xf32>
    %cst_27 = arith.constant dense<0xFF800000> : vector<4x64xf32>
    %70 = vector.multi_reduction <maximumf>, %69, %cst_27 [2] : vector<4x64x64xf32> to vector<4x64xf32>
    %71 = vector.shape_cast %70 : vector<4x64xf32> to vector<4x64x1xf32>
    %72 = vector.broadcast %71 : vector<4x64x1xf32> to vector<4x64x64xf32>
    %73 = arith.subf %69, %72 : vector<4x64x64xf32>
    %74 = math.exp %73 : vector<4x64x64xf32>
    %cst_28 = arith.constant dense<0.000000e+00> : vector<4x64xf32>
    %75 = vector.multi_reduction <add>, %74, %cst_28 [2] : vector<4x64x64xf32> to vector<4x64xf32>
    %76 = vector.shape_cast %75 : vector<4x64xf32> to vector<4x64x1xf32>
    %77 = tpu.reciprocal %76 {approx = true} : vector<4x64x1xf32> -> vector<4x64x1xf32>
    %78 = vector.broadcast %77 : vector<4x64x1xf32> to vector<4x64x64xf32>
    %79 = arith.mulf %74, %78 : vector<4x64x64xf32>
    "tpu.trace_start"() <{level = 10 : i32, message = "wqk,wkd->wqd"}> : () -> ()
    %cst_29 = arith.constant dense<0.000000e+00> : vector<4x64x16xf32>
    %80 = tpu.matmul %79, %62, %cst_29 {dimension_numbers = #tpu.dot_dimension_numbers<[2], [1], [1], [2], [0, 0, 0, 1, 1, 2], [0], [0]>} : vector<4x64x64xf32>, vector<4x64x16xf32>, vector<4x64x16xf32> -> vector<4x64x16xf32>
    "tpu.trace_stop"() : () -> ()
    %81 = tpu.concatenate %59, %80 in 2 : vector<4x64x16xf32>, vector<4x64x16xf32> -> vector<4x64x32xf32>
    %82 = vector.shape_cast %81 : vector<4x64x32xf32> to vector<256x32xf32>
    %c0_30 = arith.constant 0 : index
    %c0_31 = arith.constant 0 : index
    %83 = vector.load %arg9[%c0_30, %c0_31] : memref<32x32xf32, #tpu.memory_space<vmem>>, vector<32x32xf32>
    %cst_32 = arith.constant dense<0.000000e+00> : vector<256x32xf32>
    %84 = tpu.matmul %82, %83, %cst_32 {dimension_numbers = #tpu.dot_dimension_numbers<[1], [0], [0], [1], [0, 0, 1, 1], [], []>} : vector<256x32xf32>, vector<32x32xf32>, vector<256x32xf32> -> vector<256x32xf32>
    %c0_33 = arith.constant 0 : index
    %c0_34 = arith.constant 0 : index
    %85 = vector.load %arg10[%c0_33, %c0_34] : memref<1x32xf32, #tpu.memory_space<vmem>>, vector<1x32xf32>
    %86 = vector.broadcast %85 : vector<1x32xf32> to vector<256x32xf32>
    %87 = arith.addf %84, %86 : vector<256x32xf32>
    %88 = vector.shape_cast %1 : vector<4x64x32xf32> to vector<256x32xf32>
    %89 = arith.addf %87, %88 : vector<256x32xf32>
    %90 = vector.shape_cast %89 : vector<256x32xf32> to vector<4x64x32xf32>
    %c0_35 = arith.constant 0 : index
    %c0_36 = arith.constant 0 : index
    %c0_37 = arith.constant 0 : index
    %c0_38 = arith.constant 0 : index
    %91 = vector.load %arg11[%c0_35, %c0_36, %c0_37, %c0_38] : memref<1x4x64x32xf32, #tpu.memory_space<vmem>>, vector<1x4x64x32xf32>
    %92 = vector.shape_cast %91 : vector<1x4x64x32xf32> to vector<4x64x32xf32>
    %93 = vector.shape_cast %90 : vector<4x64x32xf32> to vector<1x4x64x32xf32>
    tpu.vector_store %arg11[%c0_35, %c0_36, %c0_37, %c0_38], %93 {strides = array<i32>} : memref<1x4x64x32xf32, #tpu.memory_space<vmem>>, vector<1x4x64x32xf32>,
    return
  }
  func.func @transform_0(%arg0: i32, %arg1: i32) -> (i32, i32, i32, i32) {
    %c0_i32 = arith.constant 0 : i32
    %c0_i32_0 = arith.constant 0 : i32
    %c0_i32_1 = arith.constant 0 : i32
    return %arg0, %arg1, %c0_i32, %c0_i32_0 : i32, i32, i32, i32
  }
  func.func @transform_1(%arg0: i32, %arg1: i32) -> (i32, i32, i32) {
    %c0_i32 = arith.constant 0 : i32
    %c0_i32_0 = arith.constant 0 : i32
    %c0_i32_1 = arith.constant 0 : i32
    return %arg1, %c0_i32, %c0_i32_0 : i32, i32, i32
  }
  func.func @transform_2(%arg0: i32, %arg1: i32) -> (i32, i32, i32) {
    %c0_i32 = arith.constant 0 : i32
    %c0_i32_0 = arith.constant 0 : i32
    %c0_i32_1 = arith.constant 0 : i32
    %c0_i32_2 = arith.constant 0 : i32
    return %c0_i32, %c0_i32_0, %c0_i32_1 : i32, i32, i32
  }
  func.func @transform_3(%arg0: i32, %arg1: i32) -> (i32, i32) {
    %c0_i32 = arith.constant 0 : i32
    %c0_i32_0 = arith.constant 0 : i32
    %c0_i32_1 = arith.constant 0 : i32
    return %c0_i32, %c0_i32_0 : i32, i32
  }
  func.func @transform_4(%arg0: i32, %arg1: i32) -> (i32, i32) {
    %c0_i32 = arith.constant 0 : i32
    %c0_i32_0 = arith.constant 0 : i32
    %c0_i32_1 = arith.constant 0 : i32
    return %c0_i32, %c0_i32_0 : i32, i32
  }
  func.func @transform_5(%arg0: i32, %arg1: i32) -> (i32, i32) {
    %c0_i32 = arith.constant 0 : i32
    %c0_i32_0 = arith.constant 0 : i32
    %c0_i32_1 = arith.constant 0 : i32
    return %c0_i32, %c0_i32_0 : i32, i32
  }
  func.func @transform_6(%arg0: i32, %arg1: i32) -> (i32, i32) {
    %c0_i32 = arith.constant 0 : i32
    %c0_i32_0 = arith.constant 0 : i32
    %c0_i32_1 = arith.constant 0 : i32
    return %c0_i32, %c0_i32_0 : i32, i32
  }
  func.func @transform_7(%arg0: i32, %arg1: i32) -> (i32, i32) {
    %c0_i32 = arith.constant 0 : i32
    %c0_i32_0 = arith.constant 0 : i32
    %c0_i32_1 = arith.constant 0 : i32
    return %c0_i32, %c0_i32_0 : i32, i32
  }
  func.func @transform_8(%arg0: i32, %arg1: i32) -> (i32, i32) {
    %c0_i32 = arith.constant 0 : i32
    %c0_i32_0 = arith.constant 0 : i32
    %c0_i32_1 = arith.constant 0 : i32
    return %c0_i32, %c0_i32_0 : i32, i32
  }
  func.func @transform_9(%arg0: i32, %arg1: i32) -> (i32, i32, i32, i32) {
    %c0_i32 = arith.constant 0 : i32
    %c0_i32_0 = arith.constant 0 : i32
    %c0_i32_1 = arith.constant 0 : i32
    return %arg0, %arg1, %c0_i32, %c0_i32_0 : i32, i32, i32, i32
  }
}

</mosaic_0001>

<bundles_post_ra>
// kernel: tpu_custom_call.1
= control target key start
LH: loop header
LB: loop body
LE: loop exit
PB: predicated region body
PF: predicated region fallthrough
CT: control target
= control target key end

     0   :  { %s5279_s30 = smov 0   ;;  %s5281_s10 = smov 0   ;;  %s8368_s0 = inlined_call_operand.vmem [shape: f32[2,4,64,32], index: 0, kind: input, shape index: {}]   ;;  %s8369_s1 = inlined_call_operand.vmem [shape: f32[4,64,64], index: 1, kind: input, shape index: {}]   ;;  %s8370_s2 = inlined_call_operand.vmem [shape: f32[2,64,64], index: 2, kind: input, shape index: {}]   ;;  %s8371_s3 = inlined_call_operand.vmem [shape: f32[1,32], index: 3, kind: input, shape index: {}]   ;;  %s8372_s4 = inlined_call_operand.vmem [shape: f32[1,32], index: 4, kind: input, shape index: {}]   ;;  %s8373_s5 = inlined_call_operand.vmem [shape: f32[32,96], index: 5, kind: input, shape index: {}]   ;;  %s8374_s6 = inlined_call_operand.vmem [shape: f32[1,96], index: 6, kind: input, shape index: {}]   ;;  %s8375_s7 = inlined_call_operand.vmem [shape: f32[32,32], index: 7, kind: input, shape index: {}]   ;;  %s8376_s8 = inlined_call_operand.vmem [shape: f32[1,32], index: 8, kind: input, shape index: {}]   ;;  %s8377_s9 = inlined_call_operand.vmem [shape: f32[2,4,64,32], index: 9, kind: output, shape index: {}]  }
   0x1   :  { %s5283_s11 = smov 0  }
   0x2 LB: > { %s31_s12 = sadd.s32 1, %s5216_s10  ;;  %p4330_p0 = scmp.ge.s32.totalorder %s5220_s11, 1  ;;  %s5220_s11 = sphi %s5283_s11, %s19_s11   ;;  %s5216_s10 = sphi %s5281_s10, %s8561_s10   ;;  %s5212_s30 = sphi %s5279_s30, %s8560_s30  }
   0x3   : > { %p33_p1 = scmp.ge.s32.totalorder %s31_s12, 2  ;;  %p321_p2 = scmp.lt.s32.totalorder %s5220_s11, 3 }
   0x5   : > { %s8563_s12 = smov (%p33_p1, %s31_s12), 0  ;;  %p322_p3 = pnand %p4330_p0, %p321_p2 }
   0x7   : > { %325 = sbr.rel (%p322_p3) target bundleno = 2540 (0x9ec), region = 56 }
   0xc   : > { %p374_p4 = scmp.lt.s32.totalorder %s5212_s30, 1  ;;  %vm434_vm0 = vcmask 261120   ;;  %v5222_v56 = vmov 32.0   ;;  %s5223_s15 = smov 96  }
   0xd   : > { %4810 = vrcp.f32 %v5222_v56  ;;  %s5224_s17 = smov 112   ;;  %s5225_s18 = smov 80  }
   0xe   : > { %s8565_s30 = smov (!%p374_p4, %s5212_s30), 1  ;;  %s5226_s23 = smov 64  }
   0xf   : > { %s4593_s13 = sshll.u32 %s8565_s30, 8  ;;  %s5227_s26 = smov 48  }
  0x10   : > { %s5305_s16 = scalar_lea.vmem %s8368_s0, %s4593_s13  ;;  %s8129_s20 = scalar_lea.vmem %s8377_s9, %s4593_s13 }
  0x11   : > { %v5308_v0 = vld [vmem:[%s5305_s16 + $0x50] sm:$0xff]  ;;  %v5311_v1 = vld [vmem:[%s5305_s16] sm:$0xff]  ;;  %v5314_v2 = vld [vmem:[%s5305_s16 + $0x58] sm:$0xff] }
  0x12   : > { %v465_v3 = vsel %vm434_vm0, %v5308_v0, 0.0  ;;  %v435_v4 = vsel %vm434_vm0, %v5311_v1, 0.0  ;;  %v468_v5 = vsel %vm434_vm0, %v5314_v2, 0.0  ;;  %v5323_v6 = vld [vmem:[%s5305_s16 + $0x10] sm:$0xff]  ;;  %v5326_v7 = vld [vmem:[%s5305_s16 + $0x8] sm:$0xff]  ;;  %v5329_v8 = vld [vmem:[%s5305_s16 + $0x18] sm:$0xff] }
  0x13   : > { %466 = vadd.xlane.f32.xlu1 %v465_v3  ;;  %436 = vadd.xlane.f32.xlu0 %v435_v4  ;;  %v441_v9 = vsel %vm434_vm0, %v5323_v6, 0.0  ;;  %v438_v10 = vsel %vm434_vm0, %v5326_v7, 0.0  ;;  %v444_v11 = vsel %vm434_vm0, %v5329_v8, 0.0  ;;  %v5338_v12 = vld [vmem:[%s5305_s16 + $0x20] sm:$0xff]  ;;  %v5344_v14 = vld [vmem:[%s5305_s16 + $0x68] sm:$0xff]  ;;  %v5353_v18 = vld [vmem:[%s5305_s16 + $0x70] sm:$0xff]  ;;  %v4811_v59 = vpop.eup %4810 }
  0x14   : > { %469 = vadd.xlane.f32.xlu2 %v468_v5  ;;  %v5341_v13 = vld [vmem:[%s5305_s16 + $0x60] sm:$0xff]  ;;  %v447_v15 = vsel %vm434_vm0, %v5338_v12, 0.0  ;;  %v474_v17 = vsel %vm434_vm0, %v5344_v14, 0.0  ;;  %v5356_v19 = vld [vmem:[%s5305_s16 + $0x28] sm:$0xff]  ;;  %v477_v20 = vsel %vm434_vm0, %v5353_v18, 0.0  ;;  %v5363_v22 = vld [vmem:[%s5305_s16 + $0x78] sm:$0xff]  ;;  %vm536_vm1 = vweird.f32 %v4811_v59 }
  0x15   : > { %v471_v16 = vsel %vm434_vm0, %v5341_v13, 0.0  ;;  %v450_v21 = vsel %vm434_vm0, %v5356_v19, 0.0  ;;  %v5366_v23 = vld [vmem:[%s5305_s16 + $0x30] sm:$0xff]  ;;  %v480_v24 = vsel %vm434_vm0, %v5363_v22, 0.0  ;;  %v5373_v26 = vld [vmem:[%s5305_s16 + $0xb8] sm:$0xff]  ;;  %v5393_v34 = vld [vmem:[%s5305_s16 + $0x40] sm:$0xff] }
  0x16   : > { %v453_v25 = vsel %vm434_vm0, %v5366_v23, 0.0  ;;  %v504_v27 = vsel %vm434_vm0, %v5373_v26, 0.0  ;;  %v5378_v28 = vld [vmem:[%s5305_s16 + $0x38] sm:$0xff]  ;;  %v5381_v29 = vld [vmem:[%s5305_s16 + $0xb0] sm:$0xff]  ;;  %v459_v35 = vsel %vm434_vm0, %v5393_v34, 0.0  ;;  %v5398_v36 = vld [vmem:[%s5305_s16 + $0x88] sm:$0xff] }
  0x17   : > { %v456_v30 = vsel %vm434_vm0, %v5378_v28, 0.0  ;;  %v501_v31 = vsel %vm434_vm0, %v5381_v29, 0.0  ;;  %v5388_v32 = vld [vmem:[%s5305_s16 + $0x90] sm:$0xff]  ;;  %v486_v37 = vsel %vm434_vm0, %v5398_v36, 0.0  ;;  %v5403_v38 = vld [vmem:[%s5305_s16 + $0xe0] sm:$0xff]  ;;  %v5408_v40 = vld [vmem:[%s5305_s16 + $0x48] sm:$0xff] }
  0x18   : > { %v489_v33 = vsel %vm434_vm0, %v5388_v32, 0.0  ;;  %v519_v39 = vsel %vm434_vm0, %v5403_v38, 0.0  ;;  %v462_v41 = vsel %vm434_vm0, %v5408_v40, 0.0  ;;  %v5413_v42 = vld [vmem:[%s5305_s16 + $0xd8] sm:$0xff]  ;;  %v5426_v47 = vld [vmem:[%s5305_s16 + $0xf0] sm:$0xff]  ;;  %v5433_v50 = vld [vmem:[%s5305_s16 + $0xa0] sm:$0xff] }
  0x19   : > { %v516_v43 = vsel %vm434_vm0, %v5413_v42, 0.0  ;;  %v5418_v44 = vld [vmem:[%s5305_s16 + $0xf8] sm:$0xff]  ;;  %v525_v49 = vsel %vm434_vm0, %v5426_v47, 0.0  ;;  %v495_v51 = vsel %vm434_vm0, %v5433_v50, 0.0  ;;  %v5438_v52 = vld [vmem:[%s5305_s16 + $0xa8] sm:$0xff]  ;;  %v5443_v54 = vld [vmem:[%s5305_s16 + $0x80] sm:$0xff] }
  0x1a   : > { %v528_v45 = vsel %vm434_vm0, %v5418_v44, 0.0  ;;  %v5423_v46 = vld [vmem:[%s5305_s16 + $0x98] sm:$0xff]  ;;  %v498_v53 = vsel %vm434_vm0, %v5438_v52, 0.0  ;;  %v483_v55 = vsel %vm434_vm0, %v5443_v54, 0.0  ;;  %v5448_v57 = vld [vmem:[%s5305_s16 + $0xe8] sm:$0xff]  ;;  %v532_v60 = vmul.f32 32.0, %v4811_v59 }
  0x1b   : > { %442 = vadd.xlane.f32.xlu1 %v441_v9  ;;  %439 = vadd.xlane.f32.xlu0 %v438_v10  ;;  %v492_v48 = vsel %vm434_vm0, %v5423_v46, 0.0  ;;  %v522_v58 = vsel %vm434_vm0, %v5448_v57, 0.0 }
  0x1c   : > { %445 = vadd.xlane.f32.xlu2 %v444_v11  ;;  %v533_v61 = vsub.f32 1.0, %v532_v60 }
  0x1e   : > { %v534_v62 = vmul.f32 %v4811_v59, %v533_v61 }
  0x20   : > { %v535_v63 = vadd.f32 %v4811_v59, %v534_v62 }
  0x22   : > { %v5452_v3 = vsel %vm536_vm1, %v4811_v59, %v535_v63 }
  0x23   : > { %448 = vadd.xlane.f32.xlu1 %v447_v15  ;;  %472 = vadd.xlane.f32.xlu0 %v471_v16 }
  0x24   : > { %475 = vadd.xlane.f32.xlu2 %v474_v17 }
  0x2b   : > { %478 = vadd.xlane.f32.xlu1 %v477_v20  ;;  %451 = vadd.xlane.f32.xlu0 %v450_v21 }
  0x2c   : > { %505 = vadd.xlane.f32.xlu2 %v504_v27 }
  0x33   : > { %481 = vadd.xlane.f32.xlu1 %v480_v24  ;;  %454 = vadd.xlane.f32.xlu0 %v453_v25 }
  0x34   : > { %490 = vadd.xlane.f32.xlu2 %v489_v33 }
  0x3b   : > { %457 = vadd.xlane.f32.xlu1 %v456_v30  ;;  %502 = vadd.xlane.f32.xlu0 %v501_v31 }
  0x3c   : > { %520 = vadd.xlane.f32.xlu2 %v519_v39 }
  0x43   : > { %460 = vadd.xlane.f32.xlu1 %v459_v35  ;;  %487 = vadd.xlane.f32.xlu0 %v486_v37 }
  0x44   : > { %529 = vadd.xlane.f32.xlu2 %v528_v45 }
  0x4b   : > { %463 = vadd.xlane.f32.xlu1 %v462_v41  ;;  %517 = vadd.xlane.f32.xlu0 %v516_v43 }
  0x53   : > { %493 = vadd.xlane.f32.xlu1 %v492_v48  ;;  %526 = vadd.xlane.f32.xlu0 %v525_v49 }
  0x5b   : > { %496 = vadd.xlane.f32.xlu1 %v495_v51 }
  0x63   : > { %499 = vadd.xlane.f32.xlu1 %v498_v53 }
  0x6b   : > { %484 = vadd.xlane.f32.xlu1 %v483_v55 }
  0x73   : > { %523 = vadd.xlane.f32.xlu1 %v522_v58 }
  0x86   : > { %v467_v4 = vpop.xlane.xlu1 %466  ;;  %v437_v5 = vpop.xlane.xlu0 %436 }
  0x87   : > { %v548_v9 = vmul.f32 %v5452_v3, %v467_v4  ;;  %v538_v10 = vmul.f32 %v5452_v3, %v437_v5  ;;  %v470_v11 = vpop.xlane.xlu2 %469 }
  0x88   : > { %v549_v15 = vmul.f32 %v5452_v3, %v470_v11 }
  0x89   : > { %v5458_v16 = vsub.f32 %v5308_v0, %v548_v9  ;;  %v5461_v17 = vsub.f32 %v5311_v1, %v538_v10 }
  0x8a   : > { %v5464_v20 = vsub.f32 %v5314_v2, %v549_v15 }
  0x8b   : > { %v612_v21 = vmul.f32 %v5458_v16, %v5458_v16  ;;  %v602_v24 = vmul.f32 %v5461_v17, %v5461_v17 }
  0x8c   : > { %v613_v2 = vmul.f32 %v5464_v20, %v5464_v20 }
  0x8d   : > { %v664_v25 = vsel %vm434_vm0, %v612_v21, 0.0  ;;  %v634_v27 = vsel %vm434_vm0, %v602_v24, 0.0 }
  0x8e   : > { %v443_v30 = vpop.xlane.xlu1 %442  ;;  %665 = vadd.xlane.f32.xlu0 %v664_v25  ;;  %635 = vadd.xlane.f32.xlu2 %v634_v27  ;;  %v440_v0 = vpop.xlane.xlu0 %439  ;;  %v667_v37 = vsel %vm434_vm0, %v613_v2, 0.0 }
  0x8f   : > { %v539_v1 = vmul.f32 %v5452_v3, %v440_v0  ;;  %v446_v31 = vpop.xlane.xlu2 %445  ;;  %v540_v33 = vmul.f32 %v5452_v3, %v443_v30 }
  0x90   : > { %v541_v49 = vmul.f32 %v5452_v3, %v446_v31 }
  0x91   : > { %v5477_v35 = vsub.f32 %v5326_v7, %v539_v1  ;;  %v5483_v41 = vsub.f32 %v5323_v6, %v540_v33 }
  0x92   : > { %v5495_v56 = vsub.f32 %v5329_v8, %v541_v49 }
  0x93   : > { %v603_v39 = vmul.f32 %v5477_v35, %v5477_v35  ;;  %v604_v6 = vmul.f32 %v5483_v41, %v5483_v41 }
  0x95   : > { %v637_v43 = vsel %vm434_vm0, %v603_v39, 0.0  ;;  %v640_v60 = vsel %vm434_vm0, %v604_v6, 0.0 }
  0x96   : > { %v449_v45 = vpop.xlane.xlu1 %448  ;;  %668 = vadd.xlane.f32.xlu0 %v667_v37  ;;  %638 = vadd.xlane.f32.xlu2 %v637_v43  ;;  %v473_v48 = vpop.xlane.xlu0 %472 }
  0x97   : > { %v550_v51 = vmul.f32 %v5452_v3, %v473_v48  ;;  %v476_v7 = vpop.xlane.xlu2 %475  ;;  %v542_v63 = vmul.f32 %v5452_v3, %v449_v45 }
  0x98   : > { %v551_v53 = vmul.f32 %v5452_v3, %v476_v7 }
  0x99   : > { %v5490_v55 = vsub.f32 %v5341_v13, %v550_v51  ;;  %v605_v13 = vmul.f32 %v5495_v56, %v5495_v56  ;;  %v5513_v10 = vsub.f32 %v5338_v12, %v542_v63 }
  0x9a   : > { %v5498_v58 = vsub.f32 %v5344_v14, %v551_v53 }
  0x9b   : > { %v614_v59 = vmul.f32 %v5490_v55, %v5490_v55  ;;  %v643_v5 = vsel %vm434_vm0, %v605_v13, 0.0  ;;  %v606_v25 = vmul.f32 %v5513_v10, %v5513_v10 }
  0x9c   : > { %v615_v8 = vmul.f32 %v5498_v58, %v5498_v58 }
  0x9d   : > { %v670_v61 = vsel %vm434_vm0, %v614_v59, 0.0  ;;  %v646_v0 = vsel %vm434_vm0, %v606_v25, 0.0 }
  0x9e   : > { %v479_v62 = vpop.xlane.xlu1 %478  ;;  %641 = vadd.xlane.f32.xlu2 %v640_v60  ;;  %671 = vadd.xlane.f32.xlu0 %v670_v61  ;;  %v452_v4 = vpop.xlane.xlu0 %451  ;;  %v673_v9 = vsel %vm434_vm0, %v615_v8, 0.0 }
  0x9f   : > { %v552_v14 = vmul.f32 %v5452_v3, %v479_v62  ;;  %v543_v21 = vmul.f32 %v5452_v3, %v452_v4 }
  0xa1   : > { %v5516_v11 = vsub.f32 %v5353_v18, %v552_v14  ;;  %v5525_v30 = vsub.f32 %v5356_v19, %v543_v21 }
  0xa3   : > { %v616_v27 = vmul.f32 %v5516_v11, %v5516_v11  ;;  %v607_v2 = vmul.f32 %v5525_v30, %v5525_v30 }
  0xa5   : > { %v676_v1 = vsel %vm434_vm0, %v616_v27, 0.0  ;;  %v649_v37 = vsel %vm434_vm0, %v607_v2, 0.0 }
  0xa6   : > { %v482_v15 = vpop.xlane.xlu1 %481  ;;  %644 = vadd.xlane.f32.xlu2 %v643_v5  ;;  %674 = vadd.xlane.f32.xlu0 %v673_v9  ;;  %v455_v12 = vpop.xlane.xlu0 %454 }
  0xa7   : > { %v553_v24 = vmul.f32 %v5452_v3, %v482_v15  ;;  %v544_v33 = vmul.f32 %v5452_v3, %v455_v12 }
  0xa9   : > { %v5528_v18 = vsub.f32 %v5363_v22, %v553_v24  ;;  %v5539_v22 = vsub.f32 %v5366_v23, %v544_v33  ;;  %v5592_v33 = vld [vmem:[%s5305_s16 + $0xc0] sm:$0xff] }
  0xab   : > { %v617_v19 = vmul.f32 %v5528_v18, %v5528_v18  ;;  %v608_v48 = vmul.f32 %v5539_v22, %v5539_v22 }
  0xad   : > { %v679_v39 = vsel %vm434_vm0, %v617_v19, 0.0  ;;  %v652_v23 = vsel %vm434_vm0, %v608_v48, 0.0  ;;  %v507_v48 = vsel %vm434_vm0, %v5592_v33, 0.0 }
  0xae   : > { %v458_v31 = vpop.xlane.xlu1 %457  ;;  %647 = vadd.xlane.f32.xlu2 %v646_v0  ;;  %677 = vadd.xlane.f32.xlu0 %v676_v1  ;;  %v503_v53 = vpop.xlane.xlu0 %502 }
  0xaf   : > { %v545_v49 = vmul.f32 %v5452_v3, %v458_v31  ;;  %v560_v62 = vmul.f32 %v5452_v3, %v503_v53  ;;  %v5606_v53 = vld [vmem:[%s5305_s16 + $0xc8] sm:$0xff] }
  0xb1   : > { %v5553_v6 = vsub.f32 %v5378_v28, %v545_v49  ;;  %v5566_v63 = vsub.f32 %v5381_v29, %v560_v62 }
  0xb3   : > { %v609_v8 = vmul.f32 %v5553_v6, %v5553_v6  ;;  %v624_v15 = vmul.f32 %v5566_v63, %v5566_v63 }
  0xb5   : > { %v655_v4 = vsel %vm434_vm0, %v609_v8, 0.0  ;;  %v700_v12 = vsel %vm434_vm0, %v624_v15, 0.0 }
  0xb6   : > { %v461_v43 = vpop.xlane.xlu1 %460  ;;  %680 = vadd.xlane.f32.xlu0 %v679_v39  ;;  %650 = vadd.xlane.f32.xlu2 %v649_v37  ;;  %v488_v21 = vpop.xlane.xlu0 %487 }
  0xb7   : > { %v546_v45 = vmul.f32 %v5452_v3, %v461_v43 }
  0xb9   : > { %v5547_v51 = vsub.f32 %v5393_v34, %v546_v45  ;;  %v506_v34 = vpop.xlane.xlu2 %505 }
  0xbb   : > { %v610_v7 = vmul.f32 %v5547_v51, %v5547_v51 }
  0xbd   : > { %v658_v59 = vsel %vm434_vm0, %v610_v7, 0.0 }
  0xbe   : > { %659 = vadd.xlane.f32.xlu1 %v658_v59  ;;  %v464_v60 = vpop.xlane.xlu1 %463  ;;  %653 = vadd.xlane.f32.xlu2 %v652_v23  ;;  %v518_v19 = vpop.xlane.xlu0 %517 }
  0xbf   : > { %v547_v61 = vmul.f32 %v5452_v3, %v464_v60 }
  0xc1   : > { %v5559_v13 = vsub.f32 %v5408_v40, %v547_v61  ;;  %v561_v40 = vmul.f32 %v5452_v3, %v506_v34  ;;  %v491_v29 = vpop.xlane.xlu2 %490  ;;  %v510_v61 = vsel %vm434_vm0, %v5606_v53, 0.0 }
  0xc2   : > { %v556_v2 = vmul.f32 %v5452_v3, %v491_v29 }
  0xc3   : > { %v611_v28 = vmul.f32 %v5559_v13, %v5559_v13  ;;  %v5578_v25 = vsub.f32 %v5373_v26, %v561_v40 }
  0xc4   : > { %v5598_v45 = vsub.f32 %v5388_v32, %v556_v2 }
  0xc5   : > { %v661_v14 = vsel %vm434_vm0, %v611_v28, 0.0 }
  0xc6   : > { %v494_v5 = vpop.xlane.xlu1 %493  ;;  %662 = vadd.xlane.f32.xlu0 %v661_v14  ;;  %656 = vadd.xlane.f32.xlu2 %v655_v4  ;;  %v620_v59 = vmul.f32 %v5598_v45, %v5598_v45  ;;  %v527_v8 = vpop.xlane.xlu0 %526 }
  0xc7   : > { %v557_v9 = vmul.f32 %v5452_v3, %v494_v5 }
  0xc8   : > { %v688_v34 = vsel %vm434_vm0, %v620_v59, 0.0  ;;  %v1220_v59 = vld [vmem:[%s8373_s5 + $0x10] sm:$0xff] }
  0xc9   : > { %v5575_v24 = vsub.f32 %v5423_v46, %v557_v9  ;;  %v625_v46 = vmul.f32 %v5578_v25, %v5578_v25  ;;  %v521_v43 = vpop.xlane.xlu2 %520  ;;  %v568_v9 = vmul.f32 %v5452_v3, %v527_v8 }
  0xca   : > { %v566_v23 = vmul.f32 %v5452_v3, %v521_v43 }
  0xcb   : > { %v621_v27 = vmul.f32 %v5575_v24, %v5575_v24  ;;  %v703_v39 = vsel %vm434_vm0, %v625_v46, 0.0 }
  0xcc   : > { %v5618_v62 = vsub.f32 %v5403_v38, %v566_v23  ;;  %v5627_v38 = vld [vmem:[%s5305_s16 + $0xd0] sm:$0xff]  ;;  %v1221_v23 = vld [vmem:[%s8373_s5 + $0x18] sm:$0xff] }
  0xcd   : > { %v691_v0 = vsel %vm434_vm0, %v621_v27, 0.0  ;;  %1334 = vmatpush.msra.mxu0 %v1221_v23  ;;  %4595 = vmatpush.msra.mxu1 %v1221_v23 }
  0xce   : > { %v497_v1 = vpop.xlane.xlu1 %496  ;;  %692 = vadd.xlane.f32.xlu2 %v691_v0  ;;  %701 = vadd.xlane.f32.xlu0 %v700_v12  ;;  %v630_v15 = vmul.f32 %v5618_v62, %v5618_v62  ;;  %v513_v12 = vsel %vm434_vm0, %v5627_v38, 0.0  ;;  %v5642_v0 = vsub.f32 %v5426_v47, %v568_v9 }
  0xcf   : > { %v558_v31 = vmul.f32 %v5452_v3, %v497_v1  ;;  %4596 = vmatpush.msra.mxu2 %v1221_v23  ;;  %4597 = vmatpush.msra.mxu3 %v1221_v23 }
  0xd0   : > { %v632_v2 = vmul.f32 %v5642_v0, %v5642_v0  ;;  %1335 = vmatpush.msra.mxu0 %v1220_v59  ;;  %4598 = vmatpush.msra.mxu1 %v1220_v59 }
  0xd1   : > { %v5589_v26 = vsub.f32 %v5433_v50, %v558_v31  ;;  %v530_v14 = vpop.xlane.xlu2 %529  ;;  %v718_v31 = vsel %vm434_vm0, %v630_v15, 0.0  ;;  %4599 = vmatpush.msra.mxu2 %v1220_v59  ;;  %4600 = vmatpush.msra.mxu3 %v1220_v59 }
  0xd2   : > { %v569_v40 = vmul.f32 %v5452_v3, %v530_v14 }
  0xd3   : > { %v622_v37 = vmul.f32 %v5589_v26, %v5589_v26 }
  0xd4   : > { %v5645_v1 = vsub.f32 %v5418_v44, %v569_v40 }
  0xd5   : > { %v694_v49 = vsel %vm434_vm0, %v622_v37, 0.0 }
  0xd6   : > { %695 = vadd.xlane.f32.xlu1 %v694_v49  ;;  %v500_v50 = vpop.xlane.xlu1 %499  ;;  %704 = vadd.xlane.f32.xlu2 %v703_v39  ;;  %v633_v47 = vmul.f32 %v5645_v1, %v5645_v1  ;;  %v724_v39 = vsel %vm434_vm0, %v632_v2, 0.0 }
  0xd7   : > { %v559_v7 = vmul.f32 %v5452_v3, %v500_v50  ;;  %508 = vadd.xlane.f32.xlu0 %v507_v48 }
  0xd8   : > { %v727_v43 = vsel %vm434_vm0, %v633_v47, 0.0 }
  0xd9   : > { %v5611_v32 = vsub.f32 %v5438_v52, %v559_v7  ;;  %v555_v52 = vmul.f32 %v5452_v3, %v488_v21 }
  0xdb   : > { %v623_v60 = vmul.f32 %v5611_v32, %v5611_v32  ;;  %v5635_v27 = vsub.f32 %v5398_v36, %v555_v52  ;;  %v565_v36 = vmul.f32 %v5452_v3, %v518_v19 }
  0xdd   : > { %v697_v28 = vsel %vm434_vm0, %v623_v60, 0.0  ;;  %v619_v46 = vmul.f32 %v5635_v27, %v5635_v27  ;;  %v5657_v44 = vsub.f32 %v5413_v42, %v565_v36  ;;  %v1219_v60 = vld [vmem:[%s8373_s5 + $0x8] sm:$0xff] }
  0xde   : > { %698 = vadd.xlane.f32.xlu1 %v697_v28  ;;  %v485_v4 = vpop.xlane.xlu1 %484  ;;  %511 = vadd.xlane.f32.xlu2 %v510_v61  ;;  %v1218_v61 = vld [vmem:[%s8373_s5] sm:$0xff] }
  0xdf   : > { %v554_v5 = vmul.f32 %v5452_v3, %v485_v4  ;;  %689 = vadd.xlane.f32.xlu0 %v688_v34  ;;  %v685_v37 = vsel %vm434_vm0, %v619_v46, 0.0  ;;  %v629_v49 = vmul.f32 %v5657_v44, %v5657_v44  ;;  %1336 = vmatpush.msra.mxu0 %v1219_v60 }
  0xe0   : > { %4601 = vmatpush.msra.mxu1 %v1219_v60  ;;  %4602 = vmatpush.msra.mxu2 %v1219_v60 }
  0xe1   : > { %v5632_v29 = vsub.f32 %v5443_v54, %v554_v5  ;;  %v715_v42 = vsel %vm434_vm0, %v629_v49, 0.0  ;;  %4603 = vmatpush.msra.mxu3 %v1219_v60  ;;  %1337 = vmatpush.msra.mxu0 %v1218_v61 }
  0xe2   : > { %4604 = vmatpush.msra.mxu1 %v1218_v61  ;;  %4605 = vmatpush.msra.mxu2 %v1218_v61 }
  0xe3   : > { %v618_v21 = vmul.f32 %v5632_v29, %v5632_v29  ;;  %4606 = vmatpush.msra.mxu3 %v1218_v61 }
  0xe5   : > { %v682_v54 = vsel %vm434_vm0, %v618_v21, 0.0 }
  0xe6   : > { %683 = vadd.xlane.f32.xlu1 %v682_v54  ;;  %514 = vadd.xlane.f32.xlu2 %v513_v12  ;;  %v524_v19 = vpop.xlane.xlu1 %523 }
  0xe7   : > { %719 = vadd.xlane.f32.xlu0 %v718_v31  ;;  %v567_v48 = vmul.f32 %v5452_v3, %v524_v19 }
  0xe9   : > { %v5666_v50 = vsub.f32 %v5448_v57, %v567_v48 }
  0xeb   : > { %v631_v7 = vmul.f32 %v5666_v50, %v5666_v50 }
  0xed   : > { %v721_v57 = vsel %vm434_vm0, %v631_v7, 0.0 }
  0xee   : > { %686 = vadd.xlane.f32.xlu1 %v685_v37  ;;  %725 = vadd.xlane.f32.xlu2 %v724_v39 }
  0xef   : > { %728 = vadd.xlane.f32.xlu0 %v727_v43 }
  0xf6   : > { %716 = vadd.xlane.f32.xlu1 %v715_v42 }
  0xfe   : > { %722 = vadd.xlane.f32.xlu1 %v721_v57 }
 0x101   : > { %v636_v34 = vpop.xlane.xlu2 %635  ;;  %v666_v8 = vpop.xlane.xlu0 %665 }
 0x102   : > { %v730_v28 = vmul.f32 %v636_v34, %v5452_v3  ;;  %v740_v14 = vmul.f32 %v666_v8, %v5452_v3 }
 0x104   : > { %v762_v4 = vadd.f32 1e-05, %v730_v28  ;;  %v772_v52 = vadd.f32 1e-05, %v740_v14 }
 0x106   : > { %4812 = vrsqrt.f32 %v762_v4  ;;  %vm800_vm2 = vweird.f32 %v762_v4  ;;  %vm900_vm6 = vweird.f32 %v772_v52 }
 0x107   : > { %4814 = vrsqrt.f32 %v772_v52 }
 0x109   : > { %v639_v5 = vpop.xlane.xlu2 %638  ;;  %v669_v9 = vpop.xlane.xlu0 %668 }
 0x10a   : > { %v731_v40 = vmul.f32 %v639_v5, %v5452_v3  ;;  %v741_v15 = vmul.f32 %v669_v9, %v5452_v3  ;;  %v5704_v9 = vld [vmem:[%s8371_s3] ss:$0 sm:$0xff] }
 0x10c   : > { %v4813_v21 = vpop.eup %4812  ;;  %v763_v12 = vadd.f32 1e-05, %v731_v40  ;;  %v773_v31 = vadd.f32 1e-05, %v741_v15 }
 0x10d   : > { %v4815_v54 = vpop.eup %4814  ;;  %v795_v36 = vmul.f32 %v4813_v21, %v762_v4  ;;  %vm801_vm3 = vweird.f32 %v4813_v21 }
 0x10e   : > { %v895_v46 = vmul.f32 %v4815_v54, %v772_v52  ;;  %4816 = vrsqrt.f32 %v763_v12  ;;  %vm901_vm4 = vweird.f32 %v4815_v54  ;;  %vm5695_vm5 = vmor %vm800_vm2, %vm801_vm3  ;;  %vm810_vm8 = vweird.f32 %v763_v12 }
 0x10f   : > { %v796_v2 = vmul.f32 %v4813_v21, %v795_v36  ;;  %4818 = vrsqrt.f32 %v773_v31  ;;  %vm902_vm7 = vmor %vm900_vm6, %vm901_vm4  ;;  %vm910_vm9 = vweird.f32 %v773_v31 }
 0x110   : > { %v896_v47 = vmul.f32 %v4815_v54, %v895_v46 }
 0x111   : > { %v797_v37 = vmul.f32 0.5, %v796_v2  ;;  %v642_v39 = vpop.xlane.xlu2 %641  ;;  %v672_v43 = vpop.xlane.xlu0 %671 }
 0x112   : > { %v897_v19 = vmul.f32 0.5, %v896_v47  ;;  %v732_v48 = vmul.f32 %v642_v39, %v5452_v3  ;;  %v742_v49 = vmul.f32 %v672_v43, %v5452_v3  ;;  %v5712_v47 = vld [vmem:[%s8372_s4] ss:$0 sm:$0xff] }
 0x113   : > { %v798_v42 = vsub.f32 1.5, %v797_v37 }
 0x114   : > { %v4817_v7 = vpop.eup %4816  ;;  %v898_v23 = vsub.f32 1.5, %v897_v19  ;;  %v5690_v59 = vadd.f32 1e-05, %v732_v48  ;;  %v5692_v57 = vadd.f32 1e-05, %v742_v49 }
 0x115   : > { %v4819_v60 = vpop.eup %4818  ;;  %v799_v61 = vmul.f32 %v4813_v21, %v798_v42  ;;  %v805_v8 = vmul.f32 %v4817_v7, %v763_v12  ;;  %vm811_vm10 = vweird.f32 %v4817_v7 }
 0x116   : > { %v899_v28 = vmul.f32 %v4815_v54, %v898_v23  ;;  %v905_v14 = vmul.f32 %v4819_v60, %v773_v31  ;;  %4820 = vrsqrt.f32 %v5690_v59  ;;  %vm911_vm11 = vweird.f32 %v4819_v60  ;;  %vm5721_vm12 = vmor %vm810_vm8, %vm811_vm10 }
 0x117   : > { %v806_v5 = vmul.f32 %v4817_v7, %v805_v8  ;;  %4822 = vrsqrt.f32 %v5692_v57  ;;  %v803_v40 = vsel %vm5695_vm5, %v4813_v21, %v799_v61  ;;  %vm5731_vm13 = vmor %vm910_vm9, %vm911_vm11  ;;  %vm920_vm14 = vweird.f32 %v5692_v57 }
 0x118   : > { %v906_v4 = vmul.f32 %v4819_v60, %v905_v14  ;;  %v903_v15 = vsel %vm902_vm7, %v4815_v54, %v899_v28  ;;  %v1114_v2 = vmul.f32 %v803_v40, %v5461_v17  ;;  %vm820_vm3 = vweird.f32 %v5690_v59 }
 0x119   : > { %v807_v52 = vmul.f32 0.5, %v806_v5  ;;  %v645_v36 = vpop.xlane.xlu2 %644  ;;  %v675_v46 = vpop.xlane.xlu0 %674  ;;  %v1124_v37 = vmul.f32 %v903_v15, %v5458_v16 }
 0x11a   : > { %v907_v39 = vmul.f32 0.5, %v906_v4  ;;  %v733_v43 = vmul.f32 %v645_v36, %v5452_v3  ;;  %v743_v21 = vmul.f32 %v675_v46, %v5452_v3  ;;  %v1150_v19 = vmul.f32 %v5704_v9, %v1114_v2 }
 0x11b   : > { %v808_v54 = vsub.f32 1.5, %v807_v52  ;;  %v1160_v23 = vmul.f32 %v5704_v9, %v1124_v37 }
 0x11c   : > { %v5718_v48 = vpop.eup %4820  ;;  %v908_v49 = vsub.f32 1.5, %v907_v39  ;;  %v5725_v42 = vadd.f32 1e-05, %v733_v43  ;;  %v5727_v16 = vadd.f32 1e-05, %v743_v21  ;;  %v1186_v28 = vadd.f32 %v5712_v47, %v1150_v19 }
 0x11d   : > { %v4823_v61 = vpop.eup %4822  ;;  %v809_v34 = vmul.f32 %v4817_v7, %v808_v54  ;;  %v815_v12 = vmul.f32 %v5718_v48, %v5690_v59  ;;  %v1196_v40 = vadd.f32 %v5712_v47, %v1160_v23  ;;  %vm821_vm1 = vweird.f32 %v5718_v48 }
 0x11e   : > { %v909_v14 = vmul.f32 %v4819_v60, %v908_v49  ;;  %v915_v5 = vmul.f32 %v4823_v61, %v5692_v57  ;;  %4824 = vrsqrt.f32 %v5725_v42  ;;  %4335 = vmatmul.msk.f32.vlgmr.msra.gmra.mxu0 %vm434_vm0, %v1186_v28  ;;  %vm921_vm15 = vweird.f32 %v4823_v61  ;;  %vm822_vm4 = vmor %vm820_vm3, %vm821_vm1 }
 0x11f   : > { %v816_v4 = vmul.f32 %v5718_v48, %v815_v12  ;;  %4826 = vrsqrt.f32 %v5727_v16  ;;  %v813_v15 = vsel %vm5721_vm12, %v4817_v7, %v809_v34  ;;  %4345 = vmatmul.msk.f32.vlgmr.msra.gmra.mxu1 %vm434_vm0, %v1196_v40  ;;  %vm5764_vm2 = vmor %vm920_vm14, %vm921_vm15  ;;  %vm830_vm5 = vweird.f32 %v5725_v42 }
 0x120   : > { %v916_v31 = vmul.f32 %v4823_v61, %v915_v5  ;;  %v913_v52 = vsel %vm5731_vm13, %v4819_v60, %v909_v14  ;;  %v1115_v37 = vmul.f32 %v813_v15, %v5477_v35  ;;  %vm930_vm6 = vweird.f32 %v5727_v16 }
 0x121   : > { %v817_v36 = vmul.f32 0.5, %v816_v4  ;;  %v648_v46 = vpop.xlane.xlu2 %647  ;;  %v678_v2 = vpop.xlane.xlu0 %677  ;;  %v1125_v39 = vmul.f32 %v913_v52, %v5464_v20 }
 0x122   : > { %v917_v43 = vmul.f32 0.5, %v916_v31  ;;  %v734_v21 = vmul.f32 %v648_v46, %v5452_v3  ;;  %v744_v7 = vmul.f32 %v678_v2, %v5452_v3  ;;  %v1151_v60 = vmul.f32 %v5704_v9, %v1115_v37 }
 0x123   : > { %v818_v54 = vsub.f32 1.5, %v817_v36  ;;  %v1161_v20 = vmul.f32 %v5704_v9, %v1125_v39 }
 0x124   : > { %v4825_v19 = vpop.eup %4824  ;;  %v918_v17 = vsub.f32 1.5, %v917_v43  ;;  %v5756_v49 = vadd.f32 1e-05, %v734_v21  ;;  %v5758_v35 = vadd.f32 1e-05, %v744_v7  ;;  %v1187_v28 = vadd.f32 %v5712_v47, %v1151_v60 }
 0x125   : > { %v4827_v23 = vpop.eup %4826  ;;  %v819_v34 = vmul.f32 %v5718_v48, %v818_v54  ;;  %v825_v12 = vmul.f32 %v4825_v19, %v5725_v42  ;;  %v1197_v59 = vadd.f32 %v5712_v47, %v1161_v20  ;;  %vm831_vm7 = vweird.f32 %v4825_v19 }
 0x126   : > { %v919_v14 = vmul.f32 %v4823_v61, %v918_v17  ;;  %v925_v5 = vmul.f32 %v4827_v23, %v5727_v16  ;;  %4828 = vrsqrt.f32 %v5756_v49  ;;  %4336 = vmatmul.msk.f32.gmra.mxu0 %vm434_vm0, %v1187_v28  ;;  %vm931_vm8 = vweird.f32 %v4827_v23  ;;  %vm5791_vm9 = vmor %vm830_vm5, %vm831_vm7 }
 0x127   : > { %v826_v4 = vmul.f32 %v4825_v19, %v825_v12  ;;  %4830 = vrsqrt.f32 %v5758_v35  ;;  %v823_v31 = vsel %vm822_vm4, %v5718_v48, %v819_v34  ;;  %4346 = vmatmul.msk.f32.gmra.mxu1 %vm434_vm0, %v1197_v59  ;;  %vm5802_vm10 = vmor %vm930_vm6, %vm931_vm8  ;;  %vm840_vm13 = vweird.f32 %v5756_v49 }
 0x128   : > { %v926_v57 = vmul.f32 %v4827_v23, %v925_v5  ;;  %v923_v40 = vsel %vm5764_vm2, %v4823_v61, %v919_v14  ;;  %v1116_v46 = vmul.f32 %v823_v31, %v5483_v41  ;;  %vm940_vm15 = vweird.f32 %v5758_v35 }
 0x129   : > { %v827_v15 = vmul.f32 0.5, %v826_v4  ;;  %v651_v52 = vpop.xlane.xlu2 %650  ;;  %v681_v36 = vpop.xlane.xlu0 %680  ;;  %v1126_v2 = vmul.f32 %v923_v40, %v5490_v55 }
 0x12a   : > { %v927_v37 = vmul.f32 0.5, %v926_v57  ;;  %v735_v39 = vmul.f32 %v651_v52, %v5452_v3  ;;  %v745_v43 = vmul.f32 %v681_v36, %v5452_v3  ;;  %v1152_v21 = vmul.f32 %v5704_v9, %v1116_v46 }
 0x12b   : > { %v828_v48 = vsub.f32 1.5, %v827_v15  ;;  %v1162_v60 = vmul.f32 %v5704_v9, %v1126_v2 }
 0x12c   : > { %v4829_v61 = vpop.eup %4828  ;;  %v928_v41 = vsub.f32 1.5, %v927_v37  ;;  %v5795_v55 = vadd.f32 1e-05, %v735_v39  ;;  %v5797_v54 = vadd.f32 1e-05, %v745_v43  ;;  %v1188_v8 = vadd.f32 %v5712_v47, %v1152_v21 }
 0x12d   : > { %v4831_v17 = vpop.eup %4830  ;;  %v829_v20 = vmul.f32 %v4825_v19, %v828_v48  ;;  %v835_v42 = vmul.f32 %v4829_v61, %v5756_v49  ;;  %v1198_v16 = vadd.f32 %v5712_v47, %v1162_v60  ;;  %vm841_vm11 = vweird.f32 %v4829_v61 }
 0x12e   : > { %v929_v12 = vmul.f32 %v4827_v23, %v928_v41  ;;  %v935_v28 = vmul.f32 %v4831_v17, %v5758_v35  ;;  %4832 = vrsqrt.f32 %v5795_v55  ;;  %4337 = vmatmul.msk.f32.gmra.mxu0 %vm434_vm0, %v1188_v8  ;;  %vm941_vm12 = vweird.f32 %v4831_v17  ;;  %vm5831_vm14 = vmor %vm840_vm13, %vm841_vm11 }
 0x12f   : > { %v836_v14 = vmul.f32 %v4829_v61, %v835_v42  ;;  %4834 = vrsqrt.f32 %v5797_v54  ;;  %v833_v4 = vsel %vm5791_vm9, %v4825_v19, %v829_v20  ;;  %4347 = vmatmul.msk.f32.gmra.mxu1 %vm434_vm0, %v1198_v16  ;;  %vm942_vm1 = vmor %vm940_vm15, %vm941_vm12  ;;  %vm850_vm2 = vweird.f32 %v5795_v55 }
 0x130   : > { %v936_v5 = vmul.f32 %v4831_v17, %v935_v28  ;;  %v933_v57 = vsel %vm5802_vm10, %v4827_v23, %v929_v12  ;;  %v1117_v15 = vmul.f32 %v833_v4, %v5495_v56  ;;  %vm950_vm6 = vweird.f32 %v5797_v54 }
 0x131   : > { %v837_v59 = vmul.f32 0.5, %v836_v14  ;;  %v660_v31 = vpop.xlane.xlu1 %659  ;;  %v654_v40 = vpop.xlane.xlu2 %653  ;;  %v1127_v52 = vmul.f32 %v933_v57, %v5498_v58 }
 0x132   : > { %v937_v36 = vmul.f32 0.5, %v936_v5  ;;  %v738_v46 = vmul.f32 %v660_v31, %v5452_v3  ;;  %v736_v2 = vmul.f32 %v654_v40, %v5452_v3  ;;  %v1153_v19 = vmul.f32 %v5704_v9, %v1117_v15 }
 0x133   : > { %v838_v37 = vsub.f32 1.5, %v837_v59  ;;  %v1163_v56 = vmul.f32 %v5704_v9, %v1127_v52 }
 0x134   : > { %v4833_v23 = vpop.eup %4832  ;;  %v938_v39 = vsub.f32 1.5, %v937_v36  ;;  %v5823_v43 = vadd.f32 1e-05, %v738_v46  ;;  %v5825_v48 = vadd.f32 1e-05, %v736_v2  ;;  %v1189_v41 = vadd.f32 %v5712_v47, %v1153_v19 }
 0x135   : > { %v4835_v58 = vpop.eup %4834  ;;  %v839_v21 = vmul.f32 %v4829_v61, %v838_v37  ;;  %v845_v7 = vmul.f32 %v4833_v23, %v5795_v55  ;;  %v1199_v8 = vadd.f32 %v5712_v47, %v1163_v56  ;;  %vm851_vm3 = vweird.f32 %v4833_v23 }
 0x136   : > { %v939_v20 = vmul.f32 %v4831_v17, %v938_v39  ;;  %v945_v34 = vmul.f32 %v4835_v58, %v5797_v54  ;;  %4836 = vrsqrt.f32 %v5823_v43  ;;  %4338 = vmatmul.msk.f32.gmra.mxu0 %vm434_vm0, %v1189_v41  ;;  %vm951_vm4 = vweird.f32 %v4835_v58  ;;  %vm5861_vm5 = vmor %vm850_vm2, %vm851_vm3 }
 0x137   : > { %v846_v42 = vmul.f32 %v4833_v23, %v845_v7  ;;  %4838 = vrsqrt.f32 %v5825_v48  ;;  %v843_v12 = vsel %vm5831_vm14, %v4829_v61, %v839_v21  ;;  %4348 = vmatmul.msk.f32.gmra.mxu1 %vm434_vm0, %v1199_v8  ;;  %vm952_vm7 = vmor %vm950_vm6, %vm951_vm4  ;;  %vm860_vm8 = vweird.f32 %v5825_v48 }
 0x138   : > { %v946_v49 = vmul.f32 %v4835_v58, %v945_v34  ;;  %v943_v28 = vsel %vm942_vm1, %v4831_v17, %v939_v20  ;;  %v1118_v16 = vmul.f32 %v843_v12, %v5513_v10  ;;  %vm880_vm15 = vweird.f32 %v5823_v43 }
 0x139   : > { %v847_v14 = vmul.f32 0.5, %v846_v42  ;;  %v657_v35 = vpop.xlane.xlu2 %656  ;;  %v663_v5 = vpop.xlane.xlu0 %662  ;;  %v1128_v4 = vmul.f32 %v943_v28, %v5516_v11 }
 0x13a   : > { %v947_v57 = vmul.f32 0.5, %v946_v49  ;;  %v737_v59 = vmul.f32 %v657_v35, %v5452_v3  ;;  %v739_v31 = vmul.f32 %v663_v5, %v5452_v3  ;;  %v1154_v61 = vmul.f32 %v5704_v9, %v1118_v16 }
 0x13b   : > { %v848_v40 = vsub.f32 1.5, %v847_v14  ;;  %v1164_v11 = vmul.f32 %v5704_v9, %v1128_v4 }
 0x13c   : > { %v5851_v17 = vpop.eup %4836  ;;  %v948_v15 = vsub.f32 1.5, %v947_v57  ;;  %v5853_v52 = vadd.f32 1e-05, %v737_v59  ;;  %v5855_v10 = vadd.f32 1e-05, %v739_v31  ;;  %v1190_v37 = vadd.f32 %v5712_v47, %v1154_v61 }
 0x13d   : > { %v4839_v36 = vpop.eup %4838  ;;  %v849_v46 = vmul.f32 %v4833_v23, %v848_v40  ;;  %v875_v56 = vmul.f32 %v5851_v17, %v5823_v43  ;;  %v1200_v21 = vadd.f32 %v5712_v47, %v1164_v11  ;;  %vm881_vm13 = vweird.f32 %v5851_v17 }
 0x13e   : > { %v949_v19 = vmul.f32 %v4835_v58, %v948_v15  ;;  %v855_v39 = vmul.f32 %v4839_v36, %v5825_v48  ;;  %4840 = vrsqrt.f32 %v5853_v52  ;;  %4339 = vmatmul.msk.f32.gmra.mxu0 %vm434_vm0, %v1190_v37  ;;  %vm861_vm9 = vweird.f32 %v4839_v36  ;;  %vm5924_vm1 = vmor %vm880_vm15, %vm881_vm13 }
 0x13f   : > { %4842 = vrsqrt.f32 %v5855_v10  ;;  %v853_v7 = vsel %vm5861_vm5, %v4833_v23, %v849_v46  ;;  %4349 = vmatmul.msk.f32.gmra.mxu1 %vm434_vm0, %v1200_v21  ;;  %v876_v8 = vmul.f32 %v5851_v17, %v875_v56  ;;  %vm862_vm10 = vmor %vm860_vm8, %vm861_vm9  ;;  %vm870_vm12 = vweird.f32 %v5853_v52 }
 0x140   : > { %v856_v55 = vmul.f32 %v4839_v36, %v855_v39  ;;  %v953_v54 = vsel %vm952_vm7, %v4835_v58, %v949_v19  ;;  %v1119_v20 = vmul.f32 %v853_v7, %v5525_v30  ;;  %vm890_vm6 = vweird.f32 %v5855_v10 }
 0x141   : > { %v693_v41 = vpop.xlane.xlu2 %692  ;;  %v702_v60 = vpop.xlane.xlu0 %701  ;;  %v1129_v34 = vmul.f32 %v953_v54, %v5528_v18  ;;  %v877_v16 = vmul.f32 0.5, %v876_v8 }
 0x142   : > { %v857_v42 = vmul.f32 0.5, %v856_v55  ;;  %v749_v49 = vmul.f32 %v693_v41, %v5452_v3  ;;  %v1155_v12 = vmul.f32 %v5704_v9, %v1119_v20  ;;  %v752_v30 = vmul.f32 %v702_v60, %v5452_v3 }
 0x143   : > { %v1165_v18 = vmul.f32 %v5704_v9, %v1129_v34  ;;  %v878_v19 = vsub.f32 1.5, %v877_v16 }
 0x144   : > { %v4841_v23 = vpop.eup %4840  ;;  %v858_v58 = vsub.f32 1.5, %v857_v42  ;;  %v5884_v28 = vadd.f32 1e-05, %v749_v49  ;;  %v1191_v35 = vadd.f32 %v5712_v47, %v1155_v12  ;;  %v5894_v57 = vadd.f32 1e-05, %v752_v30 }
 0x145   : > { %v5888_v14 = vpop.eup %4842  ;;  %v865_v48 = vmul.f32 %v4841_v23, %v5853_v52  ;;  %v1201_v59 = vadd.f32 %v5712_v47, %v1165_v18  ;;  %vm871_vm11 = vweird.f32 %v4841_v23  ;;  %v879_v60 = vmul.f32 %v5851_v17, %v878_v19 }
 0x146   : > { %v859_v5 = vmul.f32 %v4839_v36, %v858_v58  ;;  %4844 = vrsqrt.f32 %v5884_v28  ;;  %4340 = vmatmul.msk.f32.gmra.mxu0 %vm434_vm0, %v1191_v35  ;;  %v885_v61 = vmul.f32 %v5888_v14, %v5855_v10  ;;  %vm872_vm14 = vmor %vm870_vm12, %vm871_vm11  ;;  %vm990_vm3 = vweird.f32 %v5884_v28 }
 0x147   : > { %v866_v4 = vmul.f32 %v4841_v23, %v865_v48  ;;  %4350 = vmatmul.msk.f32.gmra.mxu1 %vm434_vm0, %v1201_v59  ;;  %4846 = vrsqrt.f32 %v5894_v57  ;;  %vm891_vm4 = vweird.f32 %v5888_v14  ;;  %vm1020_vm11 = vweird.f32 %v5894_v57 }
 0x148   : > { %v863_v31 = vsel %vm862_vm10, %v4839_v36, %v859_v5  ;;  %vm5975_vm7 = vmor %vm890_vm6, %vm891_vm4 }
 0x149   : > { %v867_v40 = vmul.f32 0.5, %v866_v4  ;;  %v696_v15 = vpop.xlane.xlu1 %695  ;;  %v705_v11 = vpop.xlane.xlu2 %704  ;;  %v1120_v46 = vmul.f32 %v863_v31, %v5539_v22  ;;  %v886_v22 = vmul.f32 %v5888_v14, %v885_v61 }
 0x14a   : > { %v750_v2 = vmul.f32 %v696_v15, %v5452_v3  ;;  %v509_v37 = vpop.xlane.xlu0 %508  ;;  %v753_v34 = vmul.f32 %v705_v11, %v5452_v3 }
 0x14b   : > { %v868_v39 = vsub.f32 1.5, %v867_v40  ;;  %v562_v56 = vmul.f32 %v5452_v3, %v509_v37  ;;  %v1156_v21 = vmul.f32 %v5704_v9, %v1120_v46 }
 0x14c   : > { %v4845_v55 = vpop.eup %4844  ;;  %v5904_v36 = vadd.f32 1e-05, %v750_v2  ;;  %v5932_v4 = vadd.f32 1e-05, %v753_v34 }
 0x14d   : > { %v869_v7 = vmul.f32 %v4841_v23, %v868_v39  ;;  %v985_v54 = vmul.f32 %v4845_v55, %v5884_v28  ;;  %v5910_v41 = vsub.f32 %v5592_v33, %v562_v56  ;;  %v1192_v42 = vadd.f32 %v5712_v47, %v1156_v21  ;;  %v5922_v18 = vpop.eup %4846 }
 0x14e   : > { %4848 = vrsqrt.f32 %v5904_v36  ;;  %v887_v33 = vmul.f32 0.5, %v886_v22  ;;  %vm991_vm2 = vweird.f32 %v4845_v55  ;;  %vm1000_vm9 = vweird.f32 %v5904_v36 }
 0x14f   : > { %v986_v20 = vmul.f32 %v4845_v55, %v985_v54  ;;  %v626_v49 = vmul.f32 %v5910_v41, %v5910_v41  ;;  %v873_v8 = vsel %vm872_vm14, %v4841_v23, %v869_v7  ;;  %4341 = vmatmul.msk.f32.gmra.mxu0 %vm434_vm0, %v1192_v42  ;;  %vm992_vm5 = vmor %vm990_vm3, %vm991_vm2  ;;  %vm1021_vm12 = vweird.f32 %v5922_v18 }
 0x150   : > { %v1121_v30 = vmul.f32 %v873_v8, %v5553_v6  ;;  %v883_v6 = vsel %vm5924_vm1, %v5851_v17, %v879_v60  ;;  %v888_v15 = vsub.f32 1.5, %v887_v33  ;;  %vm6030_vm14 = vmor %vm1020_vm11, %vm1021_vm12  ;;  %vm1030_vm4 = vweird.f32 %v5932_v4 }
 0x151   : > { %v987_v52 = vmul.f32 0.5, %v986_v20  ;;  %v699_v12 = vpop.xlane.xlu1 %698  ;;  %v512_v58 = vpop.xlane.xlu2 %511  ;;  %v706_v43 = vsel %vm434_vm0, %v626_v49, 0.0  ;;  %v1122_v37 = vmul.f32 %v883_v6, %v5547_v51 }
 0x152   : > { %v751_v35 = vmul.f32 %v699_v12, %v5452_v3  ;;  %v563_v23 = vmul.f32 %v5452_v3, %v512_v58  ;;  %v690_v5 = vpop.xlane.xlu0 %689  ;;  %707 = vadd.xlane.f32.xlu1 %v706_v43  ;;  %v1157_v61 = vmul.f32 %v5704_v9, %v1121_v30  ;;  %v889_v56 = vmul.f32 %v5888_v14, %v888_v15 }
 0x153   : > { %v988_v16 = vsub.f32 1.5, %v987_v52  ;;  %v748_v2 = vmul.f32 %v690_v5, %v5452_v3  ;;  %v1158_v33 = vmul.f32 %v5704_v9, %v1122_v37 }
 0x154   : > { %v5937_v59 = vpop.eup %4848  ;;  %v5939_v31 = vadd.f32 1e-05, %v751_v35  ;;  %v5942_v40 = vsub.f32 %v5606_v53, %v563_v23  ;;  %v1015_v53 = vmul.f32 %v5922_v18, %v5894_v57  ;;  %v1193_v19 = vadd.f32 %v5712_v47, %v1157_v61 }
 0x155   : > { %v989_v11 = vmul.f32 %v4845_v55, %v988_v16  ;;  %v995_v46 = vmul.f32 %v5937_v59, %v5904_v36  ;;  %v5960_v7 = vadd.f32 1e-05, %v748_v2  ;;  %vm1001_vm8 = vweird.f32 %v5937_v59 }
 0x156   : > { %4850 = vrsqrt.f32 %v5939_v31  ;;  %v627_v39 = vmul.f32 %v5942_v40, %v5942_v40  ;;  %v1016_v42 = vmul.f32 %v5922_v18, %v1015_v53  ;;  %v893_v35 = vsel %vm5975_vm7, %v5888_v14, %v889_v56  ;;  %vm1002_vm10 = vmor %vm1000_vm9, %vm1001_vm8 }
 0x157   : > { %v996_v17 = vmul.f32 %v5937_v59, %v995_v46  ;;  %4852 = vrsqrt.f32 %v5932_v4  ;;  %v993_v28 = vsel %vm992_vm5, %v4845_v55, %v989_v11  ;;  %4342 = vmatmul.msk.f32.gmra.mxu0 %vm434_vm0, %v1193_v19  ;;  %v1194_v16 = vadd.f32 %v5712_v47, %v1158_v33 }
 0x158   : > { %v1133_v60 = vmul.f32 %v993_v28, %v5575_v24  ;;  %v709_v34 = vsel %vm434_vm0, %v627_v39, 0.0  ;;  %4854 = vrsqrt.f32 %v5960_v7  ;;  %v1123_v14 = vmul.f32 %v893_v35, %v5559_v13 }
 0x159   : > { %v997_v21 = vmul.f32 0.5, %v996_v17  ;;  %v684_v22 = vpop.xlane.xlu1 %683  ;;  %v515_v54 = vpop.xlane.xlu2 %514  ;;  %710 = vadd.xlane.f32.xlu2 %v709_v34  ;;  %vm1010_vm15 = vweird.f32 %v5939_v31  ;;  %vm980_vm8 = vweird.f32 %v5960_v7 }
 0x15a   : > { %v746_v51 = vmul.f32 %v684_v22, %v5452_v3  ;;  %v564_v20 = vmul.f32 %v5452_v3, %v515_v54  ;;  %v720_v55 = vpop.xlane.xlu0 %719  ;;  %v1169_v58 = vmul.f32 %v5704_v9, %v1133_v60  ;;  %v1159_v39 = vmul.f32 %v5704_v9, %v1123_v14 }
 0x15b   : > { %v998_v49 = vsub.f32 1.5, %v997_v21  ;;  %v758_v8 = vmul.f32 %v720_v55, %v5452_v3 }
 0x15c   : > { %v5971_v24 = vpop.eup %4850  ;;  %v5980_v52 = vadd.f32 1e-05, %v746_v51  ;;  %v5983_v12 = vsub.f32 %v5627_v38, %v564_v20  ;;  %v1017_v38 = vmul.f32 0.5, %v1016_v42  ;;  %v1205_v6 = vadd.f32 %v5712_v47, %v1169_v58 }
 0x15d   : > { %v999_v30 = vmul.f32 %v5937_v59, %v998_v49  ;;  %v1005_v48 = vmul.f32 %v5971_v24, %v5939_v31  ;;  %v5993_v23 = vpop.eup %4852  ;;  %v5998_v5 = vadd.f32 1e-05, %v758_v8  ;;  %vm1011_vm13 = vweird.f32 %v5971_v24 }
 0x15e   : > { %4856 = vrsqrt.f32 %v5980_v52  ;;  %v628_v61 = vmul.f32 %v5983_v12, %v5983_v12  ;;  %v1025_v36 = vmul.f32 %v5993_v23, %v5932_v4  ;;  %4354 = vmatmul.msk.f32.vlgmr.msra.gmra.mxu2 %vm434_vm0, %v1205_v6  ;;  %v6013_v37 = vpop.eup %4854  ;;  %v1018_v13 = vsub.f32 1.5, %v1017_v38  ;;  %vm1012_vm1 = vmor %vm1010_vm15, %vm1011_vm13 }
 0x15f   : > { %v1006_v43 = vmul.f32 %v5971_v24, %v1005_v48  ;;  %v1003_v15 = vsel %vm1002_vm10, %v5937_v59, %v999_v30  ;;  %4343 = vmatmul.msk.f32.gmra.mxu0 %vm434_vm0, %v1194_v16  ;;  %4858 = vrsqrt.f32 %v5998_v5  ;;  %v975_v51 = vmul.f32 %v6013_v37, %v5960_v7 }
 0x160   : > { %v1134_v2 = vmul.f32 %v1003_v15, %v5589_v26  ;;  %v712_v53 = vsel %vm434_vm0, %v628_v61, 0.0  ;;  %v1026_v56 = vmul.f32 %v5993_v23, %v1025_v36  ;;  %v1019_v54 = vmul.f32 %v5922_v18, %v1018_v13 }
 0x161   : > { %v1007_v11 = vmul.f32 0.5, %v1006_v43  ;;  %v687_v46 = vpop.xlane.xlu1 %686  ;;  %713 = vadd.xlane.f32.xlu0 %v712_v53  ;;  %v726_v34 = vpop.xlane.xlu2 %725  ;;  %v1195_v55 = vadd.f32 %v5712_v47, %v1159_v39  ;;  %v976_v30 = vmul.f32 %v6013_v37, %v975_v51  ;;  %vm960_vm3 = vweird.f32 %v5980_v52 }
 0x162   : > { %v747_v17 = vmul.f32 %v687_v46, %v5452_v3  ;;  %v1170_v28 = vmul.f32 %v5704_v9, %v1134_v2  ;;  %v1027_v8 = vmul.f32 0.5, %v1026_v56  ;;  %v760_v35 = vmul.f32 %v726_v34, %v5452_v3  ;;  %v729_v13 = vpop.xlane.xlu0 %728 }
 0x163   : > { %v1008_v59 = vsub.f32 1.5, %v1007_v11  ;;  %v1023_v38 = vsel %vm6030_vm14, %v5922_v18, %v1019_v54  ;;  %vm1031_vm5 = vweird.f32 %v5993_v23  ;;  %v977_v18 = vmul.f32 0.5, %v976_v30 }
 0x164   : > { %v4857_v19 = vpop.eup %4856  ;;  %v6018_v26 = vadd.f32 1e-05, %v747_v17  ;;  %v1206_v42 = vadd.f32 %v5712_v47, %v1170_v28  ;;  %v1028_v61 = vsub.f32 1.5, %v1027_v8  ;;  %v1136_v15 = vmul.f32 %v1023_v38, %v5566_v63  ;;  %vm6068_vm7 = vmor %vm1030_vm4, %vm1031_vm5 }
 0x165   : > { %v1009_v21 = vmul.f32 %v5971_v24, %v1008_v59  ;;  %v955_v22 = vmul.f32 %v4857_v19, %v5980_v52  ;;  %v6039_v49 = vpop.eup %4858  ;;  %vm961_vm2 = vweird.f32 %v4857_v19  ;;  %v6063_v46 = vadd.f32 1e-05, %v760_v35 }
 0x166   : > { %4860 = vrsqrt.f32 %v6018_v26  ;;  %4355 = vmatmul.msk.f32.gmra.mxu2 %vm434_vm0, %v1206_v42  ;;  %vm962_vm6 = vmor %vm960_vm3, %vm961_vm2  ;;  %v1029_v52 = vmul.f32 %v5993_v23, %v1028_v61  ;;  %vm981_vm9 = vweird.f32 %v6013_v37  ;;  %v978_v28 = vsub.f32 1.5, %v977_v18 }
 0x167   : > { %v956_v20 = vmul.f32 %v4857_v19, %v955_v22  ;;  %v1013_v10 = vsel %vm1012_vm1, %v5971_v24, %v1009_v21  ;;  %4344 = vmatmul.msk.f32.gmra.mxu0 %vm434_vm0, %v1195_v55  ;;  %v1075_v24 = vmul.f32 %v6039_v49, %v5998_v5  ;;  %v761_v54 = vmul.f32 %v729_v13, %v5452_v3  ;;  %vm6092_vm13 = vmor %vm980_vm8, %vm981_vm9 }
 0x168   : > { %v1135_v58 = vmul.f32 %v1013_v10, %v5611_v32  ;;  %vm970_vm11 = vweird.f32 %v6018_v26  ;;  %v1033_v34 = vsel %vm6068_vm7, %v5993_v23, %v1029_v52  ;;  %v979_v42 = vmul.f32 %v6013_v37, %v978_v28 }
 0x169   : > { %v957_v57 = vmul.f32 0.5, %v956_v20  ;;  %v717_v33 = vpop.xlane.xlu1 %716  ;;  %v1076_v11 = vmul.f32 %v6039_v49, %v1075_v24  ;;  %v6096_v23 = vadd.f32 1e-05, %v761_v54  ;;  %vm1080_vm14 = vweird.f32 %v5998_v5 }
 0x16a   : > { %v757_v31 = vmul.f32 %v717_v33, %v5452_v3  ;;  %v1171_v6 = vmul.f32 %v5704_v9, %v1135_v58  ;;  %v1137_v58 = vmul.f32 %v1033_v34, %v5578_v25  ;;  %vm1081_vm15 = vweird.f32 %v6039_v49 }
 0x16b   : > { %v958_v48 = vsub.f32 1.5, %v957_v57  ;;  %v1077_v22 = vmul.f32 0.5, %v1076_v11  ;;  %v983_v38 = vsel %vm6092_vm13, %v6013_v37, %v979_v42  ;;  %vm6114_vm2 = vmor %vm1080_vm14, %vm1081_vm15  ;;  %vm1100_vm8 = vweird.f32 %v6063_v46 }
 0x16c   : > { %v4861_v43 = vpop.eup %4860  ;;  %v6053_v16 = vadd.f32 1e-05, %v757_v31  ;;  %v1207_v2 = vadd.f32 %v5712_v47, %v1171_v6  ;;  %v1173_v5 = vmul.f32 %v5704_v9, %v1137_v58 }
 0x16d   : > { %v959_v32 = vmul.f32 %v4857_v19, %v958_v48  ;;  %v965_v14 = vmul.f32 %v4861_v43, %v6018_v26  ;;  %vm971_vm10 = vweird.f32 %v4861_v43  ;;  %v1078_v10 = vsub.f32 1.5, %v1077_v22 }
 0x16e   : > { %4862 = vrsqrt.f32 %v6053_v16  ;;  %4356 = vmatmul.msk.f32.gmra.mxu2 %vm434_vm0, %v1207_v2  ;;  %vm972_vm12 = vmor %vm970_vm11, %vm971_vm10  ;;  %vm1070_vm3 = vweird.f32 %v6053_v16  ;;  %v1209_v18 = vadd.f32 %v5712_v47, %v1173_v5  ;;  %vm1110_vm11 = vweird.f32 %v6096_v23 }
 0x16f   : > { %v966_v36 = vmul.f32 %v4861_v43, %v965_v14  ;;  %v963_v53 = vsel %vm962_vm6, %v4857_v19, %v959_v32  ;;  %v1172_v19 = vmul.f32 %v5704_v9, %v1136_v15  ;;  %4864 = vrsqrt.f32 %v6063_v46 }
 0x170   : > { %v1130_v63 = vmul.f32 %v963_v53, %v5632_v29  ;;  %v1079_v25 = vmul.f32 %v6039_v49, %v1078_v10  ;;  %v1132_v32 = vmul.f32 %v983_v38, %v5598_v45 }
 0x171   : > { %v967_v17 = vmul.f32 0.5, %v966_v36  ;;  %v723_v59 = vpop.xlane.xlu1 %722  ;;  %v1208_v57 = vadd.f32 %v5712_v47, %v1172_v19 }
 0x172   : > { %v759_v39 = vmul.f32 %v723_v59, %v5452_v3  ;;  %v1166_v21 = vmul.f32 %v5704_v9, %v1130_v63  ;;  %v1083_v53 = vsel %vm6114_vm2, %v6039_v49, %v1079_v25  ;;  %v1168_v45 = vmul.f32 %v5704_v9, %v1132_v32 }
 0x173   : > { %v968_v56 = vsub.f32 1.5, %v967_v17 }
 0x174   : > { %v4863_v29 = vpop.eup %4862  ;;  %v791_v60 = vadd.f32 1e-05, %v759_v39  ;;  %v1202_v55 = vadd.f32 %v5712_v47, %v1166_v21  ;;  %v1204_v49 = vadd.f32 %v5712_v47, %v1168_v45 }
 0x175   : > { %v969_v51 = vmul.f32 %v4861_v43, %v968_v56  ;;  %v1065_v20 = vmul.f32 %v4863_v29, %v6053_v16  ;;  %v6101_v48 = vpop.eup %4864  ;;  %vm1071_vm1 = vweird.f32 %v4863_v29 }
 0x176   : > { %4866 = vrsqrt.f32 %v791_v60  ;;  %4351 = vmatmul.msk.f32.gmra.mxu1 %vm434_vm0, %v1202_v55  ;;  %4357 = vmatmul.msk.f32.gmra.mxu2 %vm434_vm0, %v1208_v57  ;;  %v1095_v6 = vmul.f32 %v6101_v48, %v6063_v46  ;;  %vm1072_vm4 = vmor %vm1070_vm3, %vm1071_vm1  ;;  %vm1090_vm5 = vweird.f32 %v791_v60  ;;  %vm1101_vm9 = vweird.f32 %v6101_v48  ;;  %v6155_v55 = vld [vmem:[%s8374_s6] ss:$0 sm:$0xff] }
 0x177   : > { %v1066_v8 = vmul.f32 %v4863_v29, %v1065_v20  ;;  %v973_v33 = vsel %vm972_vm12, %v4861_v43, %v969_v51  ;;  %4868 = vrsqrt.f32 %v6096_v23  ;;  %vm1102_vm10 = vmor %vm1100_vm8, %vm1101_vm9  ;;  %vm1507_vm8 = vcmask 130048  }
 0x178   : > { %v1131_v31 = vmul.f32 %v973_v33, %v5635_v27  ;;  %v1096_v11 = vmul.f32 %v6101_v48, %v1095_v6  ;;  %vm1904_vm9 = vcmask 523264  }
 0x179   : > { %v1067_v30 = vmul.f32 0.5, %v1066_v8 }
 0x17a   : > { %v1167_v7 = vmul.f32 %v5704_v9, %v1131_v31  ;;  %v1097_v59 = vmul.f32 0.5, %v1096_v11 }
 0x17b   : > { %v1068_v35 = vsub.f32 1.5, %v1067_v30 }
 0x17c   : > { %v4867_v27 = vpop.eup %4866  ;;  %v1203_v43 = vadd.f32 %v5712_v47, %v1167_v7  ;;  %v1098_v19 = vsub.f32 1.5, %v1097_v59 }
 0x17d   : > { %v1069_v61 = vmul.f32 %v4863_v29, %v1068_v35  ;;  %v1085_v37 = vmul.f32 %v4867_v27, %v791_v60  ;;  %v4869_v16 = vpop.eup %4868  ;;  %vm1091_vm6 = vweird.f32 %v4867_v27 }
 0x17e   : > { %4352 = vmatmul.msk.f32.gmra.mxu1 %vm434_vm0, %v1203_v43  ;;  %4358 = vmatmul.msk.f32.gmra.mxu2 %vm434_vm0, %v1209_v18  ;;  %v1105_v63 = vmul.f32 %v4869_v16, %v6096_v23  ;;  %vm1092_vm7 = vmor %vm1090_vm5, %vm1091_vm6  ;;  %vm1111_vm12 = vweird.f32 %v4869_v16 }
 0x17f   : > { %v1086_v14 = vmul.f32 %v4867_v27, %v1085_v37  ;;  %v1073_v15 = vsel %vm1072_vm4, %v4863_v29, %v1069_v61  ;;  %v1099_v29 = vmul.f32 %v6101_v48, %v1098_v19  ;;  %vm1112_vm13 = vmor %vm1110_vm11, %vm1111_vm12 }
 0x180   : > { %v1141_v36 = vmul.f32 %v1073_v15, %v5657_v44  ;;  %v1142_v44 = vmul.f32 %v1083_v53, %v5618_v62  ;;  %v1106_v28 = vmul.f32 %v4869_v16, %v1105_v63 }
 0x181   : > { %v1087_v2 = vmul.f32 0.5, %v1086_v14  ;;  %v1103_v51 = vsel %vm1102_vm10, %v6101_v48, %v1099_v29 }
 0x182   : > { %v1177_v52 = vmul.f32 %v5704_v9, %v1141_v36  ;;  %v1178_v39 = vmul.f32 %v5704_v9, %v1142_v44  ;;  %v1107_v22 = vmul.f32 0.5, %v1106_v28  ;;  %v1144_v20 = vmul.f32 %v1103_v51, %v5642_v0 }
 0x183   : > { %v1088_v17 = vsub.f32 1.5, %v1087_v2 }
 0x184   : > { %v1213_v13 = vadd.f32 %v5712_v47, %v1177_v52  ;;  %v1214_v62 = vadd.f32 %v5712_v47, %v1178_v39  ;;  %v1108_v60 = vsub.f32 1.5, %v1107_v22 }
 0x185   : > { %v1089_v4 = vmul.f32 %v4867_v27, %v1088_v17  ;;  %v5133_v17 = vld [vmem:[%s8372_s4] ss:$0 sm:$0xff] }
 0x186   : > { %4362 = vmatmul.msk.f32.vlgmr.msra.gmra.mxu3 %vm434_vm0, %v1213_v13  ;;  %4353 = vmatmul.msk.f32.gmra.mxu1 %vm434_vm0, %v1204_v49  ;;  %v1109_v34 = vmul.f32 %v4869_v16, %v1108_v60 }
 0x187   : > { %v1093_v56 = vsel %vm1092_vm7, %v4867_v27, %v1089_v4 }
 0x188   : > { %v1143_v21 = vmul.f32 %v1093_v56, %v5666_v50  ;;  %v1180_v50 = vmul.f32 %v5704_v9, %v1144_v20  ;;  %v1113_v42 = vsel %vm1112_vm13, %v4869_v16, %v1109_v34  ;;  %v5132_v16 = vld [vmem:[%s8371_s3] ss:$0 sm:$0xff] }
 0x189   : > { %v1145_v33 = vmul.f32 %v1113_v42, %v5645_v1 }
 0x18a   : > { %v1179_v54 = vmul.f32 %v5704_v9, %v1143_v21  ;;  %v1216_v57 = vadd.f32 %v5712_v47, %v1180_v50 }
 0x18b   : > { %v1181_v23 = vmul.f32 %v5704_v9, %v1145_v33 }
 0x18c   : > { %v1215_v46 = vadd.f32 %v5712_v47, %v1179_v54 }
 0x18d   : > { %v1217_v1 = vadd.f32 %v5712_v47, %v1181_v23 }
 0x18e   : > { %4363 = vmatmul.msk.f32.gmra.mxu3 %vm434_vm0, %v1214_v62 }
 0x196   : > { %4364 = vmatmul.msk.f32.gmra.mxu3 %vm434_vm0, %v1215_v46 }
 0x19b   : > { %v1339_v8 = vpop.f32.mrf.mxu0 }
 0x19c   : > { %v6160_v26 = vadd.f32 %v6155_v55, %v1339_v8  ;;  %v1369_v0 = vpop.f32.mrf.mxu1 }
 0x19d   : > { %v6168_v10 = vadd.f32 %v6155_v55, %v1369_v0 }
 0x19e   : > { %8444 = vst [vmem:[#allocation2_spill] sm:$0xff] %v6160_v26  ;;  %4365 = vmatmul.msk.f32.gmra.mxu3 %vm434_vm0, %v1216_v57  ;;  %1491 = vrot.lane.b32.xlu2 %v6160_v26, %s5223_s15 }
 0x19f   : > { %2613 = vrot.lane.b32.xlu1 %v6160_v26, %s5224_s17  ;;  %1593 = vrot.lane.b32.xlu0 %v6168_v10, %s5223_s15 }
 0x1a3   : > { %v1342_v31 = vpop.f32.mrf.mxu0 }
 0x1a4   : > { %v6178_v58 = vadd.f32 %v6155_v55, %v1342_v31  ;;  %v1372_v28 = vpop.f32.mrf.mxu1 }
 0x1a5   : > { %v6207_v29 = vadd.f32 %v6155_v55, %v1372_v28 }
 0x1a6   : > { %4366 = vmatmul.msk.f32.gmra.mxu3 %vm434_vm0, %v1217_v1  ;;  %8445 = vst [vmem:[#allocation3_spill] sm:$0xff] %v6178_v58 }
 0x1a7   : > { %2629 = vrot.lane.b32.xlu0 %v6160_v26, %s5225_s18  ;;  %v6213_v51 = vpack.i.bf16 %v6168_v10, %v6207_v29 }
 0x1a9   : > { %8446 = vst [vmem:[#allocation4_spill] sm:$0xff] %v6213_v51 }
 0x1ab   : > { %v1345_v30 = vpop.f32.mrf.mxu0 }
 0x1ac   : > { %v6183_v9 = vadd.f32 %v6155_v55, %v1345_v30  ;;  %v1375_v33 = vpop.f32.mrf.mxu1 }
 0x1ad   : > { %v6239_v1 = vadd.f32 %v6155_v55, %v1375_v33 }
 0x1af   : > { %2615 = vrot.lane.b32.xlu0 %v6178_v58, %s5224_s17 }
 0x1b4   : > { %v1378_v31 = vpop.f32.mrf.mxu1 }
 0x1b5   : > { %v6248_v30 = vadd.f32 %v6155_v55, %v1378_v31 }
 0x1b7   : > { %1495 = vrot.lane.b32.xlu0 %v6183_v9, %s5223_s15  ;;  %8450 = vst [vmem:[#allocation8_spill] sm:$0xff] %v6248_v30 }
 0x1bf   : > { %2633 = vrot.lane.b32.xlu0 %v6183_v9, %s5225_s18 }
 0x1c5   : > { %v708_v47 = vpop.xlane.xlu1 %707 }
 0x1c6   : > { %v754_v48 = vmul.f32 %v708_v47, %v5452_v3  ;;  %v1348_v47 = vpop.f32.mrf.mxu0 }
 0x1c8   : > { %v786_v7 = vadd.f32 1e-05, %v754_v48 }
 0x1ca   : > { %4870 = vrsqrt.f32 %v786_v7  ;;  %vm1040_vm14 = vweird.f32 %v786_v7 }
 0x1cc   : > { %v711_v35 = vpop.xlane.xlu2 %710 }
 0x1cd   : > { %v755_v38 = vmul.f32 %v711_v35, %v5452_v3 }
 0x1cf   : > { %v787_v25 = vadd.f32 1e-05, %v755_v38  ;;  %v1381_v38 = vpop.f32.mrf.mxu1 }
 0x1d0   : > { %v4871_v27 = vpop.eup %4870 }
 0x1d1   : > { %v1035_v43 = vmul.f32 %v4871_v27, %v786_v7  ;;  %4872 = vrsqrt.f32 %v787_v25  ;;  %vm1041_vm15 = vweird.f32 %v4871_v27  ;;  %vm1050_vm2 = vweird.f32 %v787_v25 }
 0x1d2   : > { %vm1042_vm1 = vmor %vm1040_vm14, %vm1041_vm15  ;;  %v6257_v7 = vadd.f32 %v6155_v55, %v1348_v47 }
 0x1d3   : > { %v1036_v5 = vmul.f32 %v4871_v27, %v1035_v43 }
 0x1d4   : > { %v714_v6 = vpop.xlane.xlu0 %713 }
 0x1d5   : > { %v1037_v24 = vmul.f32 0.5, %v1036_v5  ;;  %v756_v61 = vmul.f32 %v714_v6, %v5452_v3 }
 0x1d7   : > { %v1038_v37 = vsub.f32 1.5, %v1037_v24  ;;  %v4873_v32 = vpop.eup %4872  ;;  %v788_v14 = vadd.f32 1e-05, %v756_v61  ;;  %v1351_v24 = vpop.f32.mrf.mxu0 }
 0x1d8   : > { %v1045_v18 = vmul.f32 %v4873_v32, %v787_v25  ;;  %vm1051_vm3 = vweird.f32 %v4873_v32 }
 0x1d9   : > { %v1039_v15 = vmul.f32 %v4871_v27, %v1038_v37  ;;  %4874 = vrsqrt.f32 %v788_v14  ;;  %vm1052_vm4 = vmor %vm1050_vm2, %vm1051_vm3  ;;  %vm1060_vm5 = vweird.f32 %v788_v14  ;;  %v6293_v37 = vpack.i.bf16 %v6239_v1, %v6248_v30 }
 0x1da   : > { %v1046_v36 = vmul.f32 %v4873_v32, %v1045_v18  ;;  %v1384_v18 = vpop.f32.mrf.mxu1 }
 0x1db   : > { %v1043_v11 = vsel %vm1042_vm1, %v4871_v27, %v1039_v15  ;;  %v6269_v27 = vadd.f32 %v6155_v55, %v1381_v38  ;;  %8456 = vst [vmem:[#allocation14_spill] sm:$0xff] %v6293_v37 }
 0x1dc   : > { %v1138_v2 = vmul.f32 %v1043_v11, %v5910_v41  ;;  %v1047_v53 = vmul.f32 0.5, %v1046_v36  ;;  %v6310_v36 = vpack.i.bf16 %v6183_v9, %v6257_v7  ;;  %v6319_v11 = vadd.f32 %v6155_v55, %v1384_v18 }
 0x1dd   : > { %8451 = vst [vmem:[#allocation9_spill] sm:$0xff] %v6269_v27 }
 0x1de   : > { %v1174_v45 = vmul.f32 %v5132_v16, %v1138_v2  ;;  %v1048_v3 = vsub.f32 1.5, %v1047_v53  ;;  %8458 = vst [vmem:[#allocation16_spill] sm:$0xff] %v6310_v36  ;;  %v6323_v2 = vpack.i.bf16 %v6269_v27, %v6319_v11  ;;  %v6332_v53 = vadd.f32 %v6155_v55, %v1351_v24 }
 0x1df   : > { %v4875_v52 = vpop.eup %4874  ;;  %8459 = vst [vmem:[#allocation17_spill] sm:$0xff] %v6319_v11 }
 0x1e0   : > { %v1210_v13 = vadd.f32 %v5133_v17, %v1174_v45  ;;  %v1049_v44 = vmul.f32 %v4873_v32, %v1048_v3  ;;  %v1055_v59 = vmul.f32 %v4875_v52, %v788_v14  ;;  %vm1061_vm6 = vweird.f32 %v4875_v52  ;;  %v1354_v14 = vpop.f32.mrf.mxu0  ;;  %8460 = vst [vmem:[#allocation18_spill] sm:$0xff] %v6323_v2 }
 0x1e1   : > { %v1396_v4 = vpop.f32.mrf.mxu2  ;;  %vm1062_vm7 = vmor %vm1060_vm5, %vm1061_vm6  ;;  %v6306_v15 = vadd.f32 %v6155_v55, %v1354_v14 }
 0x1e2   : > { %4359 = vmatmul.msk.f32.gmra.mxu2 %vm434_vm0, %v1210_v13  ;;  %v1056_v41 = vmul.f32 %v4875_v52, %v1055_v59  ;;  %v1053_v63 = vsel %vm1052_vm4, %v4873_v32, %v1049_v44  ;;  %v6202_v19 = vadd.f32 %v6155_v55, %v1396_v4 }
 0x1e3   : > { %v1139_v49 = vmul.f32 %v1053_v63, %v5942_v40  ;;  %v6336_v45 = vpack.i.bf16 %v6332_v53, %v6306_v15 }
 0x1e4   : > { %v1057_v39 = vmul.f32 0.5, %v1056_v41  ;;  %1692 = vrot.lane.b32.xlu2 %v6202_v19, %s5223_s15 }
 0x1e5   : > { %v1175_v56 = vmul.f32 %v5132_v16, %v1139_v49  ;;  %8461 = vst [vmem:[#allocation19_spill] sm:$0xff] %v6336_v45 }
 0x1e6   : > { %v1058_v62 = vsub.f32 1.5, %v1057_v39 }
 0x1e7   : > { %v1211_v21 = vadd.f32 %v5133_v17, %v1175_v56 }
 0x1e8   : > { %v1059_v22 = vmul.f32 %v4875_v52, %v1058_v62  ;;  %v1357_v59 = vpop.f32.mrf.mxu0 }
 0x1e9   : > { %v1399_v54 = vpop.f32.mrf.mxu2  ;;  %v6413_v47 = vadd.f32 %v6155_v55, %v1357_v59 }
 0x1ea   : > { %4360 = vmatmul.msk.f32.gmra.mxu2 %vm434_vm0, %v1211_v21  ;;  %v1063_v40 = vsel %vm1062_vm7, %v4875_v52, %v1059_v22  ;;  %v6260_v35 = vadd.f32 %v6155_v55, %v1399_v54 }
 0x1eb   : > { %v1140_v60 = vmul.f32 %v1063_v40, %v5983_v12 }
 0x1ec   : > { %4647 = vrot.lane.b32.xlu2 %v6213_v51, %s5226_s23 }
 0x1ed   : > { %v1176_v46 = vmul.f32 %v5132_v16, %v1140_v60 }
 0x1ef   : > { %v1212_v20 = vadd.f32 %v5133_v17, %v1176_v46 }
 0x1f0   : > { %v1360_v56 = vpop.f32.mrf.mxu0 }
 0x1f1   : > { %v1402_v34 = vpop.f32.mrf.mxu2  ;;  %v6374_v62 = vadd.f32 %v6155_v55, %v1360_v56 }
 0x1f2   : > { %4361 = vmatmul.msk.f32.gmra.mxu2 %vm434_vm0, %v1212_v20  ;;  %v6219_v50 = vadd.f32 %v6155_v55, %v1402_v34 }
 0x1f3   : > { %v1387_v63 = vpop.f32.mrf.mxu1 }
 0x1f4   : > { %1696 = vrot.lane.b32.xlu0 %v6219_v50, %s5223_s15  ;;  %v6277_v5 = vpack.i.bf16 %v6260_v35, %v6219_v50  ;;  %v6363_v49 = vadd.f32 %v6155_v55, %v1387_v63 }
 0x1f6   : > { %8453 = vst [vmem:[#allocation11_spill] sm:$0xff] %v6277_v5 }
 0x1f8   : > { %v6341_v52 = vpop.permute.xlu2 %1491 }
 0x1f9   : > { %v1405_v16 = vpop.f32.mrf.mxu2 }
 0x1fa   : > { %v6339_v3 = vadd.f32 %v6155_v55, %v1405_v16 }
 0x1fb   : > { %v1390_v40 = vpop.f32.mrf.mxu1 }
 0x1fc   : > { %v4671_v13 = vpack.i.bf16 %v6339_v3, %v6160_v26  ;;  %v6388_v54 = vadd.f32 %v6155_v55, %v1390_v40 }
 0x1fe   : > { %v6396_v34 = vpack.i.bf16 %v6363_v49, %v6388_v54 }
 0x200   : > { %8464 = vst [vmem:[#allocation22_spill] sm:$0xff] %v6396_v34 }
 0x201   : > { %v1408_v41 = vpop.f32.mrf.mxu2 }
 0x202   : > { %v6377_v21 = vadd.f32 %v6155_v55, %v1408_v41 }
 0x203   : > { %v1393_v16 = vpop.f32.mrf.mxu1 }
 0x204   : > { %v4676_v20 = vpack.i.bf16 %v6377_v21, %v6178_v58  ;;  %v6444_v59 = vadd.f32 %v6155_v55, %v1393_v16 }
 0x209   : > { %v1420_v12 = vpop.f32.mrf.mxu3 }
 0x20a   : > { %v6224_v42 = vadd.f32 %v6155_v55, %v1420_v12 }
 0x20c   : > { %8447 = vst [vmem:[#allocation5_spill] sm:$0xff] %v6224_v42  ;;  %1789 = vrot.lane.b32.xlu1 %v6224_v42, %s5223_s15 }
 0x211   : > { %v1423_v8 = vpop.f32.mrf.mxu3  ;;  %v6349_v17 = vpop.permute.xlu0 %1593 }
 0x212   : > { %v6229_v57 = vadd.f32 %v6155_v55, %v1423_v8  ;;  %v6405_v8 = vpop.permute.xlu1 %2613 }
 0x213   : > { %8465 = vst [vmem:[#allocation23_spill] sm:$0xff] %v6405_v8 }
 0x214   : > { %8448 = vst [vmem:[#allocation6_spill] sm:$0xff] %v6229_v57  ;;  %1595 = vrot.lane.b32.xlu1 %v6207_v29, %s5223_s15  ;;  %1791 = vrot.lane.b32.xlu2 %v6229_v57, %s5223_s15 }
 0x219   : > { %v1426_v0 = vpop.f32.mrf.mxu3  ;;  %v6360_v4 = vpop.permute.xlu0 %2629 }
 0x21a   : > { %v6236_v23 = vadd.f32 %v6155_v55, %v1426_v0  ;;  %8462 = vst [vmem:[#allocation20_spill] sm:$0xff] %v6360_v4 }
 0x21c   : > { %8449 = vst [vmem:[#allocation7_spill] sm:$0xff] %v6236_v23  ;;  %1493 = vrot.lane.b32.xlu1 %v6178_v58, %s5223_s15  ;;  %1793 = vrot.lane.b32.xlu0 %v6236_v23, %s5223_s15  ;;  %v6273_v25 = vpack.i.bf16 %v6229_v57, %v6236_v23 }
 0x21d   : > { %1597 = vrot.lane.b32.xlu2 %v6239_v1, %s5223_s15 }
 0x21e   : > { %8452 = vst [vmem:[#allocation10_spill] sm:$0xff] %v6273_v25 }
 0x221   : > { %v1429_v48 = vpop.f32.mrf.mxu3  ;;  %v6379_v22 = vpop.permute.xlu0 %2615 }
 0x222   : > { %v6289_v61 = vadd.f32 %v6155_v55, %v1429_v48  ;;  %8463 = vst [vmem:[#allocation21_spill] sm:$0xff] %v6379_v22 }
 0x224   : > { %2631 = vrot.lane.b32.xlu1 %v6178_v58, %s5225_s18  ;;  %1599 = vrot.lane.b32.xlu0 %v6248_v30, %s5223_s15  ;;  %8455 = vst [vmem:[#allocation13_spill] sm:$0xff] %v6289_v61 }
 0x225   : > { %2617 = vrot.lane.b32.xlu2 %v6183_v9, %s5224_s17 }
 0x229   : > { %v1432_v43 = vpop.f32.mrf.mxu3  ;;  %v6398_v12 = vpop.permute.xlu0 %1495 }
 0x22a   : > { %v6286_v6 = vadd.f32 %v6155_v55, %v1432_v43 }
 0x22c   : > { %1694 = vrot.lane.b32.xlu1 %v6260_v35, %s5223_s15  ;;  %2635 = vrot.lane.b32.xlu0 %v6257_v7, %s5225_s18  ;;  %8454 = vst [vmem:[#allocation12_spill] sm:$0xff] %v6286_v6  ;;  %v6297_v32 = vpack.i.bf16 %v6289_v61, %v6286_v6 }
 0x22d   : > { %2742 = vrot.lane.b32.xlu2 %v6239_v1, %s5225_s18 }
 0x22e   : > { %8457 = vst [vmem:[#allocation15_spill] sm:$0xff] %v6297_v32 }
 0x231   : > { %v6421_v48 = vpop.permute.xlu0 %2633 }
 0x232   : > { %8467 = vst [vmem:[#allocation25_spill] sm:$0xff] %v6421_v48 }
 0x234   : > { %2746 = vrot.lane.b32.xlu0 %v6269_v27, %s5225_s18  ;;  %4657 = vrot.lane.b32.xlu1 %v6273_v25, %s5226_s23 }
 0x235   : > { %4652 = vrot.lane.b32.xlu2 %v6277_v5, %s5226_s23 }
 0x23c   : > { %4662 = vrot.lane.b32.xlu1 %v6293_v37, %s5226_s23  ;;  %4682 = vrot.lane.b32.xlu0 %v6297_v32, %s5226_s23 }
 0x23d   : > { %1497 = vrot.lane.b32.xlu2 %v6257_v7, %s5223_s15 }
 0x23e   : > { %v6353_v44 = vpop.permute.xlu2 %1692 }
 0x244   : > { %2744 = vrot.lane.b32.xlu1 %v6248_v30, %s5225_s18  ;;  %1501 = vrot.lane.b32.xlu0 %v6306_v15, %s5223_s15 }
 0x245   : > { %4667 = vrot.lane.b32.xlu2 %v6310_v36, %s5226_s23 }
 0x246   : > { %v6371_v39 = vpop.permute.xlu2 %4647 }
 0x24c   : > { %1795 = vrot.lane.b32.xlu1 %v6289_v61, %s5223_s15  ;;  %4687 = vrot.lane.b32.xlu0 %v6323_v2, %s5226_s23 }
 0x24d   : > { %2619 = vrot.lane.b32.xlu2 %v6257_v7, %s5224_s17 }
 0x254   : > { %1499 = vrot.lane.b32.xlu1 %v6332_v53, %s5223_s15  ;;  %4692 = vrot.lane.b32.xlu0 %v6336_v45, %s5226_s23  ;;  %v6516_v45 = vpack.i.bf16 %v6444_v59, %v6202_v19 }
 0x255   : > { %1698 = vrot.lane.b32.xlu2 %v6339_v3, %s5223_s15 }
 0x256   : > { %8476 = vst [vmem:[#allocation34_spill] sm:$0xff] %v6516_v45 }
 0x25c   : > { %2637 = vrot.lane.b32.xlu1 %v6332_v53, %s5225_s18  ;;  %2748 = vrot.lane.b32.xlu0 %v6319_v11, %s5225_s18 }
 0x25d   : > { %4672 = vrot.lane.b32.xlu2 %v4671_v13, %s5226_s23 }
 0x264   : > { %2621 = vrot.lane.b32.xlu1 %v6332_v53, %s5224_s17  ;;  %1686 = vrot.lane.b32.xlu0 %v6363_v49, %s5223_s15 }
 0x265   : > { %1601 = vrot.lane.b32.xlu2 %v6269_v27, %s5223_s15  ;;  %v1411_v28 = vpop.f32.mrf.mxu2 }
 0x266   : > { %v6437_v14 = vpop.permute.xlu0 %1696  ;;  %v6447_v41 = vadd.f32 %v6155_v55, %v1411_v28 }
 0x268   : > { %8471 = vst [vmem:[#allocation29_spill] sm:$0xff] %v6447_v41 }
 0x26c   : > { %1700 = vrot.lane.b32.xlu1 %v6377_v21, %s5223_s15  ;;  %1505 = vrot.lane.b32.xlu0 %v6374_v62, %s5223_s15 }
 0x26d   : > { %1797 = vrot.lane.b32.xlu2 %v6286_v6, %s5223_s15  ;;  %v1414_v60 = vpop.f32.mrf.mxu2 }
 0x26e   : > { %v6390_v46 = vpop.permute.xlu2 %1791  ;;  %v6450_v63 = vadd.f32 %v6155_v55, %v1414_v60 }
 0x270   : > { %8472 = vst [vmem:[#allocation30_spill] sm:$0xff] %v6450_v63  ;;  %v6538_v23 = vpack.i.bf16 %v6447_v41, %v6450_v63 }
 0x272   : > { %8479 = vst [vmem:[#allocation37_spill] sm:$0xff] %v6538_v23 }
 0x274   : > { %4677 = vrot.lane.b32.xlu1 %v4676_v20, %s5226_s23  ;;  %4702 = vrot.lane.b32.xlu0 %v6396_v34, %s5226_s23  ;;  %v1363_v20 = vpop.f32.mrf.mxu0  ;;  %v6491_v34 = vpack.i.bf16 %v6413_v47, %v6374_v62 }
 0x275   : > { %2639 = vrot.lane.b32.xlu2 %v6306_v15, %s5225_s18  ;;  %v1417_v33 = vpop.f32.mrf.mxu2  ;;  %v6465_v28 = vadd.f32 %v6155_v55, %v1363_v20 }
 0x276   : > { %v6410_v31 = vadd.f32 %v6155_v55, %v1417_v33  ;;  %8474 = vst [vmem:[#allocation32_spill] sm:$0xff] %v6491_v34 }
 0x277   : > { %v6407_v0 = vpop.permute.xlu2 %1597 }
 0x278   : > { %8466 = vst [vmem:[#allocation24_spill] sm:$0xff] %v6410_v31  ;;  %v6429_v24 = vpack.i.bf16 %v6410_v31, %v6224_v42 }
 0x27a   : > { %8469 = vst [vmem:[#allocation27_spill] sm:$0xff] %v6429_v24 }
 0x27c   : > { %1603 = vrot.lane.b32.xlu1 %v6319_v11, %s5223_s15  ;;  %1787 = vrot.lane.b32.xlu0 %v6410_v31, %s5223_s15  ;;  %v1366_v5 = vpop.f32.mrf.mxu0 }
 0x27d   : > { %1503 = vrot.lane.b32.xlu2 %v6413_v47, %s5223_s15  ;;  %v6494_v37 = vadd.f32 %v6155_v55, %v1366_v5 }
 0x27e   : > { %v6423_v38 = vpop.permute.xlu1 %1789 }
 0x27f   : > { %v6425_v43 = vpop.permute.xlu2 %2617 }
 0x280   : > { %8468 = vst [vmem:[#allocation26_spill] sm:$0xff] %v6425_v43 }
 0x284   : > { %2623 = vrot.lane.b32.xlu1 %v6306_v15, %s5224_s17  ;;  %4707 = vrot.lane.b32.xlu0 %v6429_v24, %s5226_s23 }
 0x285   : > { %2625 = vrot.lane.b32.xlu2 %v6413_v47, %s5224_s17 }
 0x286   : > { %v6439_v18 = vpop.permute.xlu1 %1595 }
 0x287   : > { %v6441_v13 = vpop.permute.xlu2 %2742 }
 0x288   : > { %8470 = vst [vmem:[#allocation28_spill] sm:$0xff] %v6441_v13 }
 0x28c   : > { %1783 = vrot.lane.b32.xlu1 %v6447_v41, %s5223_s15  ;;  %1690 = vrot.lane.b32.xlu0 %v6444_v59, %s5223_s15 }
 0x28d   : > { %1785 = vrot.lane.b32.xlu2 %v6450_v63, %s5223_s15 }
 0x28e   : > { %v6458_v56 = vpop.permute.xlu1 %1493  ;;  %v6460_v40 = vpop.permute.xlu0 %1793 }
 0x28f   : > { %v6462_v33 = vpop.permute.xlu2 %4652 }
 0x294   : > { %2641 = vrot.lane.b32.xlu1 %v6413_v47, %s5225_s18  ;;  %2718 = vrot.lane.b32.xlu0 %v6465_v28, %s5224_s17 }
 0x295   : > { %2643 = vrot.lane.b32.xlu2 %v6374_v62, %s5225_s18 }
 0x296   : > { %v6473_v60 = vpop.permute.xlu1 %2631  ;;  %v6475_v16 = vpop.permute.xlu0 %1599 }
 0x297   : > { %8473 = vst [vmem:[#allocation31_spill] sm:$0xff] %v6473_v60  ;;  %v6477_v32 = vpop.permute.xlu2 %1497 }
 0x29c   : > { %1688 = vrot.lane.b32.xlu1 %v6388_v54, %s5223_s15  ;;  %2724 = vrot.lane.b32.xlu0 %v6207_v29, %s5224_s17 }
 0x29d   : > { %2627 = vrot.lane.b32.xlu2 %v6374_v62, %s5224_s17 }
 0x29e   : > { %v1695_v20 = vpop.permute.xlu1 %1694  ;;  %v6485_v24 = vpop.permute.xlu0 %2635 }
 0x29f   : > { %v6487_v25 = vpop.permute.xlu2 %4667 }
 0x2a4   : > { %4697 = vrot.lane.b32.xlu1 %v6491_v34, %s5226_s23  ;;  %v6528_v34 = vpack.i.bf16 %v6465_v28, %v6494_v37 }
 0x2a5   : > { %1591 = vrot.lane.b32.xlu2 %v6494_v37, %s5223_s15 }
 0x2a6   : > { %v6500_v51 = vpop.permute.xlu1 %4657  ;;  %v6502_v2 = vpop.permute.xlu0 %2746  ;;  %8478 = vst [vmem:[#allocation36_spill] sm:$0xff] %v6528_v34 }
 0x2a7   : > { %v6504_v36 = vpop.permute.xlu2 %2619 }
 0x2a8   : > { %8475 = vst [vmem:[#allocation33_spill] sm:$0xff] %v6504_v36 }
 0x2ac   : > { %1589 = vrot.lane.b32.xlu1 %v6465_v28, %s5223_s15  ;;  %s5228_s15 = smov 16  }
 0x2ad   : > { %2736 = vrot.lane.b32.xlu2 %v6494_v37, %s5225_s18 }
 0x2ae   : > { %v6510_v55 = vpop.permute.xlu1 %4662  ;;  %v6512_v5 = vpop.permute.xlu0 %4682 }
 0x2af   : > { %v1699_v43 = vpop.permute.xlu2 %1698 }
 0x2b4   : > { %4712 = vrot.lane.b32.xlu1 %v6516_v45, %s5226_s23 }
 0x2b5   : > { %2720 = vrot.lane.b32.xlu2 %v6494_v37, %s5224_s17 }
 0x2b6   : > { %v6522_v36 = vpop.permute.xlu1 %2744  ;;  %v1502_v22 = vpop.permute.xlu0 %1501 }
 0x2b7   : > { %8477 = vst [vmem:[#allocation35_spill] sm:$0xff] %v6522_v36  ;;  %v6524_v8 = vpop.permute.xlu2 %4672 }
 0x2bc   : > { %4717 = vrot.lane.b32.xlu1 %v6528_v34, %s5226_s23 }
 0x2bd   : > { %2722 = vrot.lane.b32.xlu2 %v6168_v10, %s5224_s17 }
 0x2be   : > { %v1796_v6 = vpop.permute.xlu1 %1795  ;;  %v6534_v45 = vpop.permute.xlu0 %4687 }
 0x2bf   : > { %v1602_v61 = vpop.permute.xlu2 %1601 }
 0x2c4   : > { %4722 = vrot.lane.b32.xlu1 %v6538_v23, %s5226_s23 }
 0x2c6   : > { %v1500_v57 = vpop.permute.xlu1 %1499  ;;  %v6542_v11 = vpop.permute.xlu0 %4692 }
 0x2c7   : > { %v1798_v42 = vpop.permute.xlu2 %1797 }
 0x2cc   : > { %2740 = vrot.lane.b32.xlu1 %v6207_v29, %s5225_s18 }
 0x2ce   : > { %v6546_v34 = vpop.permute.xlu1 %2637  ;;  %v6548_v27 = vpop.permute.xlu0 %2748 }
 0x2cf   : > { %v6550_v4 = vpop.permute.xlu2 %2639 }
 0x2d4   : > { %2738 = vrot.lane.b32.xlu1 %v6168_v10, %s5225_s18 }
 0x2d6   : > { %v6554_v31 = vpop.permute.xlu1 %2621  ;;  %v1687_v60 = vpop.permute.xlu0 %1686 }
 0x2d7   : > { %8480 = vst [vmem:[#allocation38_spill] sm:$0xff] %v6554_v31  ;;  %v1504_v23 = vpop.permute.xlu2 %1503 }
 0x2dc   : > { %2734 = vrot.lane.b32.xlu1 %v6465_v28, %s5225_s18 }
 0x2de   : > { %v1701_v13 = vpop.permute.xlu1 %1700  ;;  %v1506_v30 = vpop.permute.xlu0 %1505 }
 0x2df   : > { %v6558_v48 = vpop.permute.xlu2 %2625  ;;  %4367 = vmatpush.xpose.msk.msrb.mxu1 %vm1507_vm8, %v1506_v30  ;;  %4399 = vmatpush.xpose.msk.msrb.mxu3 %vm1507_vm8, %v1701_v13 }
 0x2e0   : > { %8481 = vst [vmem:[#allocation39_spill] sm:$0xff] %v6558_v48 }
 0x2e3   : > { %4368 = vmatpush.xpose.msk.msrb.mxu1 %vm1507_vm8, %v1504_v23  ;;  %4400 = vmatpush.xpose.msk.msrb.mxu3 %vm1507_vm8, %v1699_v43 }
 0x2e4   : > { %2853 = vrot.lane.b32.xlu1 %v6377_v21, %s5225_s18 }
 0x2e6   : > { %v6566_v31 = vpop.permute.xlu1 %4677  ;;  %v6568_v36 = vpop.permute.xlu0 %4702 }
 0x2e7   : > { %4369 = vmatpush.xpose.msk.msrb.mxu1 %vm1507_vm8, %v1502_v22  ;;  %4401 = vmatpush.xpose.msk.msrb.mxu3 %vm1507_vm8, %v6437_v14  ;;  %v1786_v48 = vpop.permute.xlu2 %1785  ;;  %v4650_v14 = vunpack.i.h.bf16 %v6371_v39 }
 0x2eb   : > { %4370 = vmatpush.xpose.msk.msrb.mxu1 %vm1507_vm8, %v1500_v57  ;;  %4402 = vmatpush.xpose.msk.msrb.mxu3 %vm1507_vm8, %v1695_v20  ;;  %v4670_v20 = vunpack.i.h.bf16 %v6487_v25 }
 0x2ee   : > { %v1604_v23 = vpop.permute.xlu1 %1603  ;;  %v1788_v30 = vpop.permute.xlu0 %1787 }
 0x2ef   : > { %4371 = vmatpush.xpose.msk.msrb.mxu1 %vm1507_vm8, %v6477_v32  ;;  %4383 = vmatpush.xpose.msk.msrb.mxu2 %vm1507_vm8, %v1604_v23  ;;  %v6580_v43 = vpop.permute.xlu2 %2643  ;;  %v4705_v23 = vunpack.i.h.bf16 %v6568_v36 }
 0x2f0   : > { %4403 = vmatpush.xpose.msk.msrb.mxu3 %vm1507_vm8, %v6353_v44 }
 0x2f3   : > { %4372 = vmatpush.xpose.msk.msrb.mxu1 %vm1507_vm8, %v6398_v12  ;;  %4384 = vmatpush.xpose.msk.msrb.mxu2 %vm1507_vm8, %v1602_v61 }
 0x2f6   : > { %v6585_v57 = vpop.permute.xlu1 %2623  ;;  %v6587_v22 = vpop.permute.xlu0 %4707 }
 0x2f7   : > { %8482 = vst [vmem:[#allocation40_spill] sm:$0xff] %v6585_v57  ;;  %4373 = vmatpush.xpose.msk.msrb.mxu1 %vm1507_vm8, %v6458_v56  ;;  %4385 = vmatpush.xpose.msk.msrb.mxu2 %vm1507_vm8, %v6475_v16  ;;  %v6597_v32 = vpop.permute.xlu2 %2627 }
 0x2f8   : > { %8483 = vst [vmem:[#allocation41_spill] sm:$0xff] %v6597_v32 }
 0x2fb   : > { %4374 = vmatpush.xpose.msk.msrb.mxu1 %vm1507_vm8, %v6341_v52  ;;  %4386 = vmatpush.xpose.msk.msrb.mxu2 %vm1507_vm8, %v6407_v0  ;;  %v4680_v0 = vunpack.i.h.bf16 %v6566_v31 }
 0x2fe   : > { %v1784_v61 = vpop.permute.xlu1 %1783  ;;  %4375 = vmatmul.msk.f32.vlgmr.msrb.gmra.mxu1 %vm1507_vm8, %v6160_v26  ;;  %v1691_v44 = vpop.permute.xlu0 %1690 }
 0x2ff   : > { %4415 = vmatpush.xpose.msk.msra.mxu1 %vm1507_vm8, %v1798_v42  ;;  %4387 = vmatpush.xpose.msk.msrb.mxu2 %vm1507_vm8, %v6439_v18  ;;  %v1592_v52 = vpop.permute.xlu2 %1591  ;;  %v4655_v18 = vunpack.i.h.bf16 %v6462_v33 }
 0x300   : > { %4404 = vmatpush.xpose.msk.msrb.mxu3 %vm1507_vm8, %v1691_v44  ;;  %v4710_v44 = vunpack.i.h.bf16 %v6587_v22 }
 0x303   : > { %4416 = vmatpush.xpose.msk.msra.mxu1 %vm1507_vm8, %v1796_v6  ;;  %4388 = vmatpush.xpose.msk.msrb.mxu2 %vm1507_vm8, %v6349_v17  ;;  %v4689_v17 = vunpack.i.l.bf16 %v6534_v45 }
 0x306   : > { %v6610_v42 = vpop.permute.xlu1 %2641  ;;  %4376 = vmatmul.msk.f32.gmra.mxu1 %vm1507_vm8, %v6178_v58 }
 0x307   : > { %4417 = vmatpush.xpose.msk.msra.mxu1 %vm1507_vm8, %v6460_v40  ;;  %4389 = vmatpush.xpose.msk.msrb.mxu2 %vm1507_vm8, %v1592_v52  ;;  %v8491_v52 = vld [vmem:[#allocation9_spill] sm:$0xff] }
 0x30b   : > { %4418 = vmatpush.xpose.msk.msra.mxu1 %vm1507_vm8, %v6390_v46  ;;  %v4690_v46 = vunpack.i.h.bf16 %v6534_v45  ;;  %v4649_v45 = vunpack.i.l.bf16 %v6371_v39  ;;  %v4694_v39 = vunpack.i.l.bf16 %v6542_v11 }
 0x30e   : > { %v1689_v6 = vpop.permute.xlu1 %1688  ;;  %4377 = vmatmul.msk.f32.gmra.mxu1 %vm1507_vm8, %v6183_v9  ;;  %v4664_v9 = vunpack.i.l.bf16 %v6510_v55 }
 0x30f   : > { %4419 = vmatpush.xpose.msk.msra.mxu1 %vm1507_vm8, %v6423_v38  ;;  %4405 = vmatpush.xpose.msk.msrb.mxu3 %vm1507_vm8, %v1689_v6  ;;  %v4665_v38 = vunpack.i.h.bf16 %v6510_v55  ;;  %v4704_v55 = vunpack.i.l.bf16 %v6568_v36  ;;  %v4659_v36 = vunpack.i.l.bf16 %v6500_v51  ;;  %v8492_v6 = vld [vmem:[#allocation5_spill] sm:$0xff] }
 0x313   : > { %4420 = vmatpush.xpose.msk.msra.mxu1 %vm1507_vm8, %v1788_v30  ;;  %4406 = vmatpush.xpose.msk.msrb.mxu3 %vm1507_vm8, %v1687_v60 }
 0x316   : > { %v4698_v12 = vpop.permute.xlu1 %4697  ;;  %4378 = vmatmul.msk.f32.gmra.mxu1 %vm1507_vm8, %v6257_v7  ;;  %4407 = vmatmul.msk.f32.vlgmr.msrb.gmra.mxu3 %vm1507_vm8, %v6363_v49  ;;  %v4654_v7 = vunpack.i.l.bf16 %v6462_v33  ;;  %v4695_v33 = vunpack.i.h.bf16 %v6542_v11  ;;  %v4679_v11 = vunpack.i.l.bf16 %v6566_v31  ;;  %v4685_v31 = vunpack.i.h.bf16 %v6512_v5 }
 0x317   : > { %4421 = vmatpush.xpose.msk.msra.mxu1 %vm1507_vm8, %v1786_v48  ;;  %2402 = vmatpush.msra.mxu3 %v4689_v17  ;;  %v4675_v48 = vunpack.i.h.bf16 %v6524_v8  ;;  %v4699_v13 = vunpack.i.l.bf16 %v4698_v12  ;;  %v4700_v40 = vunpack.i.h.bf16 %v4698_v12  ;;  %v8494_v12 = vld [vmem:[#allocation6_spill] sm:$0xff] }
 0x319   : > { %2403 = vmatpush.msra.mxu3 %v4690_v46  ;;  %v8493_v46 = vld [vmem:[#allocation17_spill] sm:$0xff] }
 0x31b   : > { %4422 = vmatpush.xpose.msk.msra.mxu1 %vm1507_vm8, %v1784_v61  ;;  %2404 = vmatpush.msra.mxu3 %v4664_v9  ;;  %v4709_v61 = vunpack.i.l.bf16 %v6587_v22  ;;  %v8490_v22 = vld [vmem:[#allocation20_spill] sm:$0xff]  ;;  %v8495_v9 = vld [vmem:[#allocation7_spill] sm:$0xff] }
 0x31d   : > { %2405 = vmatpush.msra.mxu3 %v4665_v38  ;;  %v8497_v38 = vld [vmem:[#allocation12_spill] sm:$0xff] }
 0x31e   : > { %v1590_v56 = vpop.permute.xlu1 %1589  ;;  %4379 = vmatmul.msk.f32.gmra.mxu1 %vm1507_vm8, %v6332_v53  ;;  %4408 = vmatmul.msk.f32.gmra.mxu3 %vm1507_vm8, %v6388_v54  ;;  %v4669_v53 = vunpack.i.l.bf16 %v6487_v25  ;;  %v4684_v25 = vunpack.i.l.bf16 %v6512_v5 }
 0x31f   : > { %2491 = vmatpush.msrb.mxu1 %v4680_v0  ;;  %2406 = vmatpush.msra.mxu3 %v4649_v45  ;;  %v8496_v0 = vld [vmem:[#allocation13_spill] sm:$0xff] }
 0x320   : > { %4390 = vmatpush.xpose.msk.msrb.mxu2 %vm1507_vm8, %v1590_v56 }
 0x321   : > { %2492 = vmatpush.msrb.mxu1 %v4675_v48  ;;  %2407 = vmatpush.msra.mxu3 %v4650_v14  ;;  %v6740_v48 = vld [vmem:[%s8370_s2] sm:$0xff] }
 0x323   : > { %2493 = vmatpush.msrb.mxu1 %v4654_v7  ;;  %4391 = vmatmul.msk.f32.vlgmr.msrb.gmra.mxu2 %vm1507_vm8, %v6465_v28  ;;  %v1451_v7 = vld [vmem:[%s8369_s1] sm:$0xff] }
 0x324   : > { %2313 = vmatpush.msra.mxu2 %v4699_v13 }
 0x325   : > { %2494 = vmatpush.msrb.mxu1 %v4655_v18 }
 0x326   : > { %2314 = vmatpush.msra.mxu2 %v4700_v40  ;;  %v4713_v60 = vpop.permute.xlu1 %4712  ;;  %4380 = vmatmul.msk.f32.gmra.mxu1 %vm1507_vm8, %v6306_v15  ;;  %v4674_v15 = vunpack.i.l.bf16 %v6524_v8 }
 0x327   : > { %4409 = vmatmul.msk.f32.gmra.mxu3 %vm1507_vm8, %v6444_v59  ;;  %v4714_v16 = vunpack.i.l.bf16 %v4713_v60  ;;  %v4715_v28 = vunpack.i.h.bf16 %v4713_v60  ;;  %v1467_v60 = vld [vmem:[%s8369_s1 + $0x80] sm:$0xff] }
 0x328   : > { %2315 = vmatpush.msra.mxu2 %v4694_v39 }
 0x329   : > { %2495 = vmatpush.msrb.mxu1 %v4714_v16 }
 0x32a   : > { %2316 = vmatpush.msra.mxu2 %v4695_v33 }
 0x32b   : > { %4392 = vmatmul.msk.f32.gmra.mxu2 %vm1507_vm8, %v6494_v37  ;;  %2496 = vmatpush.msrb.mxu1 %v4715_v28 }
 0x32c   : > { %2317 = vmatpush.msra.mxu2 %v4669_v53 }
 0x32d   : > { %2497 = vmatpush.msrb.mxu1 %v4704_v55 }
 0x32e   : > { %2318 = vmatpush.msra.mxu2 %v4670_v20  ;;  %v4718_v30 = vpop.permute.xlu1 %4717  ;;  %4381 = vmatmul.msk.f32.gmra.mxu1 %vm1507_vm8, %v6413_v47  ;;  %v4660_v47 = vunpack.i.h.bf16 %v6500_v51 }
 0x32f   : > { %4410 = vmatmul.msk.f32.gmra.mxu3 %vm1507_vm8, %v6202_v19  ;;  %v4719_v37 = vunpack.i.l.bf16 %v4718_v30  ;;  %2498 = vmatpush.msrb.mxu1 %v4705_v23  ;;  %v4720_v8 = vunpack.i.h.bf16 %v4718_v30  ;;  %v1459_v23 = vld [vmem:[%s8369_s1 + $0x40] sm:$0xff] }
 0x330   : > { %2319 = vmatpush.msra.mxu2 %v4679_v11 }
 0x331   : > { %2408 = vmatpush.msra.mxu3 %v4719_v37  ;;  %v6771_v37 = vld [vmem:[%s8370_s2 + $0x8] sm:$0xff] }
 0x332   : > { %2320 = vmatpush.msra.mxu2 %v4674_v15 }
 0x333   : > { %4393 = vmatmul.msk.f32.gmra.mxu2 %vm1507_vm8, %v6168_v10  ;;  %2409 = vmatpush.msra.mxu3 %v4720_v8 }
 0x334   : > { %2580 = vmatpush.msrb.mxu2 %v4684_v25 }
 0x335   : > { %4463 = vmatpush.xpose.msk.msrb.mxu3 %vm1507_vm8, %v6580_v43 }
 0x336   : > { %2581 = vmatpush.msrb.mxu2 %v4685_v31  ;;  %4382 = vmatmul.msk.f32.gmra.mxu1 %vm1507_vm8, %v6374_v62  ;;  %v4723_v5 = vpop.permute.xlu1 %4722  ;;  %v8486_v62 = vld [vmem:[#allocation8_spill] sm:$0xff] }
 0x337   : > { %4411 = vmatmul.msk.f32.gmra.mxu3 %vm1507_vm8, %v6260_v35  ;;  %v4724_v10 = vunpack.i.l.bf16 %v4723_v5  ;;  %v4725_v51 = vunpack.i.h.bf16 %v4723_v5 }
 0x338   : > { %2582 = vmatpush.msrb.mxu2 %v4659_v36 }
 0x339   : > { %4464 = vmatpush.xpose.msk.msrb.mxu3 %vm1507_vm8, %v6610_v42  ;;  %v2737_v42 = vpop.permute.xlu2 %2736 }
 0x33a   : > { %2583 = vmatpush.msrb.mxu2 %v4660_v47 }
 0x33b   : > { %4394 = vmatmul.msk.f32.gmra.mxu2 %vm1507_vm8, %v6207_v29 }
 0x33c   : > { %2584 = vmatpush.msrb.mxu2 %v4709_v61  ;;  %v1468_v61 = vld [vmem:[%s8369_s1 + $0x88] sm:$0xff] }
 0x33d   : > { %4465 = vmatpush.xpose.msk.msrb.mxu3 %vm1507_vm8, %v6550_v4  ;;  %v8485_v4 = vld [vmem:[#allocation25_spill] sm:$0xff] }
 0x33e   : > { %2585 = vmatpush.msrb.mxu2 %v4710_v44  ;;  %4423 = vmatmul.msk.f32.vlgmr.msra.gmra.mxu1 %vm1507_vm8, %v6447_v41  ;;  %v2741_v29 = vpop.permute.xlu1 %2740  ;;  %v1460_v44 = vld [vmem:[%s8369_s1 + $0x48] sm:$0xff] }
 0x33f   : > { %4412 = vmatmul.msk.f32.gmra.mxu3 %vm1507_vm8, %v6219_v50  ;;  %4479 = vmatpush.xpose.msk.msra.mxu1 %vm1507_vm8, %v6548_v27  ;;  %v8484_v27 = vld [vmem:[#allocation35_spill] sm:$0xff] }
 0x340   : > { %2586 = vmatpush.msrb.mxu2 %v4724_v10 }
 0x341   : > { %4466 = vmatpush.xpose.msk.msrb.mxu3 %vm1507_vm8, %v6546_v34  ;;  %v8488_v34 = vld [vmem:[#allocation31_spill] sm:$0xff] }
 0x342   : > { %2587 = vmatpush.msrb.mxu2 %v4725_v51 }
 0x343   : > { %4395 = vmatmul.msk.f32.gmra.mxu2 %vm1507_vm8, %v6239_v1  ;;  %4480 = vmatpush.xpose.msk.msra.mxu1 %vm1507_vm8, %v6502_v2  ;;  %v8487_v2 = vld [vmem:[#allocation28_spill] sm:$0xff] }
 0x345   : > { %4467 = vmatpush.xpose.msk.msrb.mxu3 %vm1507_vm8, %v6485_v24  ;;  %v8489_v24 = vld [vmem:[#allocation24_spill] sm:$0xff] }
 0x346   : > { %4424 = vmatmul.msk.f32.gmra.mxu1 %vm1507_vm8, %v6450_v63  ;;  %v2739_v43 = vpop.permute.xlu1 %2738 }
 0x347   : > { %4413 = vmatmul.msk.f32.gmra.mxu3 %vm1507_vm8, %v6339_v3  ;;  %4481 = vmatpush.xpose.msk.msra.mxu1 %vm1507_vm8, %v8484_v27 }
 0x349   : > { %4468 = vmatpush.xpose.msk.msrb.mxu3 %vm1507_vm8, %v8485_v4 }
 0x34b   : > { %4396 = vmatmul.msk.f32.gmra.mxu2 %vm1507_vm8, %v8486_v62  ;;  %4482 = vmatpush.xpose.msk.msra.mxu1 %vm1507_vm8, %v8487_v2 }
 0x34d   : > { %4469 = vmatpush.xpose.msk.msrb.mxu3 %vm1507_vm8, %v8488_v34 }
 0x34e   : > { %4425 = vmatmul.msk.f32.gmra.mxu1 %vm1507_vm8, %v8489_v24  ;;  %v2735_v17 = vpop.permute.xlu1 %2734 }
 0x34f   : > { %4414 = vmatmul.msk.f32.gmra.mxu3 %vm1507_vm8, %v6377_v21  ;;  %4483 = vmatpush.xpose.msk.msra.mxu1 %vm1507_vm8, %v2741_v29  ;;  %v6790_v29 = vld [vmem:[%s8370_s2 + $0x10] sm:$0xff] }
 0x351   : > { %4470 = vmatpush.xpose.msk.msrb.mxu3 %vm1507_vm8, %v8490_v22 }
 0x353   : > { %4397 = vmatmul.msk.f32.gmra.mxu2 %vm1507_vm8, %v8491_v52  ;;  %4484 = vmatpush.xpose.msk.msra.mxu1 %vm1507_vm8, %v2739_v43 }
 0x356   : > { %4426 = vmatmul.msk.f32.gmra.mxu1 %vm1507_vm8, %v8492_v6 }
 0x357   : > { %4485 = vmatpush.xpose.msk.msra.mxu1 %vm1507_vm8, %v2737_v42 }
 0x35b   : > { %4398 = vmatmul.msk.f32.gmra.mxu2 %vm1507_vm8, %v8493_v46  ;;  %4486 = vmatpush.xpose.msk.msra.mxu1 %vm1507_vm8, %v2735_v17  ;;  %v1453_v17 = vld [vmem:[%s8369_s1 + $0x10] sm:$0xff] }
 0x35e   : > { %4427 = vmatmul.msk.f32.gmra.mxu1 %vm1507_vm8, %v8494_v12 }
 0x366   : > { %4428 = vmatmul.msk.f32.gmra.mxu1 %vm1507_vm8, %v8495_v9 }
 0x36e   : > { %4429 = vmatmul.msk.f32.gmra.mxu1 %vm1507_vm8, %v8496_v0 }
 0x376   : > { %4430 = vmatmul.msk.f32.gmra.mxu1 %vm1507_vm8, %v8497_v38 }
 0x37b   : > { %v1557_v45 = vpop.f32.mrf.mxu1 }
 0x37c   : > { %v1558_v14 = vadd.f32 %v1557_v45, %v6740_v48  ;;  %v1452_v45 = vld [vmem:[%s8369_s1 + $0x8] sm:$0xff] }
 0x37e   : > { %v6746_v18 = vadd.f32 %v1558_v14, %v1451_v7  ;;  %v1461_v14 = vld [vmem:[%s8369_s1 + $0x50] sm:$0xff] }
 0x380   : > { %v1905_v13 = vsel %vm1904_vm9, %v6746_v18, -inf }
 0x381   : > { %1906 = vmax.xlane.f32.xlu2 %v1905_v13 }
 0x383   : > { %v1560_v56 = vpop.f32.mrf.mxu1 }
 0x384   : > { %v1561_v4 = vadd.f32 %v1560_v56, %v6771_v37 }
 0x386   : > { %v6813_v56 = vadd.f32 %v1561_v4, %v1452_v45 }
 0x38b   : > { %v1563_v40 = vpop.f32.mrf.mxu1 }
 0x38c   : > { %v1564_v2 = vadd.f32 %v1563_v40, %v6790_v29  ;;  %v6818_v40 = vld [vmem:[%s8370_s2 + $0x18] sm:$0xff] }
 0x38e   : > { %v6811_v13 = vadd.f32 %v1564_v2, %v1453_v17  ;;  %v1471_v17 = vld [vmem:[%s8369_s1 + $0xa0] sm:$0xff] }
 0x393   : > { %v1566_v39 = vpop.f32.mrf.mxu1 }
 0x399   : > { %v1751_v33 = vpop.f32.mrf.mxu3 }
 0x39a   : > { %v1752_v53 = vadd.f32 %v1751_v33, %v6740_v48 }
 0x39b   : > { %v6754_v16 = vpop.f32.mrf.mxu1 }
 0x39c   : > { %v6756_v20 = vadd.f32 %v1752_v53, %v1467_v60  ;;  %v1567_v53 = vadd.f32 %v1566_v39, %v6818_v40  ;;  %v1469_v39 = vld [vmem:[%s8369_s1 + $0x90] sm:$0xff] }
 0x39e   : > { %v1953_v28 = vsel %vm1904_vm9, %v6756_v20, -inf }
 0x39f   : > { %1954 = vmax.xlane.f32.xlu0 %v1953_v28 }
 0x3a1   : > { %v1754_v11 = vpop.f32.mrf.mxu3 }
 0x3a2   : > { %v1755_v8 = vadd.f32 %v1754_v11, %v6771_v37  ;;  %v1911_v11 = vsel %vm1904_vm9, %v6811_v13, -inf }
 0x3a3   : > { %v6760_v55 = vpop.f32.mrf.mxu1 }
 0x3a4   : > { %v6785_v51 = vadd.f32 %v1755_v8, %v1468_v61  ;;  %v1454_v8 = vld [vmem:[%s8369_s1 + $0x18] sm:$0xff] }
 0x3a5   : > { %v6839_v61 = vadd.f32 %v1567_v53, %v1454_v8  ;;  %v1462_v8 = vld [vmem:[%s8369_s1 + $0x58] sm:$0xff] }
 0x3a6   : > { %v1654_v15 = vpop.f32.mrf.mxu2  ;;  %v1956_v22 = vsel %vm1904_vm9, %v6785_v51, -inf }
 0x3a7   : > { %v1655_v25 = vadd.f32 %v1654_v15, %v6740_v48  ;;  %v1908_v15 = vsel %vm1904_vm9, %v6813_v56, -inf  ;;  %v1914_v2 = vsel %vm1904_vm9, %v6839_v61, -inf }
 0x3a9   : > { %v6766_v30 = vadd.f32 %v1655_v25, %v1459_v23 }
 0x3aa   : > { %v1757_v31 = vpop.f32.mrf.mxu3 }
 0x3ab   : > { %v1929_v36 = vsel %vm1904_vm9, %v6766_v30, -inf  ;;  %v6776_v47 = vpop.f32.mrf.mxu1  ;;  %v1758_v28 = vadd.f32 %v1757_v31, %v6790_v29 }
 0x3ac   : > { %1930 = vmax.xlane.f32.xlu0 %v1929_v36 }
 0x3ae   : > { %v1657_v5 = vpop.f32.mrf.mxu2 }
 0x3af   : > { %v1658_v10 = vadd.f32 %v1657_v5, %v6771_v37  ;;  %v6841_v5 = vadd.f32 %v1758_v28, %v1469_v39 }
 0x3b1   : > { %v6792_v27 = vadd.f32 %v1658_v10, %v1460_v44  ;;  %v6846_v44 = vld [vmem:[%s8370_s2 + $0x20] sm:$0xff] }
 0x3b2   : > { %v1760_v34 = vpop.f32.mrf.mxu3 }
 0x3b3   : > { %v1932_v43 = vsel %vm1904_vm9, %v6792_v27, -inf  ;;  %v6800_v42 = vpop.f32.mrf.mxu1  ;;  %v1761_v10 = vadd.f32 %v1760_v34, %v6818_v40  ;;  %v1470_v34 = vld [vmem:[%s8369_s1 + $0x98] sm:$0xff] }
 0x3b4   : > { %1933 = vmax.xlane.f32.xlu2 %v1932_v43  ;;  %1957 = vmax.xlane.f32.xlu0 %v1956_v22  ;;  %v1959_v43 = vsel %vm1904_vm9, %v6841_v5, -inf }
 0x3b6   : > { %v1660_v7 = vpop.f32.mrf.mxu2 }
 0x3b7   : > { %v1661_v33 = vadd.f32 %v1660_v7, %v6790_v29 }
 0x3b9   : > { %v6821_v60 = vadd.f32 %v1661_v33, %v1461_v14  ;;  %v6864_v33 = vadd.f32 %v1761_v10, %v1470_v34  ;;  %v1464_v10 = vld [vmem:[%s8369_s1 + $0x68] sm:$0xff] }
 0x3ba   : > { %v1763_v31 = vpop.f32.mrf.mxu3 }
 0x3bb   : > { %v1935_v23 = vsel %vm1904_vm9, %v6821_v60, -inf  ;;  %v6831_v25 = vpop.f32.mrf.mxu1  ;;  %v1764_v4 = vadd.f32 %v1763_v31, %v6846_v44  ;;  %v6881_v31 = vld [vmem:[%s8370_s2 + $0x28] sm:$0xff] }
 0x3bc   : > { %1912 = vmax.xlane.f32.xlu2 %v1911_v11  ;;  %1909 = vmax.xlane.f32.xlu0 %v1908_v15  ;;  %v1962_v15 = vsel %vm1904_vm9, %v6864_v33, -inf  ;;  %v1573_v32 = vadd.f32 %v6760_v55, %v6881_v31  ;;  %v1465_v55 = vld [vmem:[%s8369_s1 + $0x70] sm:$0xff] }
 0x3bd   : > { %1936 = vmax.xlane.f32.xlu1 %v1935_v23  ;;  %v6862_v14 = vadd.f32 %v1764_v4, %v1471_v17  ;;  %v1463_v23 = vld [vmem:[%s8369_s1 + $0x60] sm:$0xff] }
 0x3be   : > { %v1663_v36 = vpop.f32.mrf.mxu2 }
 0x3bf   : > { %v1664_v53 = vadd.f32 %v1663_v36, %v6818_v40  ;;  %v1965_v11 = vsel %vm1904_vm9, %v6862_v14, -inf }
 0x3c2   : > { %v1766_v45 = vpop.f32.mrf.mxu3 }
 0x3c3   : > { %v6854_v22 = vpop.f32.mrf.mxu1 }
 0x3c4   : > { %1915 = vmax.xlane.f32.xlu2 %v1914_v2  ;;  %1960 = vmax.xlane.f32.xlu0 %v1959_v43  ;;  %v6888_v2 = vadd.f32 %v1664_v53, %v1462_v8 }
 0x3c6   : > { %v1666_v7 = vpop.f32.mrf.mxu2  ;;  %v1938_v53 = vsel %vm1904_vm9, %v6888_v2, -inf }
 0x3c7   : > { %v1667_v28 = vadd.f32 %v1666_v7, %v6846_v44  ;;  %v1570_v7 = vadd.f32 %v6754_v16, %v6846_v44  ;;  %v1472_v16 = vld [vmem:[%s8369_s1 + $0xa8] sm:$0xff] }
 0x3c9   : > { %v6886_v4 = vadd.f32 %v1667_v28, %v1463_v23 }
 0x3ca   : > { %v1769_v17 = vpop.f32.mrf.mxu3 }
 0x3cb   : > { %v1854_v39 = vpop.f32.mrf.mxu1  ;;  %v1941_v28 = vsel %vm1904_vm9, %v6886_v4, -inf }
 0x3cc   : > { %1966 = vmax.xlane.f32.xlu2 %v1965_v11  ;;  %1963 = vmax.xlane.f32.xlu0 %v1962_v15  ;;  %v6898_v11 = vld [vmem:[%s8370_s2 + $0x30] sm:$0xff]  ;;  %v1767_v15 = vadd.f32 %v1766_v45, %v6881_v31  ;;  %v1455_v45 = vld [vmem:[%s8369_s1 + $0x20] sm:$0xff] }
 0x3cd   : > { %v1770_v23 = vadd.f32 %v1769_v17, %v6898_v11 }
 0x3ce   : > { %v1669_v36 = vpop.f32.mrf.mxu2 }
 0x3cf   : > { %v1670_v43 = vadd.f32 %v1669_v36, %v6881_v31  ;;  %v1473_v36 = vld [vmem:[%s8369_s1 + $0xb0] sm:$0xff] }
 0x3d1   : > { %v6891_v34 = vadd.f32 %v1670_v43, %v1464_v10  ;;  %v6917_v10 = vadd.f32 %v1767_v15, %v1472_v16  ;;  %v6919_v43 = vadd.f32 %v1570_v7, %v1455_v45  ;;  %v1576_v15 = vadd.f32 %v6776_v47, %v6898_v11  ;;  %v1457_v16 = vld [vmem:[%s8369_s1 + $0x30] sm:$0xff] }
 0x3d3   : > { %v1944_v8 = vsel %vm1904_vm9, %v6891_v34, -inf  ;;  %v1857_v17 = vpop.f32.mrf.mxu1  ;;  %v1917_v26 = vsel %vm1904_vm9, %v6919_v43, -inf }
 0x3d4   : > { %1942 = vmax.xlane.f32.xlu2 %v1941_v28  ;;  %1939 = vmax.xlane.f32.xlu0 %v1938_v53  ;;  %v6921_v53 = vadd.f32 %v1770_v23, %v1473_v36  ;;  %v1456_v23 = vld [vmem:[%s8369_s1 + $0x28] sm:$0xff]  ;;  %v1772_v36 = vpop.f32.mrf.mxu3  ;;  %v1858_v12 = vadd.f32 %v1857_v17, %v6818_v40 }
 0x3d5   : > { %1945 = vmax.xlane.f32.xlu1 %v1944_v8  ;;  %v1968_v8 = vsel %vm1904_vm9, %v6917_v10, -inf  ;;  %v6945_v47 = vadd.f32 %v1573_v32, %v1456_v23  ;;  %v1855_v32 = vadd.f32 %v1854_v39, %v6790_v29  ;;  %v1477_v23 = vld [vmem:[%s8369_s1 + $0xd0] sm:$0xff] }
 0x3d6   : > { %v1672_v28 = vpop.f32.mrf.mxu2  ;;  %v1971_v7 = vsel %vm1904_vm9, %v6921_v53, -inf }
 0x3d7   : > { %v1673_v57 = vadd.f32 %v1672_v28, %v6898_v11  ;;  %v6950_v28 = vadd.f32 %v1576_v15, %v1457_v16  ;;  %v1458_v15 = vld [vmem:[%s8369_s1 + $0x38] sm:$0xff] }
 0x3d9   : > { %v6943_v45 = vadd.f32 %v1673_v57, %v1465_v55  ;;  %v1920_v57 = vsel %vm1904_vm9, %v6945_v47, -inf  ;;  %v1923_v55 = vsel %vm1904_vm9, %v6950_v28, -inf }
 0x3dc   : > { %1969 = vmax.xlane.f32.xlu2 %v1968_v8  ;;  %1918 = vmax.xlane.f32.xlu0 %v1917_v26  ;;  %v1442_v26 = vld [vmem:[%s8370_s2 + $0x38] sm:$0xff]  ;;  %v1860_v8 = vpop.f32.mrf.mxu1 }
 0x3dd   : > { %1972 = vmax.xlane.f32.xlu1 %v1971_v7  ;;  %v1579_v58 = vadd.f32 %v6800_v42, %v1442_v26  ;;  %v1773_v24 = vadd.f32 %v1772_v36, %v1442_v26  ;;  %v1947_v7 = vsel %vm1904_vm9, %v6943_v45, -inf  ;;  %v1474_v42 = vld [vmem:[%s8369_s1 + $0xb8] sm:$0xff]  ;;  %v6973_v36 = vadd.f32 %v1855_v32, %v1477_v23 }
 0x3de   : > { %v1675_v39 = vpop.f32.mrf.mxu2 }
 0x3df   : > { %v6969_v16 = vadd.f32 %v1579_v58, %v1458_v15  ;;  %v6971_v29 = vadd.f32 %v1773_v24, %v1474_v42  ;;  %v1983_v58 = vsel %vm1904_vm9, %v6973_v36, -inf  ;;  %v1475_v24 = vld [vmem:[%s8369_s1 + $0xc0] sm:$0xff]  ;;  %v1861_v15 = vadd.f32 %v1860_v8, %v6846_v44 }
 0x3e1   : > { %v1926_v63 = vsel %vm1904_vm9, %v6969_v16, -inf }
 0x3e4   : > { %1948 = vmax.xlane.f32.xlu2 %v1947_v7  ;;  %1921 = vmax.xlane.f32.xlu0 %v1920_v57  ;;  %v1849_v7 = vadd.f32 %v6831_v25, %v6740_v48  ;;  %v1676_v57 = vadd.f32 %v1675_v39, %v1442_v26  ;;  %v1863_v41 = vpop.f32.mrf.mxu1  ;;  %v1466_v48 = vld [vmem:[%s8369_s1 + $0x78] sm:$0xff] }
 0x3e5   : > { %1924 = vmax.xlane.f32.xlu1 %v1923_v55  ;;  %v1974_v55 = vsel %vm1904_vm9, %v6971_v29, -inf  ;;  %v1478_v25 = vld [vmem:[%s8369_s1 + $0xd8] sm:$0xff] }
 0x3e6   : > { %v6993_v40 = vadd.f32 %v1849_v7, %v1475_v24  ;;  %v6995_v17 = vadd.f32 %v1676_v57, %v1466_v48  ;;  %v6997_v32 = vadd.f32 %v1858_v12, %v1478_v25  ;;  %v1476_v12 = vld [vmem:[%s8369_s1 + $0xc8] sm:$0xff]  ;;  %v1864_v7 = vadd.f32 %v1863_v41, %v6881_v31  ;;  %v1481_v24 = vld [vmem:[%s8369_s1 + $0xf0] sm:$0xff] }
 0x3e7   : > { %v1480_v48 = vld [vmem:[%s8369_s1 + $0xe8] sm:$0xff] }
 0x3e8   : > { %v1977_v42 = vsel %vm1904_vm9, %v6993_v40, -inf  ;;  %v1950_v23 = vsel %vm1904_vm9, %v6995_v17, -inf  ;;  %v1986_v39 = vsel %vm1904_vm9, %v6997_v32, -inf  ;;  %v7032_v41 = vadd.f32 %v1864_v7, %v1480_v48 }
 0x3ec   : > { %1927 = vmax.xlane.f32.xlu2 %v1926_v63  ;;  %1975 = vmax.xlane.f32.xlu0 %v1974_v55  ;;  %v1852_v63 = vadd.f32 %v6854_v22, %v6771_v37  ;;  %v1479_v37 = vld [vmem:[%s8369_s1 + $0xe0] sm:$0xff]  ;;  %v1866_v44 = vpop.f32.mrf.mxu1 }
 0x3ed   : > { %1984 = vmax.xlane.f32.xlu1 %v1983_v58  ;;  %v7016_v8 = vadd.f32 %v1861_v15, %v1479_v37  ;;  %v1867_v57 = vadd.f32 %v1866_v44, %v6898_v11  ;;  %v7034_v11 = vpop.permute.xlu0 %2718 }
 0x3ee   : > { %v7014_v22 = vadd.f32 %v1852_v63, %v1476_v12  ;;  %8498 = vst [vmem:[#allocation35_spill] sm:$0xff] %v7034_v11  ;;  %v7036_v63 = vpop.permute.xlu2 %2720 }
 0x3ef   : > { %v1989_v58 = vsel %vm1904_vm9, %v7016_v8, -inf  ;;  %v7030_v25 = vadd.f32 %v1867_v57, %v1481_v24  ;;  %8499 = vst [vmem:[#allocation25_spill] sm:$0xff] %v7036_v63 }
 0x3f0   : > { %v1980_v55 = vsel %vm1904_vm9, %v7014_v22, -inf }
 0x3f4   : > { %1978 = vmax.xlane.f32.xlu2 %v1977_v42  ;;  %1951 = vmax.xlane.f32.xlu0 %v1950_v23  ;;  %v1869_v31 = vpop.f32.mrf.mxu1  ;;  %v1995_v42 = vsel %vm1904_vm9, %v7030_v25, -inf  ;;  %v1992_v23 = vsel %vm1904_vm9, %v7032_v41, -inf }
 0x3f5   : > { %1987 = vmax.xlane.f32.xlu1 %v1986_v39  ;;  %v1870_v15 = vadd.f32 %v1869_v31, %v1442_v26  ;;  %v1482_v39 = vld [vmem:[%s8369_s1 + $0xf8] sm:$0xff]  ;;  %v7047_v37 = vpop.permute.xlu0 %2724 }
 0x3f6   : > { %8500 = vst [vmem:[#allocation8_spill] sm:$0xff] %v7047_v37  ;;  %v7049_v44 = vpop.permute.xlu2 %2722 }
 0x3f7   : > { %v7045_v12 = vadd.f32 %v1870_v15, %v1482_v39  ;;  %8501 = vst [vmem:[#allocation28_spill] sm:$0xff] %v7049_v44 }
 0x3f9   : > { %v1998_v26 = vsel %vm1904_vm9, %v7045_v12, -inf }
 0x3fc   : > { %1981 = vmax.xlane.f32.xlu2 %v1980_v55  ;;  %1990 = vmax.xlane.f32.xlu0 %v1989_v58 }
 0x3fe   : > { %v1907_v7 = vpop.xlane.xlu2 %1906 }
 0x3ff   : > { %v2001_v58 = vsub.f32 %v6746_v18, %v1907_v7 }
 0x401   : > { %v2033_v48 = vmul.f32 1.442695, %v2001_v58  ;;  %v7066_v58 = vpop.permute.xlu1 %2853 }
 0x404   : > { %1996 = vmax.xlane.f32.xlu2 %v1995_v42  ;;  %1993 = vmax.xlane.f32.xlu0 %v1992_v23 }
 0x40c   : > { %1999 = vmax.xlane.f32.xlu0 %v1998_v26 }
 0x412   : > { %v1955_v57 = vpop.xlane.xlu0 %1954 }
 0x413   : > { %v2017_v55 = vsub.f32 %v6756_v20, %v1955_v57 }
 0x415   : > { %v2065_v24 = vmul.f32 1.442695, %v2017_v55 }
 0x417   : > { %4876 = vpow2.f32 %v2065_v24 }
 0x418   : > { %4878 = vpow2.f32 %v2033_v48 }
 0x41d   : > { %v7055_v31 = vpop.eup %4876 }
 0x41e   : > { %v2145_v42 = vsel %vm1904_vm9, %v7055_v31, 0.0  ;;  %v7060_v26 = vpop.eup %4878 }
 0x41f   : > { %v1931_v15 = vpop.xlane.xlu0 %1930  ;;  %2146 = vadd.xlane.f32.xlu0 %v2145_v42  ;;  %v2097_v18 = vsel %vm1904_vm9, %v7060_v26, 0.0 }
 0x420   : > { %v2009_v23 = vsub.f32 %v6766_v30, %v1931_v15 }
 0x422   : > { %v2049_v39 = vmul.f32 1.442695, %v2009_v23 }
 0x424   : > { %4880 = vpow2.f32 %v2049_v39 }
 0x427   : > { %v1934_v20 = vpop.xlane.xlu2 %1933  ;;  %v1958_v57 = vpop.xlane.xlu0 %1957  ;;  %2098 = vadd.xlane.f32.xlu0 %v2097_v18 }
 0x428   : > { %v2010_v7 = vsub.f32 %v6792_v27, %v1934_v20  ;;  %v2018_v55 = vsub.f32 %v6785_v51, %v1958_v57 }
 0x42a   : > { %v7068_v24 = vpop.eup %4880  ;;  %v2051_v30 = vmul.f32 1.442695, %v2010_v7  ;;  %v2067_v48 = vmul.f32 1.442695, %v2018_v55 }
 0x42b   : > { %v2121_v15 = vsel %vm1904_vm9, %v7068_v24, 0.0 }
 0x42c   : > { %4882 = vpow2.f32 %v2051_v30  ;;  %2122 = vadd.xlane.f32.xlu2 %v2121_v15 }
 0x42d   : > { %4884 = vpow2.f32 %v2067_v48 }
 0x42f   : > { %v1913_v42 = vpop.xlane.xlu2 %1912  ;;  %v1910_v23 = vpop.xlane.xlu0 %1909 }
 0x430   : > { %v2002_v39 = vsub.f32 %v6813_v56, %v1910_v23  ;;  %v1937_v27 = vpop.xlane.xlu1 %1936 }
 0x431   : > { %v2011_v7 = vsub.f32 %v6821_v60, %v1937_v27 }
 0x432   : > { %v7073_v20 = vpop.eup %4882  ;;  %v2035_v51 = vmul.f32 1.442695, %v2002_v39  ;;  %v2003_v39 = vsub.f32 %v6811_v13, %v1913_v42 }
 0x433   : > { %v7075_v57 = vpop.eup %4884  ;;  %v2124_v18 = vsel %vm1904_vm9, %v7073_v20, 0.0  ;;  %v2053_v56 = vmul.f32 1.442695, %v2011_v7 }
 0x434   : > { %2125 = vadd.xlane.f32.xlu1 %v2124_v18  ;;  %v2148_v55 = vsel %vm1904_vm9, %v7075_v57, 0.0  ;;  %4886 = vpow2.f32 %v2035_v51  ;;  %v2037_v27 = vmul.f32 1.442695, %v2003_v39 }
 0x435   : > { %2149 = vadd.xlane.f32.xlu0 %v2148_v55  ;;  %4888 = vpow2.f32 %v2053_v56 }
 0x437   : > { %v1916_v30 = vpop.xlane.xlu2 %1915  ;;  %v1961_v48 = vpop.xlane.xlu0 %1960 }
 0x438   : > { %v2019_v15 = vsub.f32 %v6841_v5, %v1961_v48  ;;  %v2004_v42 = vsub.f32 %v6839_v61, %v1916_v30 }
 0x43a   : > { %v2069_v23 = vmul.f32 1.442695, %v2019_v15  ;;  %v7084_v37 = vpop.eup %4886 }
 0x43b   : > { %v2100_v60 = vsel %vm1904_vm9, %v7084_v37, 0.0  ;;  %v7090_v44 = vpop.eup %4888 }
 0x43c   : > { %4890 = vpow2.f32 %v2069_v23  ;;  %v2127_v15 = vsel %vm1904_vm9, %v7090_v44, 0.0 }
 0x43d   : > { %2101 = vadd.xlane.f32.xlu0 %v2100_v60  ;;  %4892 = vpow2.f32 %v2037_v27 }
 0x43f   : > { %v1967_v18 = vpop.xlane.xlu2 %1966  ;;  %v1964_v55 = vpop.xlane.xlu0 %1963 }
 0x440   : > { %v2021_v51 = vsub.f32 %v6862_v14, %v1967_v18  ;;  %v2020_v7 = vsub.f32 %v6864_v33, %v1964_v55  ;;  %v2039_v14 = vmul.f32 1.442695, %v2004_v42 }
 0x442   : > { %v2073_v5 = vmul.f32 1.442695, %v2021_v51  ;;  %v2071_v48 = vmul.f32 1.442695, %v2020_v7  ;;  %v7092_v13 = vpop.eup %4890 }
 0x443   : > { %v2151_v56 = vsel %vm1904_vm9, %v7092_v13, 0.0  ;;  %v7100_v18 = vpop.eup %4892 }
 0x444   : > { %4894 = vpow2.f32 %v2073_v5  ;;  %2152 = vadd.xlane.f32.xlu1 %v2151_v56  ;;  %v2103_v7 = vsel %vm1904_vm9, %v7100_v18, 0.0 }
 0x445   : > { %4896 = vpow2.f32 %v2071_v48  ;;  %2128 = vadd.xlane.f32.xlu0 %v2127_v15 }
 0x446   : > { %4898 = vpow2.f32 %v2039_v14 }
 0x447   : > { %v1943_v33 = vpop.xlane.xlu2 %1942  ;;  %v1940_v23 = vpop.xlane.xlu0 %1939 }
 0x448   : > { %v1946_v39 = vpop.xlane.xlu1 %1945  ;;  %v2012_v60 = vsub.f32 %v6888_v2, %v1940_v23  ;;  %v2013_v51 = vsub.f32 %v6886_v4, %v1943_v33 }
 0x44a   : > { %v7102_v27 = vpop.eup %4894  ;;  %v2055_v61 = vmul.f32 1.442695, %v2012_v60  ;;  %v2057_v42 = vmul.f32 1.442695, %v2013_v51 }
 0x44b   : > { %v7104_v30 = vpop.eup %4896  ;;  %v2157_v55 = vsel %vm1904_vm9, %v7102_v27, 0.0 }
 0x44c   : > { %v2154_v5 = vsel %vm1904_vm9, %v7104_v30, 0.0  ;;  %2104 = vadd.xlane.f32.xlu1 %v2103_v7  ;;  %4900 = vpow2.f32 %v2055_v61  ;;  %v7113_v56 = vpop.eup %4898 }
 0x44d   : > { %2155 = vadd.xlane.f32.xlu2 %v2154_v5  ;;  %2158 = vadd.xlane.f32.xlu0 %v2157_v55  ;;  %4902 = vpow2.f32 %v2057_v42  ;;  %v2106_v33 = vsel %vm1904_vm9, %v7113_v56, 0.0 }
 0x44f   : > { %v1970_v2 = vpop.xlane.xlu2 %1969  ;;  %v1919_v48 = vpop.xlane.xlu0 %1918 }
 0x450   : > { %v1973_v15 = vpop.xlane.xlu1 %1972  ;;  %v2005_v4 = vsub.f32 %v6919_v43, %v1919_v48  ;;  %v2022_v42 = vsub.f32 %v6917_v10, %v1970_v2  ;;  %v2014_v10 = vsub.f32 %v6891_v34, %v1946_v39 }
 0x451   : > { %v2023_v43 = vsub.f32 %v6921_v53, %v1973_v15 }
 0x452   : > { %v7115_v14 = vpop.eup %4900  ;;  %v2041_v55 = vmul.f32 1.442695, %v2005_v4  ;;  %v2059_v34 = vmul.f32 1.442695, %v2014_v10 }
 0x453   : > { %v2130_v23 = vsel %vm1904_vm9, %v7115_v14, 0.0  ;;  %v7123_v7 = vpop.eup %4902  ;;  %v2077_v4 = vmul.f32 1.442695, %v2023_v43 }
 0x454   : > { %2131 = vadd.xlane.f32.xlu1 %v2130_v23  ;;  %4904 = vpow2.f32 %v2041_v55  ;;  %v2075_v23 = vmul.f32 1.442695, %v2022_v42 }
 0x455   : > { %2107 = vadd.xlane.f32.xlu2 %v2106_v33  ;;  %v2133_v33 = vsel %vm1904_vm9, %v7123_v7, 0.0 }
 0x457   : > { %v1949_v60 = vpop.xlane.xlu2 %1948  ;;  %v1922_v61 = vpop.xlane.xlu0 %1921 }
 0x458   : > { %v2006_v51 = vsub.f32 %v6945_v47, %v1922_v61  ;;  %v1925_v48 = vpop.xlane.xlu1 %1924  ;;  %v2015_v2 = vsub.f32 %v6943_v45, %v1949_v60 }
 0x45a   : > { %v2043_v5 = vmul.f32 1.442695, %v2006_v51  ;;  %v7130_v61 = vpop.eup %4904  ;;  %v2061_v42 = vmul.f32 1.442695, %v2015_v2 }
 0x45b   : > { %v2109_v55 = vsel %vm1904_vm9, %v7130_v61, 0.0 }
 0x45c   : > { %4906 = vpow2.f32 %v2043_v5  ;;  %2134 = vadd.xlane.f32.xlu1 %v2133_v33 }
 0x45d   : > { %4908 = vpow2.f32 %v2075_v23 }
 0x45e   : > { %4910 = vpow2.f32 %v2077_v4 }
 0x45f   : > { %v1928_v63 = vpop.xlane.xlu2 %1927  ;;  %v1976_v11 = vpop.xlane.xlu0 %1975 }
 0x460   : > { %v2024_v47 = vsub.f32 %v6971_v29, %v1976_v11  ;;  %v2008_v15 = vsub.f32 %v6969_v16, %v1928_v63  ;;  %v7141_v29 = vpop.xlane.xlu1 %1984  ;;  %v2007_v16 = vsub.f32 %v6950_v28, %v1925_v48 }
 0x462   : > { %v2079_v51 = vmul.f32 1.442695, %v2024_v47  ;;  %v7133_v53 = vpop.eup %4906  ;;  %v2047_v45 = vmul.f32 1.442695, %v2008_v15 }
 0x463   : > { %v2112_v5 = vsel %vm1904_vm9, %v7133_v53, 0.0  ;;  %v7143_v43 = vpop.eup %4908 }
 0x464   : > { %4912 = vpow2.f32 %v2079_v51  ;;  %2110 = vadd.xlane.f32.xlu1 %v2109_v55  ;;  %2113 = vadd.xlane.f32.xlu0 %v2112_v5  ;;  %v7145_v60 = vpop.eup %4910  ;;  %v2160_v23 = vsel %vm1904_vm9, %v7143_v43, 0.0  ;;  %v2045_v51 = vmul.f32 1.442695, %v2007_v16 }
 0x465   : > { %4914 = vpow2.f32 %v2059_v34  ;;  %v2163_v4 = vsel %vm1904_vm9, %v7145_v60, 0.0 }
 0x466   : > { %4916 = vpow2.f32 %v2061_v42 }
 0x467   : > { %v1979_v11 = vpop.xlane.xlu2 %1978  ;;  %v1952_v39 = vpop.xlane.xlu0 %1951  ;;  %4918 = vpow2.f32 %v2047_v45 }
 0x468   : > { %v2025_v33 = vsub.f32 %v6993_v40, %v1979_v11  ;;  %v1988_v10 = vpop.xlane.xlu1 %1987  ;;  %4920 = vpow2.f32 %v2045_v51  ;;  %v2016_v34 = vsub.f32 %v6995_v17, %v1952_v39 }
 0x469   : > { %v2028_v5 = vsub.f32 %v6997_v32, %v1988_v10 }
 0x46a   : > { %v7148_v63 = vpop.eup %4912  ;;  %v2081_v2 = vmul.f32 1.442695, %v2025_v33 }
 0x46b   : > { %v2166_v47 = vsel %vm1904_vm9, %v7148_v63, 0.0  ;;  %v7157_v15 = vpop.eup %4914  ;;  %v2087_v16 = vmul.f32 1.442695, %v2028_v5 }
 0x46c   : > { %2161 = vadd.xlane.f32.xlu1 %v2160_v23  ;;  %2164 = vadd.xlane.f32.xlu0 %v2163_v4  ;;  %v7159_v40 = vpop.eup %4916  ;;  %4922 = vpow2.f32 %v2081_v2  ;;  %v2136_v11 = vsel %vm1904_vm9, %v7157_v15, 0.0  ;;  %v2063_v23 = vmul.f32 1.442695, %v2016_v34 }
 0x46d   : > { %2167 = vadd.xlane.f32.xlu2 %v2166_v47  ;;  %v7161_v55 = vpop.eup %4918  ;;  %v2139_v42 = vsel %vm1904_vm9, %v7159_v40, 0.0  ;;  %4924 = vpow2.f32 %v2087_v16 }
 0x46e   : > { %v2118_v45 = vsel %vm1904_vm9, %v7161_v55, 0.0  ;;  %v7172_v47 = vpop.eup %4920  ;;  %4926 = vpow2.f32 %v2063_v23 }
 0x46f   : > { %v1982_v28 = vpop.xlane.xlu2 %1981  ;;  %v1991_v48 = vpop.xlane.xlu0 %1990  ;;  %v2115_v5 = vsel %vm1904_vm9, %v7172_v47, 0.0 }
 0x470   : > { %v2026_v10 = vsub.f32 %v7014_v22, %v1982_v28  ;;  %v2027_v22 = vsub.f32 %v6973_v36, %v7141_v29  ;;  %v2029_v36 = vsub.f32 %v7016_v8, %v1991_v48 }
 0x472   : > { %v7174_v17 = vpop.eup %4922  ;;  %v2083_v34 = vmul.f32 1.442695, %v2026_v10 }
 0x473   : > { %v2169_v2 = vsel %vm1904_vm9, %v7174_v17, 0.0 }
 0x474   : > { %2137 = vadd.xlane.f32.xlu1 %v2136_v11  ;;  %2140 = vadd.xlane.f32.xlu0 %v2139_v42  ;;  %v7182_v11 = vpop.eup %4924 }
 0x475   : > { %2119 = vadd.xlane.f32.xlu2 %v2118_v45  ;;  %v7184_v42 = vpop.eup %4926  ;;  %v2178_v28 = vsel %vm1904_vm9, %v7182_v11, 0.0 }
 0x476   : > { %v2142_v16 = vsel %vm1904_vm9, %v7184_v42, 0.0 }
 0x477   : > { %v1994_v33 = vpop.xlane.xlu0 %1993  ;;  %v1997_v4 = vpop.xlane.xlu2 %1996 }
 0x478   : > { %v2030_v32 = vsub.f32 %v7032_v41, %v1994_v33  ;;  %v2031_v51 = vsub.f32 %v7030_v25, %v1997_v4  ;;  %v2085_v33 = vmul.f32 1.442695, %v2027_v22 }
 0x47a   : > { %v2091_v39 = vmul.f32 1.442695, %v2030_v32  ;;  %v2093_v41 = vmul.f32 1.442695, %v2031_v51  ;;  %v2089_v51 = vmul.f32 1.442695, %v2029_v36 }
 0x47c   : > { %4928 = vpow2.f32 %v2091_v39  ;;  %2170 = vadd.xlane.f32.xlu1 %v2169_v2  ;;  %2116 = vadd.xlane.f32.xlu0 %v2115_v5 }
 0x47d   : > { %4930 = vpow2.f32 %v2093_v41 }
 0x47e   : > { %4932 = vpow2.f32 %v2083_v34 }
 0x47f   : > { %v7201_v29 = vpop.xlane.xlu0 %1999  ;;  %4934 = vpow2.f32 %v2085_v33 }
 0x480   : > { %4936 = vpow2.f32 %v2089_v51 }
 0x482   : > { %v7186_v45 = vpop.eup %4928 }
 0x483   : > { %v2184_v25 = vsel %vm1904_vm9, %v7186_v45, 0.0  ;;  %v7196_v23 = vpop.eup %4930 }
 0x484   : > { %2185 = vadd.xlane.f32.xlu2 %v2184_v25  ;;  %2179 = vadd.xlane.f32.xlu1 %v2178_v28  ;;  %v7198_v4 = vpop.eup %4932  ;;  %v2187_v32 = vsel %vm1904_vm9, %v7196_v23, 0.0 }
 0x485   : > { %2143 = vadd.xlane.f32.xlu0 %v2142_v16  ;;  %v2172_v39 = vsel %vm1904_vm9, %v7198_v4, 0.0  ;;  %v7207_v10 = vpop.eup %4934 }
 0x486   : > { %v2175_v8 = vsel %vm1904_vm9, %v7207_v10, 0.0  ;;  %v7211_v48 = vpop.eup %4936 }
 0x487   : > { %v2181_v22 = vsel %vm1904_vm9, %v7211_v48, 0.0 }
 0x48c   : > { %2188 = vadd.xlane.f32.xlu2 %v2187_v32 }
 0x48d   : > { %2173 = vadd.xlane.f32.xlu0 %v2172_v39 }
 0x492   : > { %v2147_v2 = vpop.xlane.xlu0 %2146 }
 0x493   : > { %4938 = vrcp.f32 %v2147_v2 }
 0x495   : > { %2176 = vadd.xlane.f32.xlu0 %v2175_v8 }
 0x499   : > { %v4939_v5 = vpop.eup %4938 }
 0x49a   : > { %v2241_v41 = vmul.f32 %v4939_v5, %v7055_v31  ;;  %v2099_v34 = vpop.xlane.xlu0 %2098  ;;  %v2032_v5 = vsub.f32 %v7045_v12, %v7201_v29 }
 0x49b   : > { %4940 = vrcp.f32 %v2099_v34 }
 0x49c   : > { %4447 = vmatmul.msk.f32.vlgmr.msrb.gmra.mxu1 %vm1904_vm9, %v2241_v41 }
 0x49d   : > { %2182 = vadd.xlane.f32.xlu0 %v2181_v22  ;;  %2851 = vrot.lane.b32.xlu1 %v6339_v3, %s5225_s18 }
 0x49f   : > { %v2123_v25 = vpop.xlane.xlu2 %2122 }
 0x4a0   : > { %4942 = vrcp.f32 %v2123_v25  ;;  %v2095_v25 = vmul.f32 1.442695, %v2032_v5 }
 0x4a1   : > { %v4941_v28 = vpop.eup %4940 }
 0x4a2   : > { %v2225_v16 = vmul.f32 %v4941_v28, %v7060_v26 }
 0x4a4   : > { %2726 = vrot.lane.b32.xlu2 %v6239_v1, %s5224_s17  ;;  %4431 = vmatmul.msk.f32.vlgmr.msra.gmra.mxu2 %vm1904_vm9, %v2225_v16 }
 0x4a5   : > { %4495 = vmatpush.xpose.msk.msra.mxu2 %vm1507_vm8, %v7066_v58  ;;  %2849 = vrot.lane.b32.xlu1 %v6219_v50, %s5225_s18 }
 0x4a6   : > { %v4943_v31 = vpop.eup %4942 }
 0x4a7   : > { %v2233_v33 = vmul.f32 %v4943_v31, %v7068_v24  ;;  %v2126_v36 = vpop.xlane.xlu1 %2125 }
 0x4a8   : > { %4944 = vrcp.f32 %v2126_v36  ;;  %v2150_v32 = vpop.xlane.xlu0 %2149 }
 0x4a9   : > { %4946 = vrcp.f32 %v2150_v32  ;;  %4439 = vmatmul.msk.f32.vlgmr.msra.gmra.mxu3 %vm1904_vm9, %v2233_v33 }
 0x4ac   : > { %2843 = vrot.lane.b32.xlu2 %v6444_v59, %s5225_s18 }
 0x4ae   : > { %v4945_v1 = vpop.eup %4944 }
 0x4af   : > { %v4947_v26 = vpop.eup %4946  ;;  %v2234_v39 = vmul.f32 %v4945_v1, %v7073_v20 }
 0x4b0   : > { %v2242_v58 = vmul.f32 %v4947_v26, %v7075_v57  ;;  %v2102_v51 = vpop.xlane.xlu0 %2101 }
 0x4b1   : > { %4440 = vmatmul.msk.f32.gmra.mxu3 %vm1904_vm9, %v2234_v39  ;;  %4948 = vrcp.f32 %v2102_v51  ;;  %2847 = vrot.lane.b32.xlu0 %v6260_v35, %s5225_s18 }
 0x4b2   : > { %4448 = vmatmul.msk.f32.gmra.mxu1 %vm1904_vm9, %v2242_v58 }
 0x4b4   : > { %2730 = vrot.lane.b32.xlu2 %v8491_v52, %s5224_s17 }
 0x4b7   : > { %v4949_v24 = vpop.eup %4948  ;;  %v2153_v2 = vpop.xlane.xlu1 %2152 }
 0x4b8   : > { %4950 = vrcp.f32 %v2153_v2  ;;  %v2129_v8 = vpop.xlane.xlu0 %2128  ;;  %v2226_v20 = vmul.f32 %v4949_v24, %v7084_v37 }
 0x4b9   : > { %4952 = vrcp.f32 %v2129_v8  ;;  %2845 = vrot.lane.b32.xlu0 %v6202_v19, %s5225_s18 }
 0x4ba   : > { %4432 = vmatmul.msk.f32.gmra.mxu2 %vm1904_vm9, %v2226_v20 }
 0x4bc   : > { %2823 = vrot.lane.b32.xlu2 %v6363_v49, %s5224_s17 }
 0x4be   : > { %v4951_v57 = vpop.eup %4950 }
 0x4bf   : > { %v4953_v52 = vpop.eup %4952  ;;  %v2105_v41 = vpop.xlane.xlu1 %2104  ;;  %v2243_v22 = vmul.f32 %v4951_v57, %v7092_v13 }
 0x4c0   : > { %v2156_v34 = vpop.xlane.xlu2 %2155  ;;  %4954 = vrcp.f32 %v2105_v41  ;;  %v2235_v37 = vmul.f32 %v4953_v52, %v7090_v44  ;;  %v2159_v28 = vpop.xlane.xlu0 %2158  ;;  %v8502_v41 = vld [vmem:[#allocation29_spill] sm:$0xff] }
 0x4c1   : > { %4956 = vrcp.f32 %v2156_v34  ;;  %2728 = vrot.lane.b32.xlu0 %v8486_v62, %s5224_s17  ;;  %4449 = vmatmul.msk.f32.gmra.mxu1 %vm1904_vm9, %v2243_v22 }
 0x4c2   : > { %4441 = vmatmul.msk.f32.gmra.mxu3 %vm1904_vm9, %v2235_v37  ;;  %4958 = vpow2.f32 %v2095_v25  ;;  %v8503_v25 = vld [vmem:[#allocation6_spill] sm:$0xff] }
 0x4c3   : > { %4960 = vrcp.f32 %v2159_v28  ;;  %v8504_v28 = vld [vmem:[#allocation30_spill] sm:$0xff] }
 0x4c4   : > { %2825 = vrot.lane.b32.xlu2 %v6388_v54, %s5224_s17 }
 0x4c6   : > { %v4955_v12 = vpop.eup %4954 }
 0x4c7   : > { %v4957_v29 = vpop.eup %4956  ;;  %v2227_v44 = vmul.f32 %v4955_v12, %v7100_v18  ;;  %v2132_v16 = vpop.xlane.xlu1 %2131 }
 0x4c8   : > { %v2108_v13 = vpop.xlane.xlu2 %2107  ;;  %v2244_v62 = vmul.f32 %v4957_v29, %v7104_v30  ;;  %v7261_v31 = vpop.eup %4958 }
 0x4c9   : > { %4962 = vrcp.f32 %v2108_v13  ;;  %2841 = vrot.lane.b32.xlu0 %v6388_v54, %s5225_s18  ;;  %4433 = vmatmul.msk.f32.gmra.mxu2 %vm1904_vm9, %v2227_v44  ;;  %v4961_v33 = vpop.eup %4960  ;;  %v2190_v32 = vsel %vm1904_vm9, %v7261_v31, 0.0  ;;  %v8505_v44 = vld [vmem:[#allocation24_spill] sm:$0xff] }
 0x4ca   : > { %4964 = vrcp.f32 %v2132_v16  ;;  %4450 = vmatmul.msk.f32.gmra.mxu1 %vm1904_vm9, %v2244_v62  ;;  %v2245_v26 = vmul.f32 %v4961_v33, %v7102_v27  ;;  %v8507_v33 = vld [vmem:[#allocation35_spill] sm:$0xff] }
 0x4cc   : > { %2831 = vrot.lane.b32.xlu2 %v6260_v35, %s5224_s17 }
 0x4cf   : > { %v4963_v36 = vpop.eup %4962  ;;  %v2135_v1 = vpop.xlane.xlu1 %2134  ;;  %2191 = vadd.xlane.f32.xlu1 %v2190_v32 }
 0x4d0   : > { %v4965_v18 = vpop.eup %4964  ;;  %v2228_v30 = vmul.f32 %v4963_v36, %v7113_v56  ;;  %4966 = vrcp.f32 %v2135_v1  ;;  %v8509_v1 = vld [vmem:[#allocation2_spill] sm:$0xff] }
 0x4d1   : > { %v2236_v54 = vmul.f32 %v4965_v18, %v7115_v14  ;;  %2839 = vrot.lane.b32.xlu0 %v6363_v49, %s5225_s18 }
 0x4d2   : > { %4434 = vmatmul.msk.f32.gmra.mxu2 %vm1904_vm9, %v2228_v30  ;;  %4451 = vmatmul.msk.f32.gmra.mxu1 %vm1904_vm9, %v2245_v26  ;;  %v8508_v30 = vld [vmem:[#allocation3_spill] sm:$0xff] }
 0x4d3   : > { %4442 = vmatmul.msk.f32.gmra.mxu3 %vm1904_vm9, %v2236_v54  ;;  %v4741_v54 = vpack.i.bf16 %v8509_v1, %v8508_v30 }
 0x4d4   : > { %2956 = vrot.lane.b32.xlu2 %v8496_v0, %s5225_s18 }
 0x4d6   : > { %v4967_v35 = vpop.eup %4966 }
 0x4d7   : > { %v2111_v56 = vpop.xlane.xlu1 %2110  ;;  %v2114_v39 = vpop.xlane.xlu0 %2113  ;;  %v2237_v14 = vmul.f32 %v4967_v35, %v7123_v7 }
 0x4d8   : > { %4968 = vrcp.f32 %v2111_v56 }
 0x4d9   : > { %2732 = vrot.lane.b32.xlu0 %v8493_v46, %s5224_s17  ;;  %4970 = vrcp.f32 %v2114_v39 }
 0x4db   : > { %4443 = vmatmul.msk.f32.gmra.mxu3 %vm1904_vm9, %v2237_v14 }
 0x4dc   : > { %2954 = vrot.lane.b32.xlu2 %v8495_v9, %s5225_s18 }
 0x4de   : > { %v4969_v49 = vpop.eup %4968 }
 0x4df   : > { %v2162_v27 = vpop.xlane.xlu1 %2161  ;;  %v2165_v58 = vpop.xlane.xlu0 %2164  ;;  %v2229_v51 = vmul.f32 %v4969_v49, %v7130_v61  ;;  %v8512_v49 = vld [vmem:[#allocation28_spill] sm:$0xff] }
 0x4e0   : > { %4972 = vrcp.f32 %v2162_v27  ;;  %v4971_v46 = vpop.eup %4970  ;;  %v2168_v7 = vpop.xlane.xlu2 %2167  ;;  %v8513_v27 = vld [vmem:[#allocation21_spill] sm:$0xff] }
 0x4e1   : > { %2829 = vrot.lane.b32.xlu0 %v6202_v19, %s5224_s17  ;;  %4435 = vmatmul.msk.f32.gmra.mxu2 %vm1904_vm9, %v2229_v51  ;;  %4974 = vrcp.f32 %v2165_v58  ;;  %v2230_v20 = vmul.f32 %v4971_v46, %v7133_v53  ;;  %v8514_v58 = vld [vmem:[#allocation19_spill] sm:$0xff] }
 0x4e4   : > { %2950 = vrot.lane.b32.xlu2 %v8492_v6, %s5225_s18 }
 0x4e6   : > { %v4973_v24 = vpop.eup %4972 }
 0x4e7   : > { %v2138_v2 = vpop.xlane.xlu1 %2137  ;;  %v2141_v8 = vpop.xlane.xlu0 %2140  ;;  %v2246_v57 = vmul.f32 %v4973_v24, %v7143_v43  ;;  %v8515_v24 = vld [vmem:[#allocation8_spill] sm:$0xff] }
 0x4e8   : > { %4976 = vrcp.f32 %v2138_v2  ;;  %2827 = vrot.lane.b32.xlu1 %v6444_v59, %s5224_s17  ;;  %v4975_v19 = vpop.eup %4974  ;;  %v2120_v53 = vpop.xlane.xlu2 %2119 }
 0x4e9   : > { %2958 = vrot.lane.b32.xlu0 %v8497_v38, %s5225_s18  ;;  %4436 = vmatmul.msk.f32.gmra.mxu2 %vm1904_vm9, %v2230_v20  ;;  %4978 = vrcp.f32 %v2168_v7  ;;  %v2247_v52 = vmul.f32 %v4975_v19, %v7145_v60  ;;  %v8517_v20 = vld [vmem:[#allocation16_spill] sm:$0xff] }
 0x4ea   : > { %4452 = vmatmul.msk.f32.gmra.mxu1 %vm1904_vm9, %v2246_v57  ;;  %4980 = vrcp.f32 %v2141_v8  ;;  %v8516_v8 = vld [vmem:[#allocation26_spill] sm:$0xff] }
 0x4ec   : > { %2837 = vrot.lane.b32.xlu2 %v6377_v21, %s5224_s17 }
 0x4ee   : > { %v4977_v61 = vpop.eup %4976 }
 0x4ef   : > { %v2117_v43 = vpop.xlane.xlu0 %2116  ;;  %v2238_v5 = vmul.f32 %v4977_v61, %v7157_v15  ;;  %v4979_v59 = vpop.eup %4978 }
 0x4f0   : > { %2835 = vrot.lane.b32.xlu1 %v6339_v3, %s5224_s17  ;;  %4982 = vrcp.f32 %v2117_v43  ;;  %v4981_v34 = vpop.eup %4980  ;;  %v2248_v37 = vmul.f32 %v4979_v59, %v7148_v63 }
 0x4f1   : > { %2833 = vrot.lane.b32.xlu0 %v6219_v50, %s5224_s17  ;;  %4444 = vmatmul.msk.f32.gmra.mxu3 %vm1904_vm9, %v2238_v5  ;;  %4984 = vrcp.f32 %v2120_v53  ;;  %v2239_v50 = vmul.f32 %v4981_v34, %v7159_v40  ;;  %v2171_v40 = vpop.xlane.xlu1 %2170 }
 0x4f2   : > { %4453 = vmatmul.msk.f32.gmra.mxu1 %vm1904_vm9, %v2247_v52 }
 0x4f4   : > { %2944 = vrot.lane.b32.xlu2 %v8502_v41, %s5225_s18 }
 0x4f6   : > { %v4983_v15 = vpop.eup %4982 }
 0x4f7   : > { %v7309_v22 = vpop.xlane.xlu2 %2185  ;;  %v2231_v12 = vmul.f32 %v4983_v15, %v7172_v47  ;;  %v4985_v63 = vpop.eup %4984  ;;  %v8506_v47 = vld [vmem:[#allocation32_spill] sm:$0xff] }
 0x4f8   : > { %v2144_v60 = vpop.xlane.xlu0 %2143  ;;  %2930 = vrot.lane.b32.xlu1 %v8504_v28, %s5224_s17  ;;  %v2232_v16 = vmul.f32 %v4985_v63, %v7161_v55 }
 0x4f9   : > { %2952 = vrot.lane.b32.xlu0 %v8503_v25, %s5225_s18  ;;  %4986 = vrcp.f32 %v2144_v60  ;;  %4445 = vmatmul.msk.f32.gmra.mxu3 %vm1904_vm9, %v2239_v50  ;;  %v2180_v26 = vpop.xlane.xlu1 %2179  ;;  %v8521_v50 = vld [vmem:[#allocation39_spill] sm:$0xff] }
 0x4fa   : > { %4454 = vmatmul.msk.f32.gmra.mxu1 %vm1904_vm9, %v2248_v37  ;;  %4437 = vmatmul.msk.f32.gmra.mxu2 %vm1904_vm9, %v2231_v12  ;;  %4988 = vrcp.f32 %v2171_v40 }
 0x4fc   : > { %2928 = vrot.lane.b32.xlu2 %v8502_v41, %s5224_s17 }
 0x4ff   : > { %v7323_v29 = vpop.xlane.xlu2 %2188  ;;  %v4987_v13 = vpop.eup %4986 }
 0x500   : > { %4727 = vrot.lane.b32.xlu1 %v8506_v47, %s5227_s26  ;;  %v2240_v62 = vmul.f32 %v4987_v13, %v7184_v42  ;;  %v2174_v36 = vpop.xlane.xlu0 %2173  ;;  %v4989_v18 = vpop.eup %4988  ;;  %v8510_v42 = vld [vmem:[#allocation25_spill] sm:$0xff] }
 0x501   : > { %2948 = vrot.lane.b32.xlu0 %v8505_v44, %s5225_s18  ;;  %4990 = vrcp.f32 %v2174_v36  ;;  %v2249_v55 = vmul.f32 %v4989_v18, %v7174_v17 }
 0x502   : > { %4487 = vmatmul.msk.f32.vlgmr.msra.gmra.mxu1 %vm1507_vm8, %v8507_v33  ;;  %4438 = vmatmul.msk.f32.gmra.mxu2 %vm1904_vm9, %v2232_v16 }
 0x503   : > { %4446 = vmatmul.msk.f32.gmra.mxu3 %vm1904_vm9, %v2240_v62 }
 0x504   : > { %2934 = vrot.lane.b32.xlu2 %v8492_v6, %s5224_s17  ;;  %v8511_v6 = vld [vmem:[#allocation23_spill] sm:$0xff] }
 0x507   : > { %v2727_v32 = vpop.permute.xlu2 %2726  ;;  %v4991_v56 = vpop.eup %4990 }
 0x508   : > { %4742 = vrot.lane.b32.xlu1 %v4741_v54, %s5227_s26  ;;  %v2177_v35 = vpop.xlane.xlu0 %2176  ;;  %v2250_v14 = vmul.f32 %v4991_v56, %v7198_v4 }
 0x509   : > { %2946 = vrot.lane.b32.xlu0 %v8504_v28, %s5225_s18  ;;  %4992 = vrcp.f32 %v2177_v35  ;;  %v8522_v28 = vld [vmem:[#allocation41_spill] sm:$0xff] }
 0x50a   : > { %4488 = vmatmul.msk.f32.gmra.mxu1 %vm1507_vm8, %v8510_v42  ;;  %4455 = vmatmul.msk.f32.vlgmr.msrb.gmra.mxu2 %vm1904_vm9, %v2249_v55  ;;  %4994 = vrcp.f32 %v2180_v26 }
 0x50b   : > { %4471 = vmatmul.msk.f32.vlgmr.msrb.gmra.mxu3 %vm1507_vm8, %v8511_v6 }
 0x50c   : > { %2936 = vrot.lane.b32.xlu2 %v8503_v25, %s5224_s17 }
 0x50f   : > { %v2844_v39 = vpop.permute.xlu2 %2843  ;;  %v2852_v17 = vpop.permute.xlu1 %2851 }
 0x510   : > { %4496 = vmatpush.xpose.msk.msra.mxu2 %vm1507_vm8, %v2852_v17  ;;  %v4993_v51 = vpop.eup %4992  ;;  %v2183_v2 = vpop.xlane.xlu0 %2182 }
 0x511   : > { %2932 = vrot.lane.b32.xlu0 %v8505_v44, %s5224_s17  ;;  %v2251_v4 = vmul.f32 %v4993_v51, %v7207_v10  ;;  %v4995_v57 = vpop.eup %4994  ;;  %4996 = vrcp.f32 %v2183_v2  ;;  %v8518_v10 = vld [vmem:[#allocation33_spill] sm:$0xff] }
 0x512   : > { %4489 = vmatmul.msk.f32.gmra.mxu1 %vm1507_vm8, %v8512_v49  ;;  %4456 = vmatmul.msk.f32.gmra.mxu2 %vm1904_vm9, %v2250_v14  ;;  %4998 = vrcp.f32 %v7309_v22 }
 0x513   : > { %4472 = vmatmul.msk.f32.gmra.mxu3 %vm1507_vm8, %v8513_v27  ;;  %5000 = vrcp.f32 %v7323_v29 }
 0x514   : > { %4732 = vrot.lane.b32.xlu2 %v8514_v58, %s5227_s26 }
 0x517   : > { %v2731_v46 = vpop.permute.xlu2 %2730  ;;  %v2850_v7 = vpop.permute.xlu1 %2849 }
 0x518   : > { %4497 = vmatpush.xpose.msk.msra.mxu2 %vm1507_vm8, %v2850_v7  ;;  %v4997_v53 = vpop.eup %4996 }
 0x519   : > { %2938 = vrot.lane.b32.xlu0 %v8495_v9, %s5224_s17  ;;  %v2252_v9 = vmul.f32 %v4995_v57, %v7182_v11  ;;  %v8519_v11 = vld [vmem:[#allocation38_spill] sm:$0xff]  ;;  %v4999_v52 = vpop.eup %4998  ;;  %v7398_v60 = vpop.f32.mrf.mxu1 }
 0x51a   : > { %4490 = vmatmul.msk.f32.gmra.mxu1 %vm1507_vm8, %v8515_v24  ;;  %4457 = vmatmul.msk.f32.gmra.mxu2 %vm1904_vm9, %v2251_v4  ;;  %v5001_v34 = vpop.eup %5000 }
 0x51b   : > { %4473 = vmatmul.msk.f32.gmra.mxu3 %vm1507_vm8, %v8516_v8  ;;  %v2255_v15 = vmul.f32 %v5001_v34, %v7196_v23 }
 0x51c   : > { %4737 = vrot.lane.b32.xlu2 %v8517_v20, %s5227_s26 }
 0x51f   : > { %v2824_v19 = vpop.permute.xlu2 %2823 }
 0x521   : > { %2942 = vrot.lane.b32.xlu0 %v8497_v38, %s5224_s17  ;;  %v2253_v38 = vmul.f32 %v4997_v53, %v7211_v48  ;;  %v8520_v48 = vld [vmem:[#allocation40_spill] sm:$0xff] }
 0x522   : > { %4491 = vmatmul.msk.f32.gmra.mxu1 %vm1507_vm8, %v2727_v32  ;;  %4458 = vmatmul.msk.f32.gmra.mxu2 %vm1904_vm9, %v2252_v9 }
 0x523   : > { %4474 = vmatmul.msk.f32.gmra.mxu3 %vm1507_vm8, %v8518_v10  ;;  %v2848_v61 = vpop.permute.xlu0 %2847 }
 0x524   : > { %4498 = vmatpush.xpose.msk.msra.mxu2 %vm1507_vm8, %v2848_v61  ;;  %2940 = vrot.lane.b32.xlu2 %v8496_v0, %s5224_s17  ;;  %v2254_v0 = vmul.f32 %v4999_v52, %v7186_v45 }
 0x527   : > { %v2826_v43 = vpop.permute.xlu2 %2825 }
 0x52a   : > { %4459 = vmatmul.msk.f32.gmra.mxu2 %vm1904_vm9, %v2253_v38  ;;  %v5134_v38 = vld [vmem:[%s8369_s1 + $0x40] sm:$0xff] }
 0x52b   : > { %4475 = vmatmul.msk.f32.gmra.mxu3 %vm1507_vm8, %v8519_v11  ;;  %v2846_v5 = vpop.permute.xlu0 %2845 }
 0x52c   : > { %4499 = vmatpush.xpose.msk.msra.mxu2 %vm1507_vm8, %v2846_v5  ;;  %v7410_v63 = vpop.f32.mrf.mxu3 }
 0x52f   : > { %v7388_v59 = vpop.permute.xlu2 %2831  ;;  %v7405_v25 = vpop.f32.mrf.mxu1 }
 0x530   : > { %4500 = vmatpush.xpose.msk.msra.mxu2 %vm1507_vm8, %v2844_v39 }
 0x532   : > { %4460 = vmatmul.msk.f32.gmra.mxu2 %vm1904_vm9, %v2254_v0 }
 0x533   : > { %4476 = vmatmul.msk.f32.gmra.mxu3 %vm1507_vm8, %v8520_v48  ;;  %v2729_v41 = vpop.permute.xlu0 %2728 }
 0x534   : > { %4492 = vmatmul.msk.f32.gmra.mxu1 %vm1507_vm8, %v2729_v41  ;;  %v7419_v62 = vpop.f32.mrf.mxu3 }
 0x537   : > { %v2957_v22 = vpop.permute.xlu2 %2956 }
 0x53a   : > { %4461 = vmatmul.msk.f32.gmra.mxu2 %vm1904_vm9, %v2255_v15 }
 0x53b   : > { %4477 = vmatmul.msk.f32.gmra.mxu3 %vm1507_vm8, %v8521_v50  ;;  %v2842_v45 = vpop.permute.xlu0 %2841 }
 0x53c   : > { %4493 = vmatmul.msk.f32.gmra.mxu1 %vm1507_vm8, %v2731_v46  ;;  %4501 = vmatpush.xpose.msk.msra.mxu2 %vm1507_vm8, %v2842_v45 }
 0x53e   : > { %v7412_v13 = vpop.f32.mrf.mxu1 }
 0x53f   : > { %v2955_v37 = vpop.permute.xlu2 %2954 }
 0x542   : > { %v2192_v12 = vpop.xlane.xlu1 %2191 }
 0x543   : > { %4478 = vmatmul.msk.f32.gmra.mxu3 %vm1507_vm8, %v8522_v28  ;;  %v2840_v23 = vpop.permute.xlu0 %2839  ;;  %5002 = vrcp.f32 %v2192_v12 }
 0x544   : > { %4502 = vmatpush.xpose.msk.msra.mxu2 %vm1507_vm8, %v2840_v23 }
 0x545   : > { %v7424_v32 = vpop.f32.mrf.mxu3 }
 0x547   : > { %v2951_v40 = vpop.permute.xlu2 %2950  ;;  %v7421_v36 = vpop.f32.mrf.mxu1 }
 0x548   : > { %8523 = vst [vmem:[#allocation31_spill] sm:$0xff] %v7421_v36 }
 0x549   : > { %v5003_v29 = vpop.eup %5002 }
 0x54a   : > { %v2256_v47 = vmul.f32 %v5003_v29, %v7261_v31 }
 0x54b   : > { %v2733_v44 = vpop.permute.xlu0 %2732 }
 0x54c   : > { %4494 = vmatmul.msk.f32.gmra.mxu1 %vm1507_vm8, %v2733_v44  ;;  %4462 = vmatmul.msk.f32.gmra.mxu2 %vm1904_vm9, %v2256_v47  ;;  %v7500_v44 = vpop.f32.mrf.mxu2 }
 0x54f   : > { %v7417_v16 = vpop.permute.xlu2 %2837  ;;  %v7428_v31 = vpop.f32.mrf.mxu1 }
 0x550   : > { %8524 = vst [vmem:[#allocation20_spill] sm:$0xff] %v7428_v31 }
 0x553   : > { %v2830_v33 = vpop.permute.xlu0 %2829 }
 0x554   : > { %4503 = vmatmul.msk.f32.vlgmr.msra.gmra.mxu2 %vm1507_vm8, %v2824_v19  ;;  %v7462_v19 = vld [vmem:[%s8370_s2 + $0x40] sm:$0xff] }
 0x556   : > { %v7431_v26 = vpop.f32.mrf.mxu3 }
 0x557   : > { %v2945_v18 = vpop.permute.xlu2 %2944 }
 0x55a   : > { %v2828_v30 = vpop.permute.xlu1 %2827 }
 0x55b   : > { %v2959_v1 = vpop.permute.xlu0 %2958 }
 0x55c   : > { %4511 = vmatpush.xpose.msk.msra.mxu3 %vm1507_vm8, %v2959_v1  ;;  %4504 = vmatmul.msk.f32.gmra.mxu2 %vm1507_vm8, %v2826_v43  ;;  %v5137_v1 = vld [vmem:[%s8369_s1 + $0x10] sm:$0xff] }
 0x55e   : > { %v7440_v17 = vpop.f32.mrf.mxu3 }
 0x55f   : > { %v2929_v54 = vpop.permute.xlu2 %2928 }
 0x560   : > { %4512 = vmatpush.xpose.msk.msra.mxu3 %vm1507_vm8, %v2957_v22  ;;  %v5135_v22 = vld [vmem:[%s8369_s1] sm:$0xff] }
 0x562   : > { %v2836_v55 = vpop.permute.xlu1 %2835 }
 0x563   : > { %v2834_v42 = vpop.permute.xlu0 %2833 }
 0x564   : > { %4513 = vmatpush.xpose.msk.msra.mxu3 %vm1507_vm8, %v2955_v37  ;;  %4505 = vmatmul.msk.f32.gmra.mxu2 %vm1507_vm8, %v2828_v30  ;;  %v7492_v37 = vld [vmem:[%s8370_s2 + $0x48] sm:$0xff] }
 0x567   : > { %v7435_v6 = vpop.f32.mrf.mxu1  ;;  %v7437_v35 = vpop.permute.xlu2 %2934 }
 0x568   : > { %8525 = vst [vmem:[#allocation9_spill] sm:$0xff] %v7435_v6 }
 0x56a   : > { %v2931_v56 = vpop.permute.xlu1 %2930 }
 0x56b   : > { %v2953_v39 = vpop.permute.xlu0 %2952 }
 0x56c   : > { %4514 = vmatpush.xpose.msk.msra.mxu3 %vm1507_vm8, %v2953_v39  ;;  %4506 = vmatmul.msk.f32.gmra.mxu2 %vm1507_vm8, %v2830_v33 }
 0x56f   : > { %v7443_v14 = vpop.f32.mrf.mxu1  ;;  %v7445_v49 = vpop.permute.xlu2 %2936 }
 0x570   : > { %8526 = vst [vmem:[#allocation5_spill] sm:$0xff] %v7443_v14  ;;  %4515 = vmatpush.xpose.msk.msra.mxu3 %vm1507_vm8, %v2951_v40  ;;  %v5136_v40 = vld [vmem:[%s8369_s1 + $0x8] sm:$0xff] }
 0x572   : > { %v4728_v27 = vpop.permute.xlu1 %4727 }
 0x573   : > { %v2949_v58 = vpop.permute.xlu0 %2948  ;;  %v4729_v51 = vunpack.i.l.bf16 %v4728_v27  ;;  %v4730_v7 = vunpack.i.h.bf16 %v4728_v27  ;;  %v5138_v27 = vld [vmem:[%s8369_s1 + $0x50] sm:$0xff] }
 0x574   : > { %4516 = vmatpush.xpose.msk.msra.mxu3 %vm1507_vm8, %v2949_v58  ;;  %v7449_v46 = vpop.f32.mrf.mxu3  ;;  %4507 = vmatmul.msk.f32.gmra.mxu2 %vm1507_vm8, %v7388_v59 }
 0x575   : > { %3473 = vmatpush.msrb.mxu0 %v4729_v51 }
 0x577   : > { %v7453_v4 = vpop.f32.mrf.mxu1  ;;  %v4733_v24 = vpop.permute.xlu2 %4732  ;;  %3474 = vmatpush.msrb.mxu0 %v4730_v7 }
 0x578   : > { %8527 = vst [vmem:[#allocation17_spill] sm:$0xff] %v7453_v4  ;;  %v4734_v2 = vunpack.i.l.bf16 %v4733_v24  ;;  %v4735_v8 = vunpack.i.h.bf16 %v4733_v24 }
 0x57a   : > { %3475 = vmatpush.msrb.mxu0 %v4734_v2  ;;  %v4743_v43 = vpop.permute.xlu1 %4742 }
 0x57b   : > { %v2947_v20 = vpop.permute.xlu0 %2946  ;;  %v4744_v59 = vunpack.i.l.bf16 %v4743_v43  ;;  %v4745_v48 = vunpack.i.h.bf16 %v4743_v43  ;;  %v5140_v43 = vld [vmem:[%s8369_s1 + $0x20] sm:$0xff] }
 0x57c   : > { %4517 = vmatpush.xpose.msk.msra.mxu3 %vm1507_vm8, %v2947_v20  ;;  %3476 = vmatpush.msrb.mxu0 %v4735_v8  ;;  %v7456_v57 = vpop.f32.mrf.mxu3 }
 0x57d   : > { %4508 = vmatmul.msk.f32.gmra.mxu2 %vm1507_vm8, %v2834_v42 }
 0x57f   : > { %v2799_v9 = vpop.f32.mrf.mxu1  ;;  %v4738_v10 = vpop.permute.xlu2 %4737 }
 0x580   : > { %v2800_v61 = vadd.f32 %v2799_v9, %v7462_v19  ;;  %4518 = vmatpush.xpose.msk.msra.mxu3 %vm1507_vm8, %v2945_v18  ;;  %v4739_v53 = vunpack.i.l.bf16 %v4738_v10  ;;  %v4740_v5 = vunpack.i.h.bf16 %v4738_v10  ;;  %v7550_v10 = vld [vmem:[%s8370_s2 + $0x60] sm:$0xff] }
 0x582   : > { %v7469_v11 = vadd.f32 %v5134_v38, %v2800_v61  ;;  %3477 = vmatpush.msrb.mxu0 %v4739_v53 }
 0x583   : > { %4519 = vmatmul.msk.f32.vlgmr.msra.gmra.mxu3 %vm1507_vm8, %v2929_v54  ;;  %v2933_v50 = vpop.permute.xlu0 %2932 }
 0x584   : > { %4607 = vmatpush.msrb.mxu3 %v4729_v51  ;;  %3478 = vmatpush.msrb.mxu0 %v4740_v5  ;;  %v3089_v52 = vsel %vm1904_vm9, %v7469_v11, -inf }
 0x585   : > { %3090 = vmax.xlane.f32.xlu0 %v3089_v52  ;;  %4509 = vmatmul.msk.f32.gmra.mxu2 %vm1507_vm8, %v2836_v55  ;;  %v7517_v55 = vpop.f32.mrf.mxu2 }
 0x586   : > { %4608 = vmatpush.msrb.mxu3 %v4730_v7  ;;  %v7475_v0 = vpop.f32.mrf.mxu3  ;;  %3479 = vmatpush.msrb.mxu0 %v4744_v59 }
 0x587   : > { %v2802_v28 = vpop.f32.mrf.mxu1 }
 0x588   : > { %4609 = vmatpush.msrb.mxu3 %v4734_v2  ;;  %3480 = vmatpush.msrb.mxu0 %v4745_v48 }
 0x58a   : > { %4610 = vmatpush.msrb.mxu3 %v4735_v8 }
 0x58b   : > { %4520 = vmatmul.msk.f32.gmra.mxu3 %vm1507_vm8, %v2931_v56  ;;  %v7527_v56 = vld [vmem:[%s8370_s2 + $0x58] sm:$0xff]  ;;  %v2939_v24 = vpop.permute.xlu0 %2938 }
 0x58c   : > { %4611 = vmatpush.msrb.mxu3 %v4739_v53 }
 0x58d   : > { %4510 = vmatmul.msk.f32.gmra.mxu2 %vm1507_vm8, %v7417_v16  ;;  %v7509_v16 = vld [vmem:[%s8370_s2 + $0x50] sm:$0xff]  ;;  %v7540_v2 = vpop.f32.mrf.mxu2 }
 0x58e   : > { %4612 = vmatpush.msrb.mxu3 %v4740_v5  ;;  %v2694_v41 = vpop.f32.mrf.mxu3  ;;  %v2941_v5 = vpop.permute.xlu2 %2940 }
 0x58f   : > { %v2695_v34 = vadd.f32 %v2694_v41, %v7462_v19  ;;  %v2805_v30 = vpop.f32.mrf.mxu1 }
 0x590   : > { %4613 = vmatpush.msrb.mxu3 %v4744_v59  ;;  %v2806_v42 = vadd.f32 %v2805_v30, %v7509_v16  ;;  %v5142_v30 = vld [vmem:[%s8369_s1 + $0x48] sm:$0xff] }
 0x591   : > { %v7484_v15 = vadd.f32 %v5135_v22, %v2695_v34 }
 0x592   : > { %4614 = vmatpush.msrb.mxu3 %v4745_v48  ;;  %v7532_v58 = vadd.f32 %v5138_v27, %v2806_v42  ;;  %v7566_v48 = vld [vmem:[%s8370_s2 + $0x68] sm:$0xff] }
 0x593   : > { %4521 = vmatmul.msk.f32.gmra.mxu3 %vm1507_vm8, %v2933_v50  ;;  %v3065_v45 = vsel %vm1904_vm9, %v7484_v15, -inf  ;;  %v5141_v50 = vld [vmem:[%s8369_s1 + $0x28] sm:$0xff] }
 0x594   : > { %3066 = vmax.xlane.f32.xlu1 %v3065_v45  ;;  %v3095_v8 = vsel %vm1904_vm9, %v7532_v58, -inf }
 0x595   : > { %v7561_v59 = vpop.f32.mrf.mxu2 }
 0x596   : > { %v2697_v12 = vpop.f32.mrf.mxu3 }
 0x597   : > { %v2698_v23 = vadd.f32 %v2697_v12, %v7492_v37  ;;  %v2808_v9 = vpop.f32.mrf.mxu1  ;;  %v2943_v12 = vpop.permute.xlu0 %2942 }
 0x599   : > { %v7498_v29 = vadd.f32 %v5136_v40, %v2698_v23  ;;  %v2803_v23 = vadd.f32 %v2802_v28, %v7492_v37 }
 0x59b   : > { %4522 = vmatmul.msk.f32.gmra.mxu3 %vm1507_vm8, %v7437_v35  ;;  %v3068_v47 = vsel %vm1904_vm9, %v7498_v29, -inf }
 0x59c   : > { %3069 = vmax.xlane.f32.xlu0 %v3068_v47 }
 0x59d   : > { %v7578_v47 = vpop.f32.mrf.mxu2 }
 0x59e   : > { %v2700_v33 = vpop.f32.mrf.mxu3 }
 0x59f   : > { %v2701_v18 = vadd.f32 %v2700_v33, %v7509_v16  ;;  %v2811_v22 = vpop.f32.mrf.mxu1  ;;  %v7583_v33 = vld [vmem:[%s8370_s2 + $0x70] sm:$0xff] }
 0x5a0   : > { %v2812_v27 = vadd.f32 %v2811_v22, %v7550_v10 }
 0x5a1   : > { %v7515_v54 = vadd.f32 %v5137_v1, %v2701_v18  ;;  %v7588_v1 = vadd.f32 %v5142_v30, %v2803_v23  ;;  %v5147_v30 = vld [vmem:[%s8369_s1 + $0x58] sm:$0xff] }
 0x5a3   : > { %4523 = vmatmul.msk.f32.gmra.mxu3 %vm1507_vm8, %v7445_v49  ;;  %v3071_v35 = vsel %vm1904_vm9, %v7515_v54, -inf  ;;  %v5139_v49 = vld [vmem:[%s8369_s1 + $0x18] sm:$0xff] }
 0x5a4   : > { %3072 = vmax.xlane.f32.xlu2 %v3071_v35  ;;  %v5143_v35 = vld [vmem:[%s8369_s1 + $0x30] sm:$0xff] }
 0x5a6   : > { %v2703_v39 = vpop.f32.mrf.mxu3 }
 0x5a7   : > { %v2704_v51 = vadd.f32 %v2703_v39, %v7527_v56 }
 0x5a9   : > { %v7538_v7 = vadd.f32 %v5139_v49, %v2704_v51 }
 0x5ab   : > { %4524 = vmatmul.msk.f32.gmra.mxu3 %vm1507_vm8, %v2939_v24  ;;  %v3074_v20 = vsel %vm1904_vm9, %v7538_v7, -inf  ;;  %v3092_v24 = vsel %vm1904_vm9, %v7588_v1, -inf }
 0x5ac   : > { %3096 = vmax.xlane.f32.xlu2 %v3095_v8  ;;  %3075 = vmax.xlane.f32.xlu0 %v3074_v20  ;;  %v7605_v8 = vld [vmem:[%s8370_s2 + $0x78] sm:$0xff] }
 0x5ae   : > { %v2706_v61 = vpop.f32.mrf.mxu3 }
 0x5af   : > { %v2707_v53 = vadd.f32 %v2706_v61, %v7550_v10  ;;  %v7607_v61 = vpop.f32.mrf.mxu2 }
 0x5b1   : > { %v7556_v38 = vadd.f32 %v5140_v43, %v2707_v53  ;;  %v2814_v42 = vpop.f32.mrf.mxu1  ;;  %v5144_v53 = vld [vmem:[%s8369_s1 + $0x60] sm:$0xff] }
 0x5b2   : > { %v2815_v51 = vadd.f32 %v2814_v42, %v7566_v48  ;;  %v7612_v43 = vadd.f32 %v5144_v53, %v2812_v27  ;;  %v8529_v53 = vld [vmem:[#allocation18_spill] sm:$0xff] }
 0x5b3   : > { %4525 = vmatmul.msk.f32.gmra.mxu3 %vm1507_vm8, %v2941_v5  ;;  %v3077_v52 = vsel %vm1904_vm9, %v7556_v38, -inf  ;;  %v5145_v5 = vld [vmem:[%s8369_s1 + $0x68] sm:$0xff] }
 0x5b4   : > { %3078 = vmax.xlane.f32.xlu1 %v3077_v52  ;;  %v7617_v52 = vadd.f32 %v5145_v5, %v2815_v51 }
 0x5b6   : > { %v2709_v41 = vpop.f32.mrf.mxu3 }
 0x5b7   : > { %v2710_v34 = vadd.f32 %v2709_v41, %v7566_v48 }
 0x5b9   : > { %v7572_v45 = vadd.f32 %v5141_v50, %v2710_v34  ;;  %v5146_v34 = vld [vmem:[%s8369_s1 + $0x38] sm:$0xff]  ;;  %v3101_v50 = vsel %vm1904_vm9, %v7612_v43, -inf  ;;  %v2817_v42 = vpop.f32.mrf.mxu1 }
 0x5bb   : > { %4526 = vmatmul.msk.f32.gmra.mxu3 %vm1507_vm8, %v2943_v12  ;;  %v3080_v40 = vsel %vm1904_vm9, %v7572_v45, -inf  ;;  %v3104_v12 = vsel %vm1904_vm9, %v7617_v52, -inf }
 0x5bc   : > { %3081 = vmax.xlane.f32.xlu0 %v3080_v40  ;;  %v2809_v40 = vadd.f32 %v2808_v9, %v7527_v56  ;;  %v5148_v9 = vld [vmem:[%s8369_s1 + $0x70] sm:$0xff] }
 0x5be   : > { %v2712_v18 = vpop.f32.mrf.mxu3 }
 0x5bf   : > { %v2713_v28 = vadd.f32 %v2712_v18, %v7583_v33  ;;  %v7632_v18 = vpop.f32.mrf.mxu2 }
 0x5c1   : > { %v7594_v39 = vadd.f32 %v5143_v35, %v2713_v28  ;;  %v7637_v28 = vadd.f32 %v5147_v30, %v2809_v40  ;;  %v2818_v35 = vadd.f32 %v2817_v42, %v7583_v33 }
 0x5c3   : > { %v3083_v49 = vsel %vm1904_vm9, %v7594_v39, -inf  ;;  %v3098_v27 = vsel %vm1904_vm9, %v7637_v28, -inf  ;;  %v7645_v51 = vadd.f32 %v5148_v9, %v2818_v35 }
 0x5c4   : > { %3084 = vmax.xlane.f32.xlu2 %v3083_v49  ;;  %3093 = vmax.xlane.f32.xlu0 %v3092_v24 }
 0x5c5   : > { %v3107_v24 = vsel %vm1904_vm9, %v7645_v51, -inf }
 0x5c6   : > { %v2715_v20 = vpop.f32.mrf.mxu3 }
 0x5c7   : > { %v2716_v41 = vadd.f32 %v2715_v20, %v7605_v8  ;;  %v7647_v49 = vpop.f32.mrf.mxu2 }
 0x5c9   : > { %v7623_v22 = vadd.f32 %v5146_v34, %v2716_v41 }
 0x5cb   : > { %v3086_v23 = vsel %vm1904_vm9, %v7623_v22, -inf }
 0x5cc   : > { %3102 = vmax.xlane.f32.xlu2 %v3101_v50  ;;  %3105 = vmax.xlane.f32.xlu0 %v3104_v12 }
 0x5cd   : > { %3087 = vmax.xlane.f32.xlu1 %v3086_v23 }
 0x5cf   : > { %v7651_v20 = vpop.f32.mrf.mxu2 }
 0x5d0   : > { %8528 = vst [vmem:[#allocation7_spill] sm:$0xff] %v7651_v20 }
 0x5d5   : > { %3099 = vmax.xlane.f32.xlu1 %v3098_v27 }
 0x5d7   : > { %v7655_v5 = vpop.f32.mrf.mxu2 }
 0x5d8   : > { %8530 = vst [vmem:[#allocation13_spill] sm:$0xff] %v7655_v5 }
 0x5dd   : > { %3108 = vmax.xlane.f32.xlu1 %v3107_v24 }
 0x5df   : > { %v7657_v41 = vpop.f32.mrf.mxu2 }
 0x5e0   : > { %8531 = vst [vmem:[#allocation12_spill] sm:$0xff] %v7657_v41 }
 0x5e4   : > { %4747 = vrot.lane.b32.xlu2 %v8529_v53, %s5227_s26 }
 0x5e7   : > { %v7660_v23 = vpop.f32.mrf.mxu2 }
 0x5e8   : > { %8532 = vst [vmem:[#allocation29_spill] sm:$0xff] %v7660_v23 }
 0x5ef   : > { %v7667_v9 = vpop.f32.mrf.mxu2 }
 0x5f0   : > { %8533 = vst [vmem:[#allocation6_spill] sm:$0xff] %v7667_v9  ;;  %v8538_v9 = vld [vmem:[#allocation14_spill] sm:$0xff] }
 0x5f8   : > { %v3091_v34 = vpop.xlane.xlu0 %3090 }
 0x5f9   : > { %v3169_v50 = vsub.f32 %v7469_v11, %v3091_v34 }
 0x5fb   : > { %v3209_v12 = vmul.f32 1.442695, %v3169_v50 }
 0x5fd   : > { %5004 = vpow2.f32 %v3209_v12  ;;  %v7674_v12 = vpop.f32.mrf.mxu2 }
 0x5fe   : > { %8534 = vst [vmem:[#allocation30_spill] sm:$0xff] %v7674_v12 }
 0x603   : > { %v7662_v40 = vpop.eup %5004 }
 0x604   : > { %v3281_v30 = vsel %vm1904_vm9, %v7662_v40, 0.0 }
 0x605   : > { %3282 = vadd.xlane.f32.xlu1 %v3281_v30 }
 0x607   : > { %v3067_v42 = vpop.xlane.xlu1 %3066 }
 0x608   : > { %v3161_v35 = vsub.f32 %v7484_v15, %v3067_v42  ;;  %v8535_v42 = vld [vmem:[#allocation4_spill] sm:$0xff] }
 0x60a   : > { %v3193_v27 = vmul.f32 1.442695, %v3161_v35 }
 0x60c   : > { %5006 = vpow2.f32 %v3193_v27 }
 0x60f   : > { %v3070_v24 = vpop.xlane.xlu0 %3069 }
 0x610   : > { %v3162_v11 = vsub.f32 %v7498_v29, %v3070_v24  ;;  %v7682_v29 = vpop.f32.mrf.mxu2 }
 0x611   : > { %8536 = vst [vmem:[#allocation24_spill] sm:$0xff] %v7682_v29 }
 0x612   : > { %v7670_v53 = vpop.eup %5006  ;;  %v3195_v34 = vmul.f32 1.442695, %v3162_v11 }
 0x613   : > { %v3257_v50 = vsel %vm1904_vm9, %v7670_v53, 0.0 }
 0x614   : > { %5008 = vpow2.f32 %v3195_v34  ;;  %3258 = vadd.xlane.f32.xlu0 %v3257_v50 }
 0x617   : > { %v3073_v11 = vpop.xlane.xlu2 %3072 }
 0x618   : > { %v7685_v34 = vpop.f32.mrf.mxu2 }
 0x619   : > { %8537 = vst [vmem:[#allocation32_spill] sm:$0xff] %v7685_v34 }
 0x61a   : > { %v7676_v30 = vpop.eup %5008 }
 0x61b   : > { %v3260_v15 = vsel %vm1904_vm9, %v7676_v30, 0.0 }
 0x61c   : > { %3261 = vadd.xlane.f32.xlu2 %v3260_v15 }
 0x61e   : > { %4757 = vrot.lane.b32.xlu1 %v8535_v42, %s5227_s26 }
 0x61f   : > { %v3076_v35 = vpop.xlane.xlu0 %3075 }
 0x620   : > { %v3164_v27 = vsub.f32 %v7538_v7, %v3076_v35  ;;  %v3097_v7 = vpop.xlane.xlu2 %3096 }
 0x621   : > { %v3171_v20 = vsub.f32 %v7532_v58, %v3097_v7 }
 0x622   : > { %v3199_v24 = vmul.f32 1.442695, %v3164_v27 }
 0x623   : > { %v3213_v6 = vmul.f32 1.442695, %v3171_v20 }
 0x624   : > { %5010 = vpow2.f32 %v3199_v24  ;;  %v2904_v24 = vpop.f32.mrf.mxu2 }
 0x627   : > { %v3079_v50 = vpop.xlane.xlu1 %3078 }
 0x628   : > { %v3165_v12 = vsub.f32 %v7556_v38, %v3079_v50  ;;  %4752 = vrot.lane.b32.xlu0 %v8538_v9, %s5227_s26  ;;  %v3163_v9 = vsub.f32 %v7515_v54, %v3073_v11 }
 0x62a   : > { %v3201_v15 = vmul.f32 1.442695, %v3165_v12  ;;  %v7690_v23 = vpop.eup %5010 }
 0x62b   : > { %v3266_v42 = vsel %vm1904_vm9, %v7690_v23, 0.0 }
 0x62c   : > { %5012 = vpow2.f32 %v3201_v15  ;;  %3267 = vadd.xlane.f32.xlu2 %v3266_v42  ;;  %v3197_v15 = vmul.f32 1.442695, %v3163_v9  ;;  %v2907_v42 = vpop.f32.mrf.mxu2 }
 0x62d   : > { %v2908_v9 = vadd.f32 %v2907_v42, %v7492_v37 }
 0x62f   : > { %v3082_v35 = vpop.xlane.xlu0 %3081 }
 0x630   : > { %v3166_v27 = vsub.f32 %v7572_v45, %v3082_v35  ;;  %v2905_v35 = vadd.f32 %v2904_v24, %v7462_v19  ;;  %v2820_v24 = vpop.f32.mrf.mxu1 }
 0x631   : > { %v2821_v42 = vadd.f32 %v2820_v24, %v7605_v8 }
 0x632   : > { %v7695_v34 = vpop.eup %5012  ;;  %v3203_v29 = vmul.f32 1.442695, %v3166_v27 }
 0x633   : > { %v3269_v38 = vsel %vm1904_vm9, %v7695_v34, 0.0 }
 0x634   : > { %5014 = vpow2.f32 %v3203_v29  ;;  %3270 = vadd.xlane.f32.xlu2 %v3269_v38  ;;  %v5149_v29 = vld [vmem:[%s8369_s1 + $0x80] sm:$0xff]  ;;  %v2910_v5 = vpop.f32.mrf.mxu2 }
 0x635   : > { %5016 = vpow2.f32 %v3197_v15  ;;  %v7710_v38 = vadd.f32 %v5149_v29, %v2905_v35  ;;  %v5150_v35 = vld [vmem:[%s8369_s1 + $0x88] sm:$0xff] }
 0x636   : > { %v7724_v29 = vadd.f32 %v5150_v35, %v2908_v9  ;;  %v5151_v9 = vld [vmem:[%s8369_s1 + $0x78] sm:$0xff]  ;;  %5018 = vpow2.f32 %v3213_v6 }
 0x637   : > { %v7700_v12 = vpop.xlane.xlu2 %3084  ;;  %v3113_v41 = vsel %vm1904_vm9, %v7710_v38, -inf  ;;  %v7734_v35 = vadd.f32 %v5151_v9, %v2821_v42  ;;  %v5153_v6 = vld [vmem:[%s8369_s1 + $0x98] sm:$0xff] }
 0x638   : > { %v3116_v31 = vsel %vm1904_vm9, %v7724_v29, -inf }
 0x639   : > { %v3110_v20 = vsel %vm1904_vm9, %v7734_v35, -inf }
 0x63a   : > { %v7702_v50 = vpop.eup %5014 }
 0x63b   : > { %v3272_v45 = vsel %vm1904_vm9, %v7702_v50, 0.0  ;;  %v7714_v11 = vpop.eup %5016 }
 0x63c   : > { %3273 = vadd.xlane.f32.xlu2 %v3272_v45  ;;  %v3263_v45 = vsel %vm1904_vm9, %v7714_v11, 0.0  ;;  %v2913_v7 = vpop.f32.mrf.mxu2  ;;  %v7747_v42 = vpop.eup %5018 }
 0x63f   : > { %v3103_v27 = vpop.xlane.xlu2 %3102 }
 0x640   : > { %v7712_v54 = vpop.xlane.xlu1 %3087 }
 0x644   : > { %3114 = vmax.xlane.f32.xlu2 %v3113_v41  ;;  %v2911_v41 = vadd.f32 %v2910_v5, %v7509_v16  ;;  %v3094_v5 = vpop.xlane.xlu0 %3093 }
 0x647   : > { %v4748_v15 = vpop.permute.xlu2 %4747 }
 0x648   : > { %v4749_v4 = vunpack.i.l.bf16 %v4748_v15  ;;  %3264 = vadd.xlane.f32.xlu1 %v3263_v45  ;;  %v4750_v14 = vunpack.i.h.bf16 %v4748_v15  ;;  %v3100_v58 = vpop.xlane.xlu1 %3099  ;;  %v2914_v15 = vadd.f32 %v2913_v7, %v7527_v56  ;;  %v3287_v7 = vsel %vm1904_vm9, %v7747_v42, 0.0 }
 0x64a   : > { %3562 = vmatpush.msrb.mxu1 %v4749_v4  ;;  %v5152_v4 = vld [vmem:[%s8369_s1 + $0x90] sm:$0xff] }
 0x64b   : > { %v7739_v24 = vadd.f32 %v5152_v4, %v2911_v41  ;;  %v7752_v41 = vadd.f32 %v5153_v6, %v2914_v15  ;;  %v8539_v6 = vld [vmem:[#allocation36_spill] sm:$0xff] }
 0x64c   : > { %3563 = vmatpush.msrb.mxu1 %v4750_v14  ;;  %3117 = vmax.xlane.f32.xlu2 %v3116_v31  ;;  %v3172_v14 = vsub.f32 %v7637_v28, %v3100_v58  ;;  %v3173_v28 = vsub.f32 %v7612_v43, %v3103_v27  ;;  %v2916_v58 = vpop.f32.mrf.mxu2  ;;  %v3106_v36 = vpop.xlane.xlu0 %3105  ;;  %v5154_v27 = vld [vmem:[%s8369_s1 + $0xa0] sm:$0xff] }
 0x64d   : > { %v3119_v31 = vsel %vm1904_vm9, %v7739_v24, -inf }
 0x64e   : > { %v3215_v45 = vmul.f32 1.442695, %v3172_v14  ;;  %v2917_v14 = vadd.f32 %v2916_v58, %v7550_v10 }
 0x650   : > { %5020 = vpow2.f32 %v3215_v45  ;;  %v3109_v9 = vpop.xlane.xlu1 %3108  ;;  %v7766_v45 = vadd.f32 %v5154_v27, %v2917_v14  ;;  %v3168_v27 = vsub.f32 %v7623_v22, %v7712_v54  ;;  %v8540_v22 = vld [vmem:[#allocation34_spill] sm:$0xff] }
 0x651   : > { %v3175_v4 = vsub.f32 %v7645_v51, %v3109_v9  ;;  %v3174_v51 = vsub.f32 %v7617_v52, %v3106_v36 }
 0x652   : > { %3111 = vmax.xlane.f32.xlu0 %v3110_v20  ;;  %v3217_v20 = vmul.f32 1.442695, %v3173_v28  ;;  %v3125_v58 = vsel %vm1904_vm9, %v7766_v45, -inf }
 0x653   : > { %v3221_v43 = vmul.f32 1.442695, %v3175_v4  ;;  %v3219_v9 = vmul.f32 1.442695, %v3174_v51  ;;  %v4766_v51 = vpack.i.bf16 %v6339_v3, %v6377_v21 }
 0x654   : > { %3120 = vmax.xlane.f32.xlu2 %v3119_v31  ;;  %v3122_v31 = vsel %vm1904_vm9, %v7752_v41, -inf  ;;  %5022 = vpow2.f32 %v3217_v20 }
 0x655   : > { %5024 = vpow2.f32 %v3221_v43 }
 0x656   : > { %v7761_v15 = vpop.eup %5020  ;;  %5026 = vpow2.f32 %v3219_v9 }
 0x657   : > { %v3290_v28 = vsel %vm1904_vm9, %v7761_v15, 0.0 }
 0x65a   : > { %3288 = vadd.xlane.f32.xlu0 %v3287_v7  ;;  %v7775_v7 = vpop.eup %5022 }
 0x65b   : > { %v7777_v4 = vpop.eup %5024  ;;  %v3293_v36 = vsel %vm1904_vm9, %v7775_v7, 0.0 }
 0x65c   : > { %3123 = vmax.xlane.f32.xlu2 %v3122_v31  ;;  %v3299_v52 = vsel %vm1904_vm9, %v7777_v4, 0.0  ;;  %v7783_v14 = vpop.eup %5026  ;;  %v3167_v31 = vsub.f32 %v7594_v39, %v7700_v12 }
 0x65d   : > { %v3296_v20 = vsel %vm1904_vm9, %v7783_v14, 0.0 }
 0x65e   : > { %v3205_v43 = vmul.f32 1.442695, %v3167_v31  ;;  %v8541_v31 = vld [vmem:[#allocation22_spill] sm:$0xff] }
 0x660   : > { %5028 = vpow2.f32 %v3205_v43 }
 0x661   : > { %4762 = vrot.lane.b32.xlu1 %v8539_v6, %s5227_s26  ;;  %v3207_v6 = vmul.f32 1.442695, %v3168_v27 }
 0x662   : > { %3291 = vadd.xlane.f32.xlu0 %v3290_v28 }
 0x664   : > { %3126 = vmax.xlane.f32.xlu2 %v3125_v58  ;;  %v3170_v58 = vsub.f32 %v7588_v1, %v3094_v5 }
 0x666   : > { %v7794_v28 = vpop.eup %5028  ;;  %v3211_v12 = vmul.f32 1.442695, %v3170_v58 }
 0x667   : > { %v3275_v39 = vsel %vm1904_vm9, %v7794_v28, 0.0 }
 0x66a   : > { %3294 = vadd.xlane.f32.xlu0 %v3293_v36 }
 0x66c   : > { %3300 = vadd.xlane.f32.xlu2 %v3299_v52  ;;  %v2919_v52 = vpop.f32.mrf.mxu2 }
 0x672   : > { %3297 = vadd.xlane.f32.xlu0 %v3296_v20 }
 0x678   : > { %v3283_v5 = vpop.xlane.xlu1 %3282 }
 0x686   : > { %4767 = vrot.lane.b32.xlu0 %v4766_v51, %s5227_s26 }
 0x687   : > { %v3259_v9 = vpop.xlane.xlu0 %3258 }
 0x688   : > { %5030 = vrcp.f32 %v3259_v9 }
 0x689   : > { %5032 = vpow2.f32 %v3207_v6 }
 0x68b   : > { %3276 = vadd.xlane.f32.xlu1 %v3275_v39 }
 0x68e   : > { %v5031_v36 = vpop.eup %5030  ;;  %4777 = vrot.lane.b32.xlu0 %v8540_v22, %s5227_s26 }
 0x68f   : > { %v7801_v3 = vpop.eup %5032  ;;  %v3262_v21 = vpop.xlane.xlu2 %3261  ;;  %v3385_v54 = vmul.f32 %v5031_v36, %v7670_v53  ;;  %v2920_v53 = vadd.f32 %v2919_v52, %v7566_v48  ;;  %v5156_v52 = vld [vmem:[%s8369_s1 + $0xb0] sm:$0xff] }
 0x690   : > { %5034 = vrcp.f32 %v3262_v21  ;;  %v3278_v1 = vsel %vm1904_vm9, %v7801_v3, 0.0  ;;  %v4758_v58 = vpop.permute.xlu1 %4757 }
 0x691   : > { %5036 = vpow2.f32 %v3211_v12  ;;  %4527 = vmatmul.msk.f32.vlgmr.msrb.gmra.mxu0 %vm1904_vm9, %v3385_v54  ;;  %v5155_v12 = vld [vmem:[%s8369_s1 + $0xa8] sm:$0xff]  ;;  %v4759_v22 = vunpack.i.l.bf16 %v4758_v58  ;;  %v4760_v21 = vunpack.i.h.bf16 %v4758_v58 }
 0x692   : > { %v7819_v36 = vadd.f32 %v5155_v12, %v2920_v53 }
 0x693   : > { %3279 = vadd.xlane.f32.xlu1 %v3278_v1 }
 0x694   : > { %v3128_v1 = vsel %vm1904_vm9, %v7819_v36, -inf }
 0x696   : > { %v5035_v20 = vpop.eup %5034  ;;  %4782 = vrot.lane.b32.xlu0 %v8541_v31, %s5227_s26 }
 0x697   : > { %v7809_v43 = vpop.eup %5036  ;;  %v3386_v27 = vmul.f32 %v5035_v20, %v7676_v30  ;;  %v2922_v30 = vpop.f32.mrf.mxu2 }
 0x698   : > { %v3284_v6 = vsel %vm1904_vm9, %v7809_v43, 0.0  ;;  %v2923_v54 = vadd.f32 %v2922_v30, %v7583_v33 }
 0x699   : > { %4528 = vmatmul.msk.f32.gmra.mxu0 %vm1904_vm9, %v3386_v27 }
 0x69a   : > { %v4753_v51 = vpop.permute.xlu0 %4752  ;;  %v7827_v20 = vadd.f32 %v5156_v52, %v2923_v54  ;;  %v8542_v54 = vld [vmem:[#allocation11_spill] sm:$0xff] }
 0x69b   : > { %v4754_v9 = vunpack.i.l.bf16 %v4753_v51  ;;  %3285 = vadd.xlane.f32.xlu1 %v3284_v6  ;;  %v4755_v39 = vunpack.i.h.bf16 %v4753_v51  ;;  %v3009_v51 = vpop.f32.mrf.mxu3 }
 0x69c   : > { %v3131_v27 = vsel %vm1904_vm9, %v7827_v20, -inf  ;;  %v3010_v6 = vadd.f32 %v3009_v51, %v7462_v19 }
 0x69d   : > { %3564 = vmatpush.msrb.mxu1 %v4754_v9  ;;  %v5157_v9 = vld [vmem:[%s8369_s1 + $0xc0] sm:$0xff] }
 0x69e   : > { %v7835_v58 = vadd.f32 %v5157_v9, %v3010_v6 }
 0x69f   : > { %3565 = vmatpush.msrb.mxu1 %v4755_v39  ;;  %v3268_v31 = vpop.xlane.xlu2 %3267 }
 0x6a0   : > { %v3137_v30 = vsel %vm1904_vm9, %v7835_v58, -inf }
 0x6a1   : > { %3566 = vmatpush.msrb.mxu1 %v4759_v22 }
 0x6a3   : > { %3567 = vmatpush.msrb.mxu1 %v4760_v21  ;;  %3129 = vmax.xlane.f32.xlu1 %v3128_v1 }
 0x6a7   : > { %v3271_v53 = vpop.xlane.xlu2 %3270 }
 0x6ab   : > { %3132 = vmax.xlane.f32.xlu1 %v3131_v27 }
 0x6af   : > { %v3274_v39 = vpop.xlane.xlu2 %3273 }
 0x6b7   : > { %v3115_v19 = vpop.xlane.xlu2 %3114 }
 0x6b8   : > { %v3177_v51 = vsub.f32 %v7710_v38, %v3115_v19  ;;  %v2925_v19 = vpop.f32.mrf.mxu2 }
 0x6bb   : > { %v3265_v12 = vpop.xlane.xlu1 %3264 }
 0x6bc   : > { %5038 = vrcp.f32 %v3265_v12  ;;  %v3225_v12 = vmul.f32 1.442695, %v3177_v51 }
 0x6bd   : > { %5040 = vrcp.f32 %v3268_v31  ;;  %v3012_v31 = vpop.f32.mrf.mxu3 }
 0x6be   : > { %5042 = vrcp.f32 %v3271_v53 }
 0x6c0   : > { %3138 = vmax.xlane.f32.xlu0 %v3137_v30  ;;  %v3118_v30 = vpop.xlane.xlu2 %3117 }
 0x6c2   : > { %v5039_v22 = vpop.eup %5038 }
 0x6c3   : > { %v3387_v21 = vmul.f32 %v5039_v22, %v7714_v11  ;;  %v5041_v27 = vpop.eup %5040 }
 0x6c4   : > { %4772 = vrot.lane.b32.xlu1 %v8542_v54, %s5227_s26  ;;  %v3388_v9 = vmul.f32 %v5041_v27, %v7690_v23  ;;  %v5043_v11 = vpop.eup %5042 }
 0x6c5   : > { %v3112_v1 = vpop.xlane.xlu0 %3111  ;;  %4529 = vmatmul.msk.f32.gmra.mxu0 %vm1904_vm9, %v3387_v21  ;;  %v3389_v23 = vmul.f32 %v5043_v11, %v7695_v34 }
 0x6c6   : > { %v3176_v52 = vsub.f32 %v7734_v35, %v3112_v1  ;;  %v3015_v1 = vpop.f32.mrf.mxu3 }
 0x6c8   : > { %v3223_v6 = vmul.f32 1.442695, %v3176_v52 }
 0x6ca   : > { %5044 = vpow2.f32 %v3223_v6  ;;  %v2926_v6 = vadd.f32 %v2925_v19, %v7605_v8 }
 0x6cb   : > { %5046 = vrcp.f32 %v3283_v5 }
 0x6cc   : > { %5048 = vpow2.f32 %v3225_v12 }
 0x6cd   : > { %4530 = vmatmul.msk.f32.gmra.mxu0 %vm1904_vm9, %v3388_v9  ;;  %5050 = vrcp.f32 %v3274_v39  ;;  %v7851_v38 = vpop.xlane.xlu0 %3288  ;;  %v3178_v39 = vsub.f32 %v7724_v29, %v3118_v30  ;;  %v3121_v9 = vpop.xlane.xlu2 %3120 }
 0x6ce   : > { %v3018_v30 = vpop.f32.mrf.mxu3 }
 0x6cf   : > { %v3227_v11 = vmul.f32 1.442695, %v3178_v39 }
 0x6d0   : > { %v7847_v22 = vpop.eup %5044 }
 0x6d1   : > { %v3302_v35 = vsel %vm1904_vm9, %v7847_v22, 0.0  ;;  %v5047_v21 = vpop.eup %5046  ;;  %5052 = vpow2.f32 %v3227_v11 }
 0x6d2   : > { %3303 = vadd.xlane.f32.xlu2 %v3302_v35  ;;  %v7855_v5 = vpop.eup %5048  ;;  %v3393_v27 = vmul.f32 %v5047_v21, %v7662_v40  ;;  %v3179_v35 = vsub.f32 %v7739_v24, %v3121_v9  ;;  %v5158_v40 = vld [vmem:[%s8369_s1 + $0xb8] sm:$0xff]  ;;  %v5159_v9 = vld [vmem:[%s8369_s1 + $0xc8] sm:$0xff] }
 0x6d3   : > { %v4763_v53 = vpop.permute.xlu1 %4762  ;;  %v5051_v51 = vpop.eup %5050  ;;  %v3305_v34 = vsel %vm1904_vm9, %v7855_v5, 0.0  ;;  %v7870_v29 = vadd.f32 %v5158_v40, %v2926_v6 }
 0x6d4   : > { %v4764_v54 = vunpack.i.l.bf16 %v4763_v53  ;;  %v4765_v52 = vunpack.i.h.bf16 %v4763_v53  ;;  %v3390_v12 = vmul.f32 %v5051_v51, %v7702_v50 }
 0x6d5   : > { %4531 = vmatmul.msk.f32.gmra.mxu0 %vm1904_vm9, %v3389_v23  ;;  %v7865_v53 = vpop.xlane.xlu0 %3291  ;;  %v3229_v23 = vmul.f32 1.442695, %v3179_v35  ;;  %v3134_v21 = vsel %vm1904_vm9, %v7870_v29, -inf  ;;  %v3124_v50 = vpop.xlane.xlu2 %3123 }
 0x6d6   : > { %3568 = vmatpush.msrb.mxu1 %v4764_v54  ;;  %v3180_v19 = vsub.f32 %v7752_v41, %v3124_v50  ;;  %v3021_v39 = vpop.f32.mrf.mxu3 }
 0x6d7   : > { %5054 = vpow2.f32 %v3229_v23  ;;  %v7875_v24 = vpop.eup %5052 }
 0x6d8   : > { %3569 = vmatpush.msrb.mxu1 %v4765_v52  ;;  %v3013_v52 = vadd.f32 %v3012_v31, %v7492_v37  ;;  %v3231_v6 = vmul.f32 1.442695, %v3180_v19  ;;  %v5160_v31 = vld [vmem:[%s8369_s1 + $0xe0] sm:$0xff]  ;;  %v3016_v19 = vadd.f32 %v3015_v1, %v7509_v16 }
 0x6d9   : > { %4535 = vmatmul.msk.f32.vlgmr.msrb.gmra.mxu1 %vm1904_vm9, %v3393_v27  ;;  %v3308_v27 = vsel %vm1904_vm9, %v7875_v24, 0.0 }
 0x6da   : > { %3306 = vadd.xlane.f32.xlu2 %v3305_v34  ;;  %v7888_v34 = vadd.f32 %v5159_v9, %v3013_v52  ;;  %5056 = vpow2.f32 %v3231_v6  ;;  %v5161_v9 = vld [vmem:[%s8369_s1 + $0xd0] sm:$0xff] }
 0x6dc   : > { %v3140_v35 = vsel %vm1904_vm9, %v7888_v34, -inf }
 0x6dd   : > { %4532 = vmatmul.msk.f32.gmra.mxu0 %vm1904_vm9, %v3390_v12  ;;  %v7877_v54 = vpop.xlane.xlu0 %3294  ;;  %v7883_v51 = vpop.eup %5054  ;;  %v3022_v12 = vadd.f32 %v3021_v39, %v7550_v10 }
 0x6de   : > { %v3311_v41 = vsel %vm1904_vm9, %v7883_v51, 0.0  ;;  %v3127_v40 = vpop.xlane.xlu2 %3126 }
 0x6df   : > { %v7898_v11 = vadd.f32 %v5160_v31, %v3022_v12  ;;  %v7913_v12 = vadd.f32 %v5161_v9, %v3016_v19 }
 0x6e0   : > { %v7904_v23 = vpop.eup %5056 }
 0x6e1   : > { %v3149_v10 = vsel %vm1904_vm9, %v7898_v11, -inf  ;;  %v3143_v16 = vsel %vm1904_vm9, %v7913_v12, -inf }
 0x6e2   : > { %3135 = vmax.xlane.f32.xlu2 %v3134_v21  ;;  %v3181_v21 = vsub.f32 %v7766_v45, %v3127_v40  ;;  %v3019_v40 = vadd.f32 %v3018_v30, %v7527_v56 }
 0x6e4   : > { %v3233_v6 = vmul.f32 1.442695, %v3181_v21 }
 0x6e5   : > { %v7893_v37 = vpop.xlane.xlu0 %3297 }
 0x6ea   : > { %3309 = vadd.xlane.f32.xlu2 %v3308_v27  ;;  %v3314_v27 = vsel %vm1904_vm9, %v7904_v23, 0.0 }
 0x6ee   : > { %3312 = vadd.xlane.f32.xlu1 %v3311_v41 }
 0x6f2   : > { %3141 = vmax.xlane.f32.xlu2 %v3140_v35 }
 0x6f6   : > { %3150 = vmax.xlane.f32.xlu1 %v3149_v10 }
 0x6f8   : > { %v4768_v50 = vpop.permute.xlu0 %4767 }
 0x6f9   : > { %v4769_v52 = vunpack.i.l.bf16 %v4768_v50  ;;  %v4770_v39 = vunpack.i.h.bf16 %v4768_v50  ;;  %v5162_v50 = vld [vmem:[%s8369_s1 + $0xd8] sm:$0xff] }
 0x6fa   : > { %3315 = vadd.xlane.f32.xlu2 %v3314_v27  ;;  %v7927_v19 = vadd.f32 %v5162_v50, %v3019_v40  ;;  %v8543_v27 = vld [vmem:[#allocation10_spill] sm:$0xff] }
 0x6fb   : > { %3651 = vmatpush.msrb.mxu2 %v4769_v52 }
 0x6fc   : > { %v3146_v56 = vsel %vm1904_vm9, %v7927_v19, -inf }
 0x6fd   : > { %3652 = vmatpush.msrb.mxu2 %v4770_v39 }
 0x6fe   : > { %v3277_v41 = vpop.xlane.xlu1 %3276 }
 0x6ff   : > { %5058 = vrcp.f32 %v3277_v41 }
 0x700   : > { %5060 = vpow2.f32 %v3233_v6 }
 0x702   : > { %3144 = vmax.xlane.f32.xlu2 %v3143_v16 }
 0x705   : > { %v5059_v45 = vpop.eup %5058 }
 0x706   : > { %v7917_v1 = vpop.eup %5060  ;;  %v3391_v31 = vmul.f32 %v5059_v45, %v7794_v28  ;;  %v3280_v35 = vpop.xlane.xlu1 %3279 }
 0x707   : > { %5062 = vrcp.f32 %v3280_v35  ;;  %v3317_v10 = vsel %vm1904_vm9, %v7917_v1, 0.0  ;;  %v3024_v35 = vpop.f32.mrf.mxu3 }
 0x708   : > { %4533 = vmatmul.msk.f32.vlgmr.msrb.gmra.mxu3 %vm1904_vm9, %v3391_v31 }
 0x70a   : > { %3318 = vadd.xlane.f32.xlu2 %v3317_v10  ;;  %v3025_v10 = vadd.f32 %v3024_v35, %v7566_v48 }
 0x70d   : > { %v5063_v21 = vpop.eup %5062 }
 0x70e   : > { %v3286_v52 = vpop.xlane.xlu1 %3285  ;;  %v3392_v28 = vmul.f32 %v5063_v21, %v7801_v3  ;;  %v8544_v3 = vld [vmem:[#allocation27_spill] sm:$0xff]  ;;  %v3482_v50 = vpop.f32.mrf.mxu0 }
 0x70f   : > { %5064 = vrcp.f32 %v3286_v52  ;;  %4792 = vrot.lane.b32.xlu1 %v8543_v27, %s5227_s26 }
 0x710   : > { %4534 = vmatmul.msk.f32.gmra.mxu3 %vm1904_vm9, %v3392_v28  ;;  %5066 = vrcp.f32 %v7851_v38 }
 0x712   : > { %3147 = vmax.xlane.f32.xlu2 %v3146_v56  ;;  %v3301_v56 = vpop.xlane.xlu2 %3300 }
 0x715   : > { %v5065_v30 = vpop.eup %5064 }
 0x716   : > { %v3130_v39 = vpop.xlane.xlu1 %3129  ;;  %v3394_v6 = vmul.f32 %v5065_v30, %v7809_v43  ;;  %v5067_v16 = vpop.eup %5066  ;;  %v8545_v43 = vld [vmem:[#allocation37_spill] sm:$0xff] }
 0x717   : > { %v3182_v9 = vsub.f32 %v7819_v36, %v3130_v39  ;;  %4797 = vrot.lane.b32.xlu1 %v8544_v3, %s5227_s26  ;;  %v3395_v31 = vmul.f32 %v5067_v16, %v7747_v42  ;;  %v5163_v42 = vld [vmem:[%s8369_s1 + $0xe8] sm:$0xff]  ;;  %v4778_v30 = vpop.permute.xlu0 %4777  ;;  %v7972_v16 = vpop.f32.mrf.mxu0 }
 0x718   : > { %4536 = vmatmul.msk.f32.gmra.mxu1 %vm1904_vm9, %v3394_v6 }
 0x719   : > { %v3235_v41 = vmul.f32 1.442695, %v3182_v9 }
 0x71b   : > { %5068 = vpow2.f32 %v3235_v41 }
 0x71c   : > { %5070 = vrcp.f32 %v7865_v53 }
 0x71e   : > { %v3133_v45 = vpop.xlane.xlu1 %3132 }
 0x71f   : > { %v3183_v38 = vsub.f32 %v7827_v20, %v3133_v45  ;;  %4802 = vrot.lane.b32.xlu1 %v8545_v43, %s5227_s26  ;;  %v7956_v20 = vadd.f32 %v5163_v42, %v3025_v10  ;;  %v8546_v43 = vld [vmem:[#allocation15_spill] sm:$0xff] }
 0x720   : > { %4537 = vmatmul.msk.f32.gmra.mxu1 %vm1904_vm9, %v3395_v31  ;;  %v4780_v31 = vunpack.i.h.bf16 %v4778_v30 }
 0x721   : > { %v7947_v36 = vpop.eup %5068  ;;  %v3237_v40 = vmul.f32 1.442695, %v3183_v38  ;;  %v3152_v28 = vsel %vm1904_vm9, %v7956_v20, -inf }
 0x722   : > { %v3320_v21 = vsel %vm1904_vm9, %v7947_v36, 0.0  ;;  %v5071_v53 = vpop.eup %5070 }
 0x723   : > { %5072 = vpow2.f32 %v3237_v40  ;;  %3321 = vadd.xlane.f32.xlu0 %v3320_v21  ;;  %v3396_v52 = vmul.f32 %v5071_v53, %v7761_v15 }
 0x724   : > { %5074 = vrcp.f32 %v7877_v54 }
 0x725   : > { %5076 = vrcp.f32 %v7893_v37  ;;  %v4779_v37 = vunpack.i.l.bf16 %v4778_v30  ;;  %v3027_v30 = vpop.f32.mrf.mxu3 }
 0x726   : > { %5078 = vrcp.f32 %v3301_v56 }
 0x727   : > { %3805 = vrot.lane.b32.xlu1 %v3482_v50, %s5228_s15 }
 0x728   : > { %4538 = vmatmul.msk.f32.gmra.mxu1 %vm1904_vm9, %v3396_v52 }
 0x729   : > { %v7961_v48 = vpop.eup %5072 }
 0x72a   : > { %v3323_v54 = vsel %vm1904_vm9, %v7961_v48, 0.0  ;;  %v5075_v27 = vpop.eup %5074 }
 0x72b   : > { %3153 = vmax.xlane.f32.xlu0 %v3152_v28  ;;  %3324 = vadd.xlane.f32.xlu2 %v3323_v54  ;;  %v3397_v15 = vmul.f32 %v5075_v27, %v7775_v7  ;;  %v5077_v39 = vpop.eup %5076  ;;  %v4783_v7 = vpop.permute.xlu0 %4782 }
 0x72c   : > { %v3398_v9 = vmul.f32 %v5077_v39, %v7783_v14  ;;  %v5079_v45 = vpop.eup %5078  ;;  %v4784_v38 = vunpack.i.l.bf16 %v4783_v7  ;;  %v4785_v14 = vunpack.i.h.bf16 %v4783_v7 }
 0x72d   : > { %v3399_v35 = vmul.f32 %v5079_v45, %v7777_v4  ;;  %v3030_v7 = vpop.f32.mrf.mxu3 }
 0x730   : > { %4539 = vmatmul.msk.f32.gmra.mxu1 %vm1904_vm9, %v3397_v15 }
 0x733   : > { %v3139_v50 = vpop.xlane.xlu0 %3138 }
 0x734   : > { %v3185_v27 = vsub.f32 %v7835_v58, %v3139_v50  ;;  %v3935_v50 = vld [vmem:[%s8375_s7 + $0x10] sm:$0xff] }
 0x736   : > { %v4773_v6 = vpop.permute.xlu1 %4772  ;;  %v3241_v56 = vmul.f32 1.442695, %v3185_v27 }
 0x737   : > { %v4774_v3 = vunpack.i.l.bf16 %v4773_v6  ;;  %v4775_v41 = vunpack.i.h.bf16 %v4773_v6  ;;  %v3028_v6 = vadd.f32 %v3027_v30, %v7583_v33 }
 0x738   : > { %4540 = vmatmul.msk.f32.gmra.mxu1 %vm1904_vm9, %v3398_v9 }
 0x739   : > { %3653 = vmatpush.msrb.mxu2 %v4774_v3  ;;  %v5164_v3 = vld [vmem:[%s8369_s1 + $0xf0] sm:$0xff] }
 0x73b   : > { %3654 = vmatpush.msrb.mxu2 %v4775_v41  ;;  %v7995_v41 = vadd.f32 %v5164_v3, %v3028_v6 }
 0x73d   : > { %3655 = vmatpush.msrb.mxu2 %v4779_v37 }
 0x73f   : > { %4787 = vrot.lane.b32.xlu0 %v8546_v43, %s5227_s26  ;;  %3656 = vmatpush.msrb.mxu2 %v4780_v31  ;;  %v3155_v43 = vsel %vm1904_vm9, %v7995_v41, -inf }
 0x740   : > { %4541 = vmatmul.msk.f32.gmra.mxu1 %vm1904_vm9, %v3399_v35 }
 0x741   : > { %3657 = vmatpush.msrb.mxu2 %v4784_v38  ;;  %v3031_v38 = vadd.f32 %v3030_v7, %v7605_v8 }
 0x742   : > { %v3488_v40 = vpop.f32.mrf.mxu0 }
 0x743   : > { %3658 = vmatpush.msrb.mxu2 %v4785_v14  ;;  %3809 = vrot.lane.b32.xlu1 %v3488_v40, %s5228_s15 }
 0x745   : > { %v3304_v10 = vpop.xlane.xlu2 %3303 }
 0x746   : > { %5080 = vrcp.f32 %v3304_v10 }
 0x74c   : > { %v5081_v21 = vpop.eup %5080 }
 0x74d   : > { %v3307_v53 = vpop.xlane.xlu2 %3306  ;;  %v3400_v42 = vmul.f32 %v5081_v21, %v7847_v22 }
 0x74e   : > { %5082 = vrcp.f32 %v3307_v53 }
 0x74f   : > { %4542 = vmatmul.msk.f32.gmra.mxu1 %vm1904_vm9, %v3400_v42  ;;  %v3936_v42 = vld [vmem:[%s8375_s7 + $0x18] sm:$0xff] }
 0x750   : > { %4049 = vmatpush.msra.mxu0 %v3936_v42 }
 0x752   : > { %4050 = vmatpush.msra.mxu0 %v3935_v50 }
 0x754   : > { %v5083_v4 = vpop.eup %5082 }
 0x755   : > { %v3401_v52 = vmul.f32 %v5083_v4, %v7855_v5  ;;  %v3136_v28 = vpop.xlane.xlu2 %3135 }
 0x756   : > { %v3184_v54 = vsub.f32 %v7870_v29, %v3136_v28  ;;  %v3934_v28 = vld [vmem:[%s8375_s7 + $0x8] sm:$0xff] }
 0x757   : > { %4543 = vmatmul.msk.f32.vlgmr.msrb.gmra.mxu2 %vm1904_vm9, %v3401_v52  ;;  %4051 = vmatpush.msra.mxu0 %v3934_v28 }
 0x758   : > { %v3239_v15 = vmul.f32 1.442695, %v3184_v54  ;;  %v3491_v54 = vpop.f32.mrf.mxu0 }
 0x75a   : > { %5084 = vpow2.f32 %v3239_v15  ;;  %v3933_v15 = vld [vmem:[%s8375_s7] sm:$0xff] }
 0x75b   : > { %4052 = vmatpush.msra.mxu0 %v3933_v15 }
 0x75d   : > { %v3310_v39 = vpop.xlane.xlu2 %3309 }
 0x75e   : > { %5086 = vrcp.f32 %v3310_v39 }
 0x75f   : > { %5088 = vpow2.f32 %v3241_v56 }
 0x760   : > { %v7985_v22 = vpop.eup %5084  ;;  %v3494_v30 = vpop.f32.mrf.mxu0 }
 0x761   : > { %v3313_v9 = vpop.xlane.xlu1 %3312  ;;  %v3326_v5 = vsel %vm1904_vm9, %v7985_v22, 0.0 }
 0x762   : > { %3327 = vadd.xlane.f32.xlu2 %v3326_v5  ;;  %5090 = vrcp.f32 %v3313_v9 }
 0x764   : > { %v5087_v29 = vpop.eup %5086 }
 0x765   : > { %v7990_v58 = vpop.eup %5088  ;;  %v3142_v45 = vpop.xlane.xlu2 %3141  ;;  %v3402_v37 = vmul.f32 %v5087_v29, %v7875_v24  ;;  %v5165_v24 = vld [vmem:[%s8369_s1 + $0xf8] sm:$0xff] }
 0x766   : > { %v3186_v33 = vsub.f32 %v7888_v34, %v3142_v45  ;;  %v3329_v35 = vsel %vm1904_vm9, %v7990_v58, 0.0  ;;  %v8008_v34 = vadd.f32 %v5165_v24, %v3031_v38 }
 0x767   : > { %4544 = vmatmul.msk.f32.gmra.mxu2 %vm1904_vm9, %v3402_v37 }
 0x768   : > { %v3243_v31 = vmul.f32 1.442695, %v3186_v33  ;;  %v5091_v14 = vpop.eup %5090  ;;  %v3158_v21 = vsel %vm1904_vm9, %v8008_v34, -inf  ;;  %v3497_v29 = vpop.f32.mrf.mxu0 }
 0x769   : > { %3330 = vadd.xlane.f32.xlu0 %v3329_v35  ;;  %v3403_v10 = vmul.f32 %v5091_v14, %v7883_v51  ;;  %v3151_v27 = vpop.xlane.xlu1 %3150 }
 0x76a   : > { %5092 = vpow2.f32 %v3243_v31  ;;  %3156 = vmax.xlane.f32.xlu2 %v3155_v43 }
 0x76d   : > { %v3316_v40 = vpop.xlane.xlu2 %3315 }
 0x76e   : > { %5094 = vrcp.f32 %v3316_v40 }
 0x76f   : > { %4545 = vmatmul.msk.f32.gmra.mxu2 %vm1904_vm9, %v3403_v10  ;;  %v3571_v10 = vpop.f32.mrf.mxu1 }
 0x770   : > { %v8012_v8 = vpop.eup %5092 }
 0x771   : > { %v3332_v53 = vsel %vm1904_vm9, %v8012_v8, 0.0 }
 0x772   : > { %3159 = vmax.xlane.f32.xlu2 %v3158_v21  ;;  %3333 = vadd.xlane.f32.xlu1 %v3332_v53 }
 0x774   : > { %v5095_v4 = vpop.eup %5094 }
 0x775   : > { %v3145_v51 = vpop.xlane.xlu2 %3144  ;;  %v3404_v52 = vmul.f32 %v5095_v4, %v7904_v23 }
 0x776   : > { %v3187_v35 = vsub.f32 %v7913_v12, %v3145_v51  ;;  %v3189_v12 = vsub.f32 %v7898_v11, %v3151_v27 }
 0x777   : > { %4546 = vmatmul.msk.f32.gmra.mxu2 %vm1904_vm9, %v3404_v52 }
 0x778   : > { %v3245_v14 = vmul.f32 1.442695, %v3187_v35 }
 0x77d   : > { %v3319_v56 = vpop.xlane.xlu2 %3318  ;;  %3811 = vrot.lane.b32.xlu0 %v3491_v54, %s5228_s15 }
 0x77e   : > { %5096 = vrcp.f32 %v3319_v56 }
 0x781   : > { %v4793_v23 = vpop.permute.xlu1 %4792 }
 0x782   : > { %v4794_v52 = vunpack.i.l.bf16 %v4793_v23  ;;  %v4795_v11 = vunpack.i.h.bf16 %v4793_v23 }
 0x784   : > { %v5097_v39 = vpop.eup %5096 }
 0x785   : > { %3813 = vrot.lane.b32.xlu0 %v3494_v30, %s5228_s15  ;;  %v3405_v6 = vmul.f32 %v5097_v39, %v7917_v1  ;;  %v3148_v45 = vpop.xlane.xlu2 %3147 }
 0x787   : > { %4547 = vmatmul.msk.f32.gmra.mxu2 %vm1904_vm9, %v3405_v6 }
 0x789   : > { %v4798_v9 = vpop.permute.xlu1 %4797 }
 0x78a   : > { %3807 = vrot.lane.b32.xlu2 %v7972_v16, %s5228_s15  ;;  %v4799_v27 = vunpack.i.l.bf16 %v4798_v9  ;;  %v4800_v30 = vunpack.i.h.bf16 %v4798_v9 }
 0x78b   : > { %v3500_v5 = vpop.f32.mrf.mxu3 }
 0x78c   : > { %3817 = vrot.lane.b32.xlu1 %v3500_v5, %s5228_s15 }
 0x78d   : > { %3815 = vrot.lane.b32.xlu0 %v3497_v29, %s5228_s15 }
 0x791   : > { %v4803_v3 = vpop.permute.xlu1 %4802 }
 0x792   : > { %v4804_v39 = vunpack.i.l.bf16 %v4803_v3  ;;  %v4805_v5 = vunpack.i.h.bf16 %v4803_v3 }
 0x795   : > { %v3574_v42 = vpop.f32.mrf.mxu1 }
 0x796   : > { %v3322_v37 = vpop.xlane.xlu0 %3321 }
 0x797   : > { %5098 = vrcp.f32 %v3322_v37 }
 0x799   : > { %v3806_v7 = vpop.permute.xlu1 %3805 }
 0x79a   : > { %v3901_v1 = vsel %vm1507_vm8, %v7500_v44, %v3806_v7  ;;  %v3188_v44 = vsub.f32 %v7927_v19, %v3148_v45  ;;  %v3249_v19 = vmul.f32 1.442695, %v3189_v12 }
 0x79b   : > { %4559 = vmatmul.msk.f32.vlgmr.msra.gmra.mxu0 %vm434_vm0, %v3901_v1 }
 0x79d   : > { %v5099_v33 = vpop.eup %5098  ;;  %v8061_v15 = vpop.f32.mrf.mxu1 }
 0x79e   : > { %v3325_v31 = vpop.xlane.xlu2 %3324  ;;  %v3406_v16 = vmul.f32 %v5099_v33, %v7947_v36  ;;  %v3154_v38 = vpop.xlane.xlu0 %3153  ;;  %v3247_v36 = vmul.f32 1.442695, %v3188_v44 }
 0x79f   : > { %5100 = vrcp.f32 %v3325_v31  ;;  %v3190_v24 = vsub.f32 %v7956_v20, %v3154_v38  ;;  %v3503_v38 = vpop.f32.mrf.mxu3 }
 0x7a0   : > { %4548 = vmatmul.msk.f32.gmra.mxu2 %vm1904_vm9, %v3406_v16  ;;  %5102 = vpow2.f32 %v3245_v14 }
 0x7a1   : > { %v3251_v21 = vmul.f32 1.442695, %v3190_v24 }
 0x7a3   : > { %5104 = vpow2.f32 %v3251_v21 }
 0x7a4   : > { %5106 = vpow2.f32 %v3247_v36 }
 0x7a5   : > { %v5101_v43 = vpop.eup %5100  ;;  %5108 = vpow2.f32 %v3249_v19  ;;  %v3580_v29 = vpop.f32.mrf.mxu1 }
 0x7a6   : > { %v3407_v40 = vmul.f32 %v5101_v43, %v7961_v48  ;;  %v8050_v53 = vpop.eup %5102 }
 0x7a7   : > { %v3335_v20 = vsel %vm1904_vm9, %v8050_v53, 0.0 }
 0x7a8   : > { %4549 = vmatmul.msk.f32.gmra.mxu2 %vm1904_vm9, %v3407_v40 }
 0x7a9   : > { %v8055_v48 = vpop.eup %5104 }
 0x7aa   : > { %v3344_v28 = vsel %vm1904_vm9, %v8055_v48, 0.0  ;;  %v8059_v54 = vpop.eup %5106 }
 0x7ab   : > { %v3338_v56 = vsel %vm1904_vm9, %v8059_v54, 0.0  ;;  %v8065_v6 = vpop.eup %5108 }
 0x7ac   : > { %v3341_v23 = vsel %vm1904_vm9, %v8065_v6, 0.0 }
 0x7ad   : > { %v3583_v45 = vpop.f32.mrf.mxu1 }
 0x7b1   : > { %v4788_v4 = vpop.permute.xlu0 %4787 }
 0x7b2   : > { %v4789_v51 = vunpack.i.l.bf16 %v4788_v4  ;;  %v4790_v50 = vunpack.i.h.bf16 %v4788_v4 }
 0x7b3   : > { %3336 = vadd.xlane.f32.xlu2 %v3335_v20 }
 0x7b4   : > { %3740 = vmatpush.msra.mxu3 %v4789_v51 }
 0x7b5   : > { %v8071_v9 = vpop.f32.mrf.mxu1  ;;  %v3810_v1 = vpop.permute.xlu1 %3809 }
 0x7b6   : > { %3741 = vmatpush.msra.mxu3 %v4790_v50  ;;  %v3903_v51 = vsel %vm1507_vm8, %v7540_v2, %v3810_v1 }
 0x7b7   : > { %3345 = vadd.xlane.f32.xlu0 %v3344_v28 }
 0x7b8   : > { %3742 = vmatpush.msra.mxu3 %v4794_v52 }
 0x7ba   : > { %3743 = vmatpush.msra.mxu3 %v4795_v11 }
 0x7bb   : > { %3339 = vadd.xlane.f32.xlu2 %v3338_v56  ;;  %v8118_v56 = vld [vmem:[%s8376_s8] ss:$0 sm:$0xff] }
 0x7bc   : > { %3744 = vmatpush.msra.mxu3 %v4799_v27 }
 0x7bd   : > { %v3589_v43 = vpop.f32.mrf.mxu1 }
 0x7be   : > { %3745 = vmatpush.msra.mxu3 %v4800_v30 }
 0x7c0   : > { %3746 = vmatpush.msra.mxu3 %v4804_v39 }
 0x7c2   : > { %3747 = vmatpush.msra.mxu3 %v4805_v5 }
 0x7c3   : > { %3342 = vadd.xlane.f32.xlu2 %v3341_v23 }
 0x7cb   : > { %3823 = vrot.lane.b32.xlu0 %v3574_v42, %s5228_s15 }
 0x7cc   : > { %v3592_v21 = vpop.f32.mrf.mxu1 }
 0x7d3   : > { %3827 = vrot.lane.b32.xlu0 %v3580_v29, %s5228_s15 }
 0x7d5   : > { %v3328_v37 = vpop.xlane.xlu2 %3327 }
 0x7d6   : > { %5110 = vrcp.f32 %v3328_v37 }
 0x7da   : > { %v3660_v44 = vpop.f32.mrf.mxu2 }
 0x7db   : > { %3821 = vrot.lane.b32.xlu2 %v3571_v10, %s5228_s15  ;;  %3829 = vrot.lane.b32.xlu0 %v3583_v45, %s5228_s15 }
 0x7dc   : > { %v5111_v3 = vpop.eup %5110  ;;  %v3331_v7 = vpop.xlane.xlu0 %3330 }
 0x7dd   : > { %5112 = vrcp.f32 %v3331_v7  ;;  %v3157_v33 = vpop.xlane.xlu2 %3156  ;;  %v3408_v31 = vmul.f32 %v5111_v3, %v7985_v22 }
 0x7de   : > { %v3191_v16 = vsub.f32 %v7995_v41, %v3157_v33 }
 0x7df   : > { %4550 = vmatmul.msk.f32.gmra.mxu2 %vm1904_vm9, %v3408_v31 }
 0x7e0   : > { %v3253_v35 = vmul.f32 1.442695, %v3191_v16 }
 0x7e2   : > { %5114 = vpow2.f32 %v3253_v35 }
 0x7e3   : > { %v5113_v14 = vpop.eup %5112  ;;  %3819 = vrot.lane.b32.xlu2 %v3503_v38, %s5228_s15  ;;  %3833 = vrot.lane.b32.xlu0 %v3589_v43, %s5228_s15 }
 0x7e4   : > { %v3409_v24 = vmul.f32 %v5113_v14, %v7990_v58 }
 0x7e5   : > { %v3334_v40 = vpop.xlane.xlu1 %3333  ;;  %v3160_v10 = vpop.xlane.xlu2 %3159 }
 0x7e6   : > { %5116 = vrcp.f32 %v3334_v40  ;;  %4551 = vmatmul.msk.f32.vlgmr.msra.gmra.mxu3 %vm1904_vm9, %v3409_v24  ;;  %v3192_v19 = vsub.f32 %v8008_v34, %v3160_v10 }
 0x7e8   : > { %v8082_v22 = vpop.eup %5114 }
 0x7e9   : > { %v3347_v41 = vsel %vm1904_vm9, %v8082_v22, 0.0 }
 0x7ea   : > { %3348 = vadd.xlane.f32.xlu1 %v3347_v41  ;;  %v3663_v58 = vpop.f32.mrf.mxu2 }
 0x7eb   : > { %3835 = vrot.lane.b32.xlu0 %v3592_v21, %s5228_s15  ;;  %v5167_v21 = vld [vmem:[%s5305_s16 + $0x8] sm:$0xff] }
 0x7ec   : > { %v5117_v36 = vpop.eup %5116 }
 0x7ed   : > { %v3808_v42 = vpop.permute.xlu2 %3807  ;;  %v3410_v12 = vmul.f32 %v5117_v36, %v8012_v8  ;;  %v3255_v8 = vmul.f32 1.442695, %v3192_v19 }
 0x7ee   : > { %v3902_v4 = vsel %vm1507_vm8, %v7517_v55, %v3808_v42 }
 0x7ef   : > { %4552 = vmatmul.msk.f32.gmra.mxu3 %vm1904_vm9, %v3410_v12  ;;  %4560 = vmatmul.msk.f32.gmra.mxu0 %vm434_vm0, %v3902_v4  ;;  %v3812_v20 = vpop.permute.xlu0 %3811  ;;  %5118 = vpow2.f32 %v3255_v8 }
 0x7f0   : > { %v3904_v52 = vsel %vm1507_vm8, %v7561_v59, %v3812_v20 }
 0x7f2   : > { %v3666_v50 = vpop.f32.mrf.mxu2 }
 0x7f3   : > { %3839 = vrot.lane.b32.xlu0 %v3663_v58, %s5228_s15 }
 0x7f5   : > { %v8105_v11 = vpop.eup %5118 }
 0x7f6   : > { %v3350_v59 = vsel %vm1904_vm9, %v8105_v11, 0.0 }
 0x7f7   : > { %4561 = vmatmul.msk.f32.gmra.mxu0 %vm434_vm0, %v3903_v51  ;;  %v3814_v55 = vpop.permute.xlu0 %3813  ;;  %v5168_v51 = vld [vmem:[%s5305_s16 + $0x10] sm:$0xff] }
 0x7f8   : > { %v3905_v2 = vsel %vm1507_vm8, %v7578_v47, %v3814_v55  ;;  %v5169_v55 = vld [vmem:[%s5305_s16 + $0x18] sm:$0xff] }
 0x7fa   : > { %v3669_v28 = vpop.f32.mrf.mxu2 }
 0x7fe   : > { %v3818_v47 = vpop.permute.xlu1 %3817 }
 0x7ff   : > { %4562 = vmatmul.msk.f32.gmra.mxu0 %vm434_vm0, %v3904_v52  ;;  %v3816_v27 = vpop.permute.xlu0 %3815  ;;  %v3907_v30 = vsel %vm1507_vm8, %v7632_v18, %v3818_v47 }
 0x803   : > { %3825 = vrot.lane.b32.xlu1 %v8061_v15, %s5228_s15  ;;  %v3906_v15 = vsel %vm1507_vm8, %v7607_v61, %v3816_v27  ;;  %v5166_v61 = vld [vmem:[%s5305_s16] sm:$0xff] }
 0x807   : > { %4563 = vmatmul.msk.f32.gmra.mxu0 %vm434_vm0, %v3905_v2 }
 0x80a   : > { %v3672_v34 = vpop.f32.mrf.mxu2 }
 0x80b   : > { %3845 = vrot.lane.b32.xlu0 %v3672_v34, %s5228_s15  ;;  %3837 = vrot.lane.b32.xlu1 %v3660_v44, %s5228_s15 }
 0x80c   : > { %3351 = vadd.xlane.f32.xlu2 %v3350_v59 }
 0x80f   : > { %4564 = vmatmul.msk.f32.gmra.mxu0 %vm434_vm0, %v3906_v15 }
 0x813   : > { %3841 = vrot.lane.b32.xlu1 %v3666_v50, %s5228_s15 }
 0x817   : > { %4565 = vmatmul.msk.f32.gmra.mxu0 %vm434_vm0, %v3907_v30 }
 0x818   : > { %v4054_v39 = vpop.f32.mrf.mxu0 }
 0x819   : > { %v4055_v5 = vadd.f32 %v8118_v56, %v4054_v39 }
 0x81b   : > { %v4150_v23 = vadd.f32 %v5166_v61, %v4055_v5 }
 0x81d   : > { %4182 = vst.msk [vmem:[%s8129_s20] sm:$0xff] %vm434_vm0, %v4150_v23 }
 0x823   : > { %v3675_v29 = vpop.f32.mrf.mxu2 }
 0x824   : > { %3831 = vrot.lane.b32.xlu2 %v8071_v9, %s5228_s15  ;;  %3847 = vrot.lane.b32.xlu1 %v3675_v29, %s5228_s15 }
 0x826   : > { %v3337_v18 = vpop.xlane.xlu2 %3336 }
 0x827   : > { %5120 = vrcp.f32 %v3337_v18 }
 0x82a   : > { %v3346_v31 = vpop.xlane.xlu0 %3345 }
 0x82b   : > { %v3678_v7 = vpop.f32.mrf.mxu2 }
 0x82c   : > { %3843 = vrot.lane.b32.xlu2 %v3669_v28, %s5228_s15 }
 0x82d   : > { %v5121_v45 = vpop.eup %5120 }
 0x82e   : > { %v3340_v37 = vpop.xlane.xlu2 %3339  ;;  %v3411_v3 = vmul.f32 %v5121_v45, %v8050_v53 }
 0x82f   : > { %5122 = vrcp.f32 %v3340_v37 }
 0x830   : > { %4553 = vmatmul.msk.f32.gmra.mxu3 %vm1904_vm9, %v3411_v3  ;;  %v5172_v3 = vld [vmem:[%s5305_s16 + $0x30] sm:$0xff] }
 0x834   : > { %3849 = vrot.lane.b32.xlu2 %v3678_v7, %s5228_s15 }
 0x835   : > { %v5123_v1 = vpop.eup %5122 }
 0x836   : > { %v3343_v33 = vpop.xlane.xlu2 %3342  ;;  %v3412_v9 = vmul.f32 %v5123_v1, %v8059_v54 }
 0x837   : > { %5124 = vrcp.f32 %v3343_v33 }
 0x838   : > { %4554 = vmatmul.msk.f32.gmra.mxu3 %vm1904_vm9, %v3412_v9  ;;  %5126 = vrcp.f32 %v3346_v31 }
 0x83d   : > { %v5125_v16 = vpop.eup %5124 }
 0x83e   : > { %v3822_v35 = vpop.permute.xlu2 %3821  ;;  %v3413_v38 = vmul.f32 %v5125_v16, %v8065_v6  ;;  %v5127_v53 = vpop.eup %5126 }
 0x83f   : > { %v3414_v14 = vmul.f32 %v5127_v53, %v8055_v48  ;;  %v3909_v54 = vsel %vm1507_vm8, %v7410_v63, %v3822_v35  ;;  %v3824_v6 = vpop.permute.xlu0 %3823  ;;  %v8547_v53 = vld [vmem:[#allocation31_spill] sm:$0xff] }
 0x840   : > { %4555 = vmatmul.msk.f32.gmra.mxu3 %vm1904_vm9, %v3413_v38  ;;  %v3910_v40 = vsel %vm1507_vm8, %v7419_v62, %v3824_v6 }
 0x846   : > { %v3820_v43 = vpop.permute.xlu2 %3819 }
 0x847   : > { %v3908_v24 = vsel %vm1507_vm8, %v7647_v49, %v3820_v43  ;;  %v3828_v50 = vpop.permute.xlu0 %3827 }
 0x848   : > { %4556 = vmatmul.msk.f32.gmra.mxu3 %vm1904_vm9, %v3414_v14  ;;  %4566 = vmatmul.msk.f32.gmra.mxu0 %vm434_vm0, %v3908_v24  ;;  %v3912_v52 = vsel %vm1507_vm8, %v7431_v26, %v3828_v50  ;;  %v5170_v26 = vld [vmem:[%s5305_s16 + $0x20] sm:$0xff] }
 0x84f   : > { %v3830_v2 = vpop.permute.xlu0 %3829 }
 0x850   : > { %4567 = vmatmul.msk.f32.gmra.mxu0 %vm434_vm0, %v3909_v54  ;;  %v3913_v15 = vsel %vm1507_vm8, %v7440_v17, %v3830_v2  ;;  %v5171_v17 = vld [vmem:[%s5305_s16 + $0x28] sm:$0xff]  ;;  %v8548_v54 = vld [vmem:[#allocation20_spill] sm:$0xff] }
 0x857   : > { %v3834_v18 = vpop.permute.xlu0 %3833 }
 0x858   : > { %4568 = vmatmul.msk.f32.gmra.mxu0 %vm434_vm0, %v3910_v40  ;;  %v3915_v37 = vsel %vm1507_vm8, %v7456_v57, %v3834_v18  ;;  %v5173_v40 = vld [vmem:[%s5305_s16 + $0x38] sm:$0xff] }
 0x85d   : > { %v3349_v48 = vpop.xlane.xlu1 %3348 }
 0x85e   : > { %5128 = vrcp.f32 %v3349_v48 }
 0x862   : > { %v3681_v49 = vpop.f32.mrf.mxu2 }
 0x863   : > { %3851 = vrot.lane.b32.xlu0 %v3681_v49, %s5228_s15 }
 0x864   : > { %v5129_v10 = vpop.eup %5128 }
 0x865   : > { %v3415_v44 = vmul.f32 %v5129_v10, %v8082_v22 }
 0x867   : > { %4557 = vmatmul.msk.f32.gmra.mxu3 %vm1904_vm9, %v3415_v44 }
 0x869   : > { %v3749_v63 = vpop.f32.mrf.mxu3 }
 0x86a   : > { %3853 = vrot.lane.b32.xlu1 %v3749_v63, %s5228_s15  ;;  %v8549_v63 = vld [vmem:[#allocation9_spill] sm:$0xff] }
 0x86c   : > { %v4057_v41 = vpop.f32.mrf.mxu0 }
 0x86d   : > { %v4058_v62 = vadd.f32 %v8118_v56, %v4057_v41 }
 0x86f   : > { %v4151_v36 = vadd.f32 %v5167_v21, %v4058_v62  ;;  %v5174_v21 = vld [vmem:[%s5305_s16 + $0x40] sm:$0xff] }
 0x871   : > { %4183 = vst.msk [vmem:[%s8129_s20 + $0x8] sm:$0xff] %vm434_vm0, %v4151_v36 }
 0x872   : > { %v3752_v42 = vpop.f32.mrf.mxu3 }
 0x873   : > { %3855 = vrot.lane.b32.xlu2 %v3752_v42, %s5228_s15 }
 0x874   : > { %v4060_v12 = vpop.f32.mrf.mxu0 }
 0x875   : > { %v4061_v22 = vadd.f32 %v8118_v56, %v4060_v12  ;;  %v3826_v58 = vpop.permute.xlu1 %3825 }
 0x876   : > { %v3911_v4 = vsel %vm1507_vm8, %v7424_v32, %v3826_v58 }
 0x877   : > { %v4152_v20 = vadd.f32 %v5168_v51, %v4061_v22  ;;  %4569 = vmatmul.msk.f32.gmra.mxu0 %vm434_vm0, %v3911_v4  ;;  %v8550_v22 = vld [vmem:[#allocation5_spill] sm:$0xff]  ;;  %v5175_v51 = vld [vmem:[%s5305_s16 + $0x48] sm:$0xff] }
 0x879   : > { %4184 = vst.msk [vmem:[%s8129_s20 + $0x10] sm:$0xff] %vm434_vm0, %v4152_v20 }
 0x87c   : > { %v4063_v19 = vpop.f32.mrf.mxu0 }
 0x87d   : > { %v4064_v8 = vadd.f32 %v8118_v56, %v4063_v19  ;;  %v3838_v33 = vpop.permute.xlu1 %3837  ;;  %v8551_v19 = vld [vmem:[#allocation17_spill] sm:$0xff] }
 0x87e   : > { %v3917_v9 = vsel %vm1507_vm8, %v7398_v60, %v3838_v33  ;;  %v5180_v33 = vld [vmem:[%s5305_s16 + $0x70] sm:$0xff] }
 0x87f   : > { %v4153_v28 = vadd.f32 %v5169_v55, %v4064_v8  ;;  %4570 = vmatmul.msk.f32.gmra.mxu0 %vm434_vm0, %v3912_v52  ;;  %v3352_v32 = vpop.xlane.xlu2 %3351  ;;  %v8552_v55 = vld [vmem:[#allocation7_spill] sm:$0xff] }
 0x880   : > { %5130 = vrcp.f32 %v3352_v32 }
 0x881   : > { %4185 = vst.msk [vmem:[%s8129_s20 + $0x18] sm:$0xff] %vm434_vm0, %v4153_v28 }
 0x884   : > { %v4066_v34 = vpop.f32.mrf.mxu0 }
 0x885   : > { %v4067_v27 = vadd.f32 %v8118_v56, %v4066_v34  ;;  %v3842_v16 = vpop.permute.xlu1 %3841  ;;  %v8553_v34 = vld [vmem:[#allocation13_spill] sm:$0xff] }
 0x886   : > { %v5131_v59 = vpop.eup %5130 }
 0x887   : > { %v4154_v47 = vadd.f32 %v5170_v26, %v4067_v27  ;;  %4571 = vmatmul.msk.f32.gmra.mxu0 %vm434_vm0, %v3913_v15  ;;  %v3416_v30 = vmul.f32 %v5131_v59, %v8105_v11  ;;  %v3832_v39 = vpop.permute.xlu2 %3831  ;;  %v5176_v26 = vld [vmem:[%s5305_s16 + $0x50] sm:$0xff] }
 0x888   : > { %v3914_v23 = vsel %vm1507_vm8, %v7449_v46, %v3832_v39  ;;  %v3836_v46 = vpop.permute.xlu0 %3835 }
 0x889   : > { %4186 = vst.msk [vmem:[%s8129_s20 + $0x20] sm:$0xff] %vm434_vm0, %v4154_v47  ;;  %4558 = vmatmul.msk.f32.gmra.mxu3 %vm1904_vm9, %v3416_v30  ;;  %v3916_v1 = vsel %vm1507_vm8, %v7475_v0, %v3836_v46  ;;  %v3919_v0 = vsel %vm1507_vm8, %v7412_v13, %v3842_v16  ;;  %v5181_v16 = vld [vmem:[%s5305_s16 + $0x78] sm:$0xff] }
 0x88c   : > { %v4069_v5 = vpop.f32.mrf.mxu0 }
 0x88d   : > { %v4070_v61 = vadd.f32 %v8118_v56, %v4069_v5  ;;  %v5177_v5 = vld [vmem:[%s5305_s16 + $0x58] sm:$0xff] }
 0x88f   : > { %v4155_v29 = vadd.f32 %v5171_v17, %v4070_v61  ;;  %4572 = vmatmul.msk.f32.gmra.mxu0 %vm434_vm0, %v3914_v23  ;;  %v3844_v60 = vpop.permute.xlu2 %3843 }
 0x890   : > { %v3840_v31 = vpop.permute.xlu0 %3839 }
 0x891   : > { %4187 = vst.msk [vmem:[%s8129_s20 + $0x28] sm:$0xff] %vm434_vm0, %v4155_v29  ;;  %v3918_v57 = vsel %vm1507_vm8, %v7405_v25, %v3840_v31  ;;  %v3920_v25 = vsel %vm1507_vm8, %v8547_v53, %v3844_v60  ;;  %v5178_v29 = vld [vmem:[%s5305_s16 + $0x60] sm:$0xff] }
 0x892   : > { %v5182_v53 = vld [vmem:[%s5305_s16 + $0x80] sm:$0xff] }
 0x894   : > { %v4072_v11 = vpop.f32.mrf.mxu0 }
 0x895   : > { %v4073_v45 = vadd.f32 %v8118_v56, %v4072_v11 }
 0x896   : > { %v3848_v49 = vpop.permute.xlu1 %3847 }
 0x897   : > { %v4156_v7 = vadd.f32 %v5172_v3, %v4073_v45  ;;  %4573 = vmatmul.msk.f32.gmra.mxu0 %vm434_vm0, %v3915_v37  ;;  %v3922_v41 = vsel %vm1507_vm8, %v8549_v63, %v3848_v49  ;;  %v3850_v42 = vpop.permute.xlu2 %3849  ;;  %v5179_v3 = vld [vmem:[%s5305_s16 + $0x68] sm:$0xff] }
 0x898   : > { %v3846_v43 = vpop.permute.xlu0 %3845  ;;  %v3923_v58 = vsel %vm1507_vm8, %v8550_v22, %v3850_v42 }
 0x899   : > { %4188 = vst.msk [vmem:[%s8129_s20 + $0x30] sm:$0xff] %vm434_vm0, %v4156_v7  ;;  %v3921_v13 = vsel %vm1507_vm8, %v8548_v54, %v3846_v43  ;;  %v8554_v43 = vld [vmem:[#allocation12_spill] sm:$0xff] }
 0x89f   : > { %4574 = vmatmul.msk.f32.gmra.mxu0 %vm434_vm0, %v3916_v1 }
 0x8a7   : > { %4575 = vmatmul.msk.f32.gmra.mxu0 %vm434_vm0, %v3917_v9 }
 0x8af   : > { %4576 = vmatmul.msk.f32.gmra.mxu0 %vm434_vm0, %v3918_v57 }
 0x8b3   : > { %v3755_v35 = vpop.f32.mrf.mxu3 }
 0x8b4   : > { %3857 = vrot.lane.b32.xlu0 %v3755_v35, %s5228_s15 }
 0x8b7   : > { %4577 = vmatmul.msk.f32.gmra.mxu0 %vm434_vm0, %v3919_v0 }
 0x8bb   : > { %v3758_v38 = vpop.f32.mrf.mxu3 }
 0x8bc   : > { %3859 = vrot.lane.b32.xlu1 %v3758_v38, %s5228_s15 }
 0x8bf   : > { %4578 = vmatmul.msk.f32.gmra.mxu0 %vm434_vm0, %v3920_v25 }
 0x8c3   : > { %v3761_v14 = vpop.f32.mrf.mxu3 }
 0x8c4   : > { %3861 = vrot.lane.b32.xlu2 %v3761_v14, %s5228_s15 }
 0x8c5   : > { %v4075_v24 = vpop.f32.mrf.mxu0 }
 0x8c6   : > { %v4076_v6 = vadd.f32 %v8118_v56, %v4075_v24 }
 0x8c7   : > { %4579 = vmatmul.msk.f32.gmra.mxu0 %vm434_vm0, %v3921_v13 }
 0x8c8   : > { %v4157_v48 = vadd.f32 %v5173_v40, %v4076_v6  ;;  %v5183_v6 = vld [vmem:[%s5305_s16 + $0x88] sm:$0xff] }
 0x8ca   : > { %4189 = vst.msk [vmem:[%s8129_s20 + $0x38] sm:$0xff] %vm434_vm0, %v4157_v48  ;;  %v8555_v48 = vld [vmem:[#allocation29_spill] sm:$0xff] }
 0x8cb   : > { %v3764_v10 = vpop.f32.mrf.mxu3 }
 0x8cc   : > { %3863 = vrot.lane.b32.xlu0 %v3764_v10, %s5228_s15 }
 0x8cd   : > { %v4078_v44 = vpop.f32.mrf.mxu0  ;;  %v3856_v2 = vpop.permute.xlu2 %3855 }
 0x8ce   : > { %v4079_v62 = vadd.f32 %v8118_v56, %v4078_v44  ;;  %v3926_v27 = vsel %vm1507_vm8, %v8553_v34, %v3856_v2 }
 0x8cf   : > { %4580 = vmatmul.msk.f32.gmra.mxu0 %vm434_vm0, %v3922_v41  ;;  %v8556_v41 = vld [vmem:[#allocation6_spill] sm:$0xff] }
 0x8d0   : > { %v4158_v36 = vadd.f32 %v5174_v21, %v4079_v62  ;;  %v5184_v21 = vld [vmem:[%s5305_s16 + $0x90] sm:$0xff] }
 0x8d2   : > { %4190 = vst.msk [vmem:[%s8129_s20 + $0x40] sm:$0xff] %vm434_vm0, %v4158_v36 }
 0x8d5   : > { %v4081_v12 = vpop.f32.mrf.mxu0  ;;  %v3852_v50 = vpop.permute.xlu0 %3851 }
 0x8d6   : > { %v4082_v4 = vadd.f32 %v8118_v56, %v4081_v12  ;;  %v3924_v8 = vsel %vm1507_vm8, %v8551_v19, %v3852_v50 }
 0x8d7   : > { %4581 = vmatmul.msk.f32.gmra.mxu0 %vm434_vm0, %v3923_v58  ;;  %v5185_v58 = vld [vmem:[%s5305_s16 + $0x98] sm:$0xff] }
 0x8d8   : > { %v4159_v20 = vadd.f32 %v5175_v51, %v4082_v4  ;;  %v8557_v51 = vld [vmem:[#allocation30_spill] sm:$0xff] }
 0x8da   : > { %4191 = vst.msk [vmem:[%s8129_s20 + $0x48] sm:$0xff] %vm434_vm0, %v4159_v20 }
 0x8dc   : > { %v3854_v52 = vpop.permute.xlu1 %3853 }
 0x8dd   : > { %v3925_v28 = vsel %vm1507_vm8, %v8552_v55, %v3854_v52 }
 0x8df   : > { %4582 = vmatmul.msk.f32.gmra.mxu0 %vm434_vm0, %v3924_v8  ;;  %v5186_v8 = vld [vmem:[%s5305_s16 + $0xa0] sm:$0xff] }
 0x8e7   : > { %4583 = vmatmul.msk.f32.gmra.mxu0 %vm434_vm0, %v3925_v28 }
 0x8ea   : > { %v3767_v32 = vpop.f32.mrf.mxu3 }
 0x8eb   : > { %3865 = vrot.lane.b32.xlu1 %v3767_v32, %s5228_s15  ;;  %v5187_v32 = vld [vmem:[%s5305_s16 + $0xa8] sm:$0xff] }
 0x8ef   : > { %4584 = vmatmul.msk.f32.gmra.mxu0 %vm434_vm0, %v3926_v27 }
 0x8f4   : > { %v4084_v59 = vpop.f32.mrf.mxu0 }
 0x8f5   : > { %v4085_v15 = vadd.f32 %v8118_v56, %v4084_v59  ;;  %v5188_v59 = vld [vmem:[%s5305_s16 + $0xb0] sm:$0xff] }
 0x8f7   : > { %v4160_v47 = vadd.f32 %v5176_v26, %v4085_v15 }
 0x8f9   : > { %4192 = vst.msk [vmem:[%s8129_s20 + $0x50] sm:$0xff] %vm434_vm0, %v4160_v47 }
 0x8fc   : > { %v4087_v30 = vpop.f32.mrf.mxu0 }
 0x8fd   : > { %v4088_v39 = vadd.f32 %v8118_v56, %v4087_v30 }
 0x8ff   : > { %v4161_v61 = vadd.f32 %v5177_v5, %v4088_v39  ;;  %v8558_v39 = vld [vmem:[#allocation24_spill] sm:$0xff] }
 0x901   : > { %4193 = vst.msk [vmem:[%s8129_s20 + $0x58] sm:$0xff] %vm434_vm0, %v4161_v61  ;;  %v5189_v61 = vld [vmem:[%s5305_s16 + $0xb8] sm:$0xff] }
 0x904   : > { %v4090_v23 = vpop.f32.mrf.mxu0 }
 0x905   : > { %v4091_v17 = vadd.f32 %v8118_v56, %v4090_v23 }
 0x907   : > { %v4162_v18 = vadd.f32 %v5178_v29, %v4091_v17 }
 0x909   : > { %4194 = vst.msk [vmem:[%s8129_s20 + $0x60] sm:$0xff] %vm434_vm0, %v4162_v18  ;;  %v5190_v18 = vld [vmem:[%s5305_s16 + $0xc0] sm:$0xff] }
 0x90c   : > { %v3770_v11 = vpop.f32.mrf.mxu3  ;;  %v4093_v45 = vpop.f32.mrf.mxu0 }
 0x90d   : > { %v4094_v37 = vadd.f32 %v8118_v56, %v4093_v45  ;;  %3867 = vrot.lane.b32.xlu2 %v3770_v11, %s5228_s15 }
 0x90f   : > { %v4163_v7 = vadd.f32 %v5179_v3, %v4094_v37  ;;  %v8559_v37 = vld [vmem:[#allocation32_spill] sm:$0xff] }
 0x911   : > { %4195 = vst.msk [vmem:[%s8129_s20 + $0x68] sm:$0xff] %vm434_vm0, %v4163_v7 }
 0x914   : > { %v4096_v46 = vpop.f32.mrf.mxu0 }
 0x915   : > { %v4097_v1 = vadd.f32 %v8118_v56, %v4096_v46 }
 0x917   : > { %v4164_v9 = vadd.f32 %v5180_v33, %v4097_v1  ;;  %v5191_v1 = vld [vmem:[%s5305_s16 + $0xc8] sm:$0xff] }
 0x919   : > { %4196 = vst.msk [vmem:[%s8129_s20 + $0x70] sm:$0xff] %vm434_vm0, %v4164_v9 }
 0x91c   : > { %v4099_v31 = vpop.f32.mrf.mxu0 }
 0x91d   : > { %v4100_v57 = vadd.f32 %v8118_v56, %v4099_v31 }
 0x91e   : > { %v3862_v10 = vpop.permute.xlu2 %3861 }
 0x91f   : > { %v4165_v35 = vadd.f32 %v5181_v16, %v4100_v57  ;;  %v3929_v62 = vsel %vm1507_vm8, %v8556_v41, %v3862_v10  ;;  %v5192_v57 = vld [vmem:[%s5305_s16 + $0xd0] sm:$0xff]  ;;  %v5197_v41 = vld [vmem:[%s5305_s16 + $0xf8] sm:$0xff] }
 0x921   : > { %4197 = vst.msk [vmem:[%s8129_s20 + $0x78] sm:$0xff] %vm434_vm0, %v4165_v35 }
 0x924   : > { %v4102_v0 = vpop.f32.mrf.mxu0 }
 0x925   : > { %v4103_v60 = vadd.f32 %v8118_v56, %v4102_v0 }
 0x926   : > { %v3858_v38 = vpop.permute.xlu0 %3857 }
 0x927   : > { %v4166_v25 = vadd.f32 %v5182_v53, %v4103_v60  ;;  %v3927_v14 = vsel %vm1507_vm8, %v8554_v43, %v3858_v38  ;;  %v5193_v60 = vld [vmem:[%s5305_s16 + $0xd8] sm:$0xff]  ;;  %v5194_v43 = vld [vmem:[%s5305_s16 + $0xe0] sm:$0xff] }
 0x928   : > { %4585 = vmatmul.msk.f32.gmra.mxu0 %vm434_vm0, %v3927_v14 }
 0x929   : > { %4198 = vst.msk [vmem:[%s8129_s20 + $0x80] sm:$0xff] %vm434_vm0, %v4166_v25 }
 0x92c   : > { %v4105_v24 = vpop.f32.mrf.mxu0 }
 0x92d   : > { %v4106_v54 = vadd.f32 %v8118_v56, %v4105_v24 }
 0x92e   : > { %v3860_v13 = vpop.permute.xlu1 %3859 }
 0x92f   : > { %v4167_v40 = vadd.f32 %v5183_v6, %v4106_v54  ;;  %v3928_v49 = vsel %vm1507_vm8, %v8555_v48, %v3860_v13  ;;  %v5195_v13 = vld [vmem:[%s5305_s16 + $0xe8] sm:$0xff] }
 0x930   : > { %4586 = vmatmul.msk.f32.gmra.mxu0 %vm434_vm0, %v3928_v49  ;;  %v5196_v49 = vld [vmem:[%s5305_s16 + $0xf0] sm:$0xff] }
 0x931   : > { %4199 = vst.msk [vmem:[%s8129_s20 + $0x88] sm:$0xff] %vm434_vm0, %v4167_v40 }
 0x934   : > { %v4108_v44 = vpop.f32.mrf.mxu0 }
 0x935   : > { %v4109_v63 = vadd.f32 %v8118_v56, %v4108_v44 }
 0x937   : > { %v4168_v36 = vadd.f32 %v5184_v21, %v4109_v63 }
 0x938   : > { %4587 = vmatmul.msk.f32.gmra.mxu0 %vm434_vm0, %v3929_v62 }
 0x939   : > { %4200 = vst.msk [vmem:[%s8129_s20 + $0x90] sm:$0xff] %vm434_vm0, %v4168_v36 }
 0x93c   : > { %v4111_v42 = vpop.f32.mrf.mxu0 }
 0x93d   : > { %v4112_v12 = vadd.f32 %v8118_v56, %v4111_v42 }
 0x93e   : > { %v3864_v22 = vpop.permute.xlu0 %3863 }
 0x93f   : > { %v4169_v4 = vadd.f32 %v5185_v58, %v4112_v12  ;;  %v3930_v20 = vsel %vm1507_vm8, %v8557_v51, %v3864_v22 }
 0x940   : > { %4588 = vmatmul.msk.f32.gmra.mxu0 %vm434_vm0, %v3930_v20 }
 0x941   : > { %4201 = vst.msk [vmem:[%s8129_s20 + $0x98] sm:$0xff] %vm434_vm0, %v4169_v4 }
 0x944   : > { %v4114_v50 = vpop.f32.mrf.mxu0 }
 0x945   : > { %v4115_v19 = vadd.f32 %v8118_v56, %v4114_v50 }
 0x947   : > { %v4170_v52 = vadd.f32 %v5186_v8, %v4115_v19 }
 0x949   : > { %4202 = vst.msk [vmem:[%s8129_s20 + $0xa0] sm:$0xff] %vm434_vm0, %v4170_v52 }
 0x94c   : > { %v4117_v55 = vpop.f32.mrf.mxu0 }
 0x94d   : > { %v4118_v28 = vadd.f32 %v8118_v56, %v4117_v55 }
 0x94f   : > { %v4171_v2 = vadd.f32 %v5187_v32, %v4118_v28 }
 0x951   : > { %4203 = vst.msk [vmem:[%s8129_s20 + $0xa8] sm:$0xff] %vm434_vm0, %v4171_v2 }
 0x954   : > { %v4120_v34 = vpop.f32.mrf.mxu0 }
 0x955   : > { %v4121_v27 = vadd.f32 %v8118_v56, %v4120_v34 }
 0x957   : > { %v4172_v15 = vadd.f32 %v5188_v59, %v4121_v27 }
 0x959   : > { %4204 = vst.msk [vmem:[%s8129_s20 + $0xb0] sm:$0xff] %vm434_vm0, %v4172_v15 }
 0x95c   : > { %v4123_v26 = vpop.f32.mrf.mxu0 }
 0x95d   : > { %v4124_v47 = vadd.f32 %v8118_v56, %v4123_v26  ;;  %v3866_v30 = vpop.permute.xlu1 %3865 }
 0x95e   : > { %v3931_v5 = vsel %vm1507_vm8, %v8558_v39, %v3866_v30 }
 0x95f   : > { %v4173_v23 = vadd.f32 %v5189_v61, %v4124_v47  ;;  %4589 = vmatmul.msk.f32.gmra.mxu0 %vm434_vm0, %v3931_v5 }
 0x961   : > { %4205 = vst.msk [vmem:[%s8129_s20 + $0xb8] sm:$0xff] %vm434_vm0, %v4173_v23 }
 0x964   : > { %v4126_v17 = vpop.f32.mrf.mxu0 }
 0x965   : > { %v4127_v29 = vadd.f32 %v8118_v56, %v4126_v17 }
 0x967   : > { %v4174_v11 = vadd.f32 %v5190_v18, %v4127_v29  ;;  %v3868_v45 = vpop.permute.xlu2 %3867 }
 0x968   : > { %v3932_v3 = vsel %vm1507_vm8, %v8559_v37, %v3868_v45 }
 0x969   : > { %4206 = vst.msk [vmem:[%s8129_s20 + $0xc0] sm:$0xff] %vm434_vm0, %v4174_v11  ;;  %4590 = vmatmul.msk.f32.gmra.mxu0 %vm434_vm0, %v3932_v3 }
 0x96c   : > { %v4129_v7 = vpop.f32.mrf.mxu0 }
 0x96d   : > { %v4130_v46 = vadd.f32 %v8118_v56, %v4129_v7 }
 0x96f   : > { %v4175_v33 = vadd.f32 %v5191_v1, %v4130_v46 }
 0x971   : > { %4207 = vst.msk [vmem:[%s8129_s20 + $0xc8] sm:$0xff] %vm434_vm0, %v4175_v33 }
 0x9a5   : > { %v4132_v9 = vpop.f32.mrf.mxu0 }
 0x9a6   : > { %v4133_v31 = vadd.f32 %v8118_v56, %v4132_v9 }
 0x9a8   : > { %v4176_v16 = vadd.f32 %v5192_v57, %v4133_v31 }
 0x9aa   : > { %4208 = vst.msk [vmem:[%s8129_s20 + $0xd0] sm:$0xff] %vm434_vm0, %v4176_v16 }
 0x9ad   : > { %v4135_v35 = vpop.f32.mrf.mxu0 }
 0x9ae   : > { %v4136_v0 = vadd.f32 %v8118_v56, %v4135_v35 }
 0x9b0   : > { %v4177_v38 = vadd.f32 %v5193_v60, %v4136_v0 }
 0x9b2   : > { %4209 = vst.msk [vmem:[%s8129_s20 + $0xd8] sm:$0xff] %vm434_vm0, %v4177_v38 }
 0x9b5   : > { %v4138_v53 = vpop.f32.mrf.mxu0 }
 0x9b6   : > { %v4139_v25 = vadd.f32 %v8118_v56, %v4138_v53 }
 0x9b8   : > { %v4178_v14 = vadd.f32 %v5194_v43, %v4139_v25 }
 0x9ba   : > { %4210 = vst.msk [vmem:[%s8129_s20 + $0xe0] sm:$0xff] %vm434_vm0, %v4178_v14 }
 0x9bd   : > { %v4141_v24 = vpop.f32.mrf.mxu0 }
 0x9be   : > { %v4142_v54 = vadd.f32 %v8118_v56, %v4141_v24 }
 0x9c0   : > { %v4179_v6 = vadd.f32 %v5195_v13, %v4142_v54 }
 0x9c2   : > { %4211 = vst.msk [vmem:[%s8129_s20 + $0xe8] sm:$0xff] %vm434_vm0, %v4179_v6 }
 0x9dc   : > { %v4144_v40 = vpop.f32.mrf.mxu0 }
 0x9dd   : > { %v4145_v48 = vadd.f32 %v8118_v56, %v4144_v40 }
 0x9df   : > { %v4180_v10 = vadd.f32 %v5196_v49, %v4145_v48 }
 0x9e1   : > { %4212 = vst.msk [vmem:[%s8129_s20 + $0xf0] sm:$0xff] %vm434_vm0, %v4180_v10 }
 0x9e6   : > { %v4147_v44 = vpop.f32.mrf.mxu0 }
 0x9e7   : > { %v4148_v63 = vadd.f32 %v8118_v56, %v4147_v44 }
 0x9e9   : > { %v4181_v62 = vadd.f32 %v5197_v41, %v4148_v63 }
 0x9eb   : > { %4213 = vst.msk [vmem:[%s8129_s20 + $0xf8] sm:$0xff] %vm434_vm0, %v4181_v62 }
 0x9ec PF: > { %s19_s11 = sadd.s32 1, %s5220_s11   ;;  %s8560_s30 = smov %s5216_s10 }
 0x9ed   : > { %p16_p5 = scmp.ge.s32.totalorder %s19_s11, 4   ;;  %s8561_s10 = smov %s8563_s12 }
 0x9ef   :  { %18 = sbr.rel (!%p16_p5) target bundleno = 2 (0x2), region = 89 }

</bundles_post_ra>
